<compile_context>
chip_gen: v7x
topology: tpu7x:2x2x1
jax: 0.10.0
libtpu: 0.0.40
codegen_flags: <defaults>
</compile_context>

<pallas_src>
import functools

import jax
import jax.numpy as jnp
from jax.experimental import pallas as pl
from jax.experimental.pallas import tpu as pltpu

_COMPUTE_DTYPE = jnp.bfloat16           # weights / activations (f32 accumulation)
_VMEM_LIMIT = 40 * 1024 * 1024          # explicit scoped-VMEM cap (v7x-safe)


def _pick_tile(dim, candidates):
    """Largest candidate that divides `dim`; otherwise the full dim."""
    for c in candidates:
        if dim % c == 0:
            return c
    return dim


# ----------------------------------------------------------------------------
# Fused 3x3 conv (+ fused channel-concat of multiple inputs) + folded-BN + ReLU
# ----------------------------------------------------------------------------
def _conv3x3_kernel(*refs, H, W, n_in, single_dot, relu):
    # refs = (x_0..x_{n_in-1}, w_0..w_{n_in-1}, scale, bias, out)
    #   x_i : (nimg, H*W + 2*W + 2, Cin_i)  row-flattened, zero padded
    #   w_i : (9*Cin_i, tn)                 taps ordered (dy, dx), cin minor
    #   scale, bias : (1, tn) float32       folded BatchNorm
    #   out : (nimg, H*W, tn)
    x_refs = refs[:n_in]
    w_refs = refs[n_in:2 * n_in]
    s_ref, b_ref, o_ref = refs[2 * n_in], refs[2 * n_in + 1], refs[2 * n_in + 2]
    HW = H * W
    nimg = x_refs[0].shape[0]
    tn = w_refs[0].shape[-1]

    # Tap (dy, dx) of output pixel m = y*W + x reads padded flat row m + dy*W+dx.
    # The only invalid reads are the horizontally wrapped ones: dx==0 at x==0 and
    # dx==2 at x==W-1 -> zero them with two iota masks (exact 0/1 in bf16).
    col = jax.lax.broadcasted_iota(jnp.int32, (HW, 1), 0) % W
    not_left = (col != 0).astype(x_refs[0].dtype)
    not_right = (col != (W - 1)).astype(x_refs[0].dtype)

    def tap(x_ref, n, dy, dx):
        xm = x_ref[n, pl.ds(dy * W + dx, HW), :]
        if dx == 0:
            xm = xm * not_left
        elif dx == 2:
            xm = xm * not_right
        return xm

    acc = jnp.zeros((nimg * HW, tn), jnp.float32)
    if single_dot:
        # Deep stages: build a (nimg*HW, 9*Cin_i) im2col in VMEM per input and
        # run one MXU dot (batch folded into M, 9 taps folded into K).
        for x_ref, w_ref in zip(x_refs, w_refs):
            per_img = []
            for n in range(nimg):
                pieces = [tap(x_ref, n, dy, dx)
                          for dy in range(3) for dx in range(3)]
                per_img.append(jnp.concatenate(pieces, axis=-1))
            patches = per_img[0] if nimg == 1 else jnp.concatenate(per_img, axis=0)
            acc = acc + jnp.dot(patches, w_ref[...],
                                preferred_element_type=jnp.float32)
    else:
        # Large-spatial stages (M = H*W rows per image): 9 accumulated dots.
        for x_ref, w_ref in zip(x_refs, w_refs):
            cin = x_ref.shape[-1]
            for dy in range(3):
                for dx in range(3):
                    t = dy * 3 + dx
                    acc = acc + jnp.dot(tap(x_ref, 0, dy, dx),
                                        w_ref[pl.ds(t * cin, cin), :],
                                        preferred_element_type=jnp.float32)

    y = acc * s_ref[...] + b_ref[...]
    if relu:
        y = jnp.maximum(y, 0.0)
    o_ref[...] = y.reshape(nimg, HW, tn).astype(o_ref.dtype)


def conv3x3_bn_relu(xs, ws, scale, bias, relu=True, out_dtype=_COMPUTE_DTYPE):
    """Fused SAME-padded 3x3 conv over the channel-concat of `xs` + BN + ReLU.

    xs: list of (N,H,W,Cin_i) NHWC activations (logically concatenated).
    ws: matching list of (9, Cin_i, Cout) weights, taps ordered (dy, dx).
    scale, bias: (Cout,) folded BatchNorm scale / shift.
    """
    N, H, W, _ = xs[0].shape
    HW = H * W
    L = HW + 2 * W + 2
    Cout = ws[0].shape[-1]
    cins = [x.shape[-1] for x in xs]

    # Single zero-pad of flattened rows == pad H by one row each side + guards.
    xfs = []
    for x in xs:
        xf = x.reshape(N, HW, x.shape[-1]).astype(_COMPUTE_DTYPE)
        xfs.append(jnp.pad(xf, ((0, 0), (W + 1, W + 1), (0, 0))))
    wfs = [w.reshape(9 * w.shape[1], Cout).astype(_COMPUTE_DTYPE) for w in ws]
    scale = scale.reshape(1, Cout).astype(jnp.float32)
    bias = bias.reshape(1, Cout).astype(jnp.float32)

    tn = _pick_tile(Cout, (512, 256, 128))        # tn <= 512 (v7x VMEM-safe)
    batched = (N * HW <= 256)                     # deep stages: batch -> M dim

    if batched:
        if Cout // tn == 1 and tn % 256 == 0:
            tn //= 2                              # >=2 oc blocks for megacore
        grid = (Cout // tn,)
        x_specs = [pl.BlockSpec((N, L, c), lambda j: (0, 0, 0)) for c in cins]
        w_specs = [pl.BlockSpec((9 * c, tn), lambda j: (0, j)) for c in cins]
        v_specs = [pl.BlockSpec((1, tn), lambda j: (0, j))] * 2
        out_spec = pl.BlockSpec((N, HW, tn), lambda j: (0, 0, j))
        semantics = ("parallel",)
    else:
        grid = (Cout // tn, N)                    # oc outer: weight DMA'd once,
        x_specs = [pl.BlockSpec((1, L, c), lambda j, n: (n, 0, 0)) for c in cins]
        w_specs = [pl.BlockSpec((9 * c, tn), lambda j, n: (0, j)) for c in cins]
        v_specs = [pl.BlockSpec((1, tn), lambda j, n: (0, j))] * 2
        out_spec = pl.BlockSpec((1, HW, tn), lambda j, n: (n, 0, j))
        semantics = ("parallel", "parallel")

    out = pl.pallas_call(
        functools.partial(_conv3x3_kernel, H=H, W=W, n_in=len(xs),
                          single_dot=batched, relu=relu),
        out_shape=jax.ShapeDtypeStruct((N, HW, Cout), out_dtype),
        grid_spec=pltpu.PrefetchScalarGridSpec(
            num_scalar_prefetch=0,
            grid=grid,
            in_specs=x_specs + w_specs + v_specs,
            out_specs=out_spec),
        compiler_params=pltpu.CompilerParams(
            dimension_semantics=semantics,
            vmem_limit_bytes=_VMEM_LIMIT),
    )(*xfs, *wfs, scale, bias)
    return out.reshape(N, H, W, Cout)


# ----------------------------------------------------------------------------
# Fused matmul + (optional scale) + bias (+ReLU); whole K in one pass.
# Used for the stem im2col conv, ConvTranspose2d(2,2) and the 1x1 OutConv.
# ----------------------------------------------------------------------------
def _mm_kernel(*refs, relu, has_scale):
    if has_scale:
        x_ref, w_ref, s_ref, b_ref, o_ref = refs
    else:
        x_ref, w_ref, b_ref, o_ref = refs
    y = jnp.dot(x_ref[...], w_ref[...], preferred_element_type=jnp.float32)
    if has_scale:
        y = y * s_ref[...]
    y = y + b_ref[...]
    if relu:
        y = jnp.maximum(y, 0.0)
    o_ref[...] = y.astype(o_ref.dtype)


def fused_matmul(x, w, bias, scale=None, relu=False, out_dtype=_COMPUTE_DTYPE):
    M, K = x.shape
    K2, Nc = w.shape
    assert K == K2
    tm = _pick_tile(M, (1024, 512, 256, 128))
    tn = _pick_tile(Nc, (512, 256, 128))
    if M // tm == 1 and Nc // tn == 1 and tn % 256 == 0:
        tn //= 2                                  # keep >=2 blocks (megacore)
    grid = (M // tm, Nc // tn)

    operands = [x.astype(_COMPUTE_DTYPE), w.astype(_COMPUTE_DTYPE)]
    in_specs = [pl.BlockSpec((tm, K), lambda i, j: (i, 0)),
                pl.BlockSpec((K, tn), lambda i, j: (0, j))]
    if scale is not None:
        operands.append(scale.reshape(1, Nc).astype(jnp.float32))
        in_specs.append(pl.BlockSpec((1, tn), lambda i, j: (0, j)))
    operands.append(bias.reshape(1, Nc).astype(jnp.float32))
    in_specs.append(pl.BlockSpec((1, tn), lambda i, j: (0, j)))

    return pl.pallas_call(
        functools.partial(_mm_kernel, relu=relu, has_scale=scale is not None),
        out_shape=jax.ShapeDtypeStruct((M, Nc), out_dtype),
        grid_spec=pltpu.PrefetchScalarGridSpec(
            num_scalar_prefetch=0,
            grid=grid,
            in_specs=in_specs,
            out_specs=pl.BlockSpec((tm, tn), lambda i, j: (i, j))),
        compiler_params=pltpu.CompilerParams(
            dimension_semantics=("parallel", "parallel"),
            vmem_limit_bytes=_VMEM_LIMIT),
    )(*operands)


# ----------------------------------------------------------------------------
# Pseudo-label head: MaxPool2d(2) -> Flatten -> Dropout(eval) -> Linear(1024,
# 1024) -> BatchNorm1d (folded) -> Linear(1024, 1), all in one pallas_call.
# ----------------------------------------------------------------------------
def _pl_head_kernel(x_ref, w1_ref, s1_ref, b1_ref, w2_ref, b2_ref, o_ref):
    z = jnp.max(x_ref[...], axis=1)                      # 2x2 max-pool -> (N, 1024)
    h = jnp.dot(z, w1_ref[...], preferred_element_type=jnp.float32)
    h = h * s1_ref[...] + b1_ref[...]                    # Linear bias + BN1d folded
    y = jnp.dot(h.astype(w2_ref.dtype), w2_ref[...],
                preferred_element_type=jnp.float32) + b2_ref[...]
    o_ref[...] = y.astype(o_ref.dtype)


def pseudo_label_head(x5, p):
    N, Hs, Ws, C = x5.shape
    assert Hs == 2 and Ws == 2 and C == 1024, "pseudo-label head expects 2x2x1024"
    x = x5.reshape(N, Hs * Ws, C).astype(_COMPUTE_DTYPE)
    out = pl.pallas_call(
        _pl_head_kernel,
        out_shape=jax.ShapeDtypeStruct((N, 128), jnp.float32),
        grid_spec=pltpu.PrefetchScalarGridSpec(
            num_scalar_prefetch=0,
            grid=(1,),
            in_specs=[pl.BlockSpec((N, Hs * Ws, C), lambda i: (0, 0, 0)),
                      pl.BlockSpec((1024, 1024), lambda i: (0, 0)),
                      pl.BlockSpec((1, 1024), lambda i: (0, 0)),
                      pl.BlockSpec((1, 1024), lambda i: (0, 0)),
                      pl.BlockSpec((1024, 128), lambda i: (0, 0)),
                      pl.BlockSpec((1, 128), lambda i: (0, 0))],
            out_specs=pl.BlockSpec((N, 128), lambda i: (0, 0))),
        compiler_params=pltpu.CompilerParams(
            dimension_semantics=("arbitrary",),
            vmem_limit_bytes=_VMEM_LIMIT),
    )(x, p["w1"], p["s1"], p["b1"], p["w2"], p["b2"])
    return out[:, :1]                                    # 1-wide logit (padded store)


# ----------------------------------------------------------------------------
# Network building blocks (small glue ops stay in XLA; matmuls are Pallas)
# ----------------------------------------------------------------------------
def maxpool2(x):
    # nn.MaxPool2d(2); cheap reduce, left to XLA.
    N, H, W, C = x.shape
    return jnp.max(x.reshape(N, H // 2, 2, W // 2, 2, C), axis=(2, 4))


def double_conv(x, p):
    # TODO(synk): the two convs of the deepest stages could be fused into one
    # pallas_call with the intermediate in VMEM scratch; kept as two calls
    # (each already batched-M single-dot) for simplicity / VMEM headroom.
    x = conv3x3_bn_relu([x], [p["w1"]], p["s1"], p["b1"])
    return conv3x3_bn_relu([x], [p["w2"]], p["s2"], p["b2"])


def inc_block(x, p):
    # Stem conv (Cin=3): tiny XLA im2col + ONE K=27 MXU dot (instead of nine
    # lane-sparse K=3 dots), then the normal fused conv for conv2.
    N, H, W, Cin = x.shape
    xp = jnp.pad(x.astype(_COMPUTE_DTYPE), ((0, 0), (1, 1), (1, 1), (0, 0)))
    cols = jnp.concatenate(
        [xp[:, dy:dy + H, dx:dx + W, :] for dy in range(3) for dx in range(3)],
        axis=-1)                                         # (N, H, W, 9*Cin)
    Cout = p["w1"].shape[-1]
    y = fused_matmul(cols.reshape(N * H * W, 9 * Cin),
                     p["w1"].reshape(9 * Cin, Cout),
                     p["b1"], scale=p["s1"], relu=True)
    y = y.reshape(N, H, W, Cout)
    return conv3x3_bn_relu([y], [p["w2"]], p["s2"], p["b2"])


def conv_transpose2x2(x, w, b):
    # ConvTranspose2d(Cin, Cout, k=2, s=2): w (Cin, 4*Cout), cols ordered (ry,rx,c)
    N, H, W, Cin = x.shape
    Cout = w.shape[1] // 4
    y = fused_matmul(x.reshape(N * H * W, Cin), w, jnp.tile(b, 4), relu=False)
    y = y.reshape(N, H, W, 2, 2, Cout)
    # TODO(synk): the sub-pixel shuffle stays in XLA; folding it into the
    # kernel's out_specs needs an in-kernel sublane transpose and only pays off
    # at larger resolutions.
    return y.transpose(0, 1, 3, 2, 4, 5).reshape(N, 2 * H, 2 * W, Cout)


def up_block(x1, x2, p):
    # PyTorch Up.forward(x1=deep, x2=skip): upsample x1, pad to x2, cat([x2,x1]),
    # DoubleConv.  The concat is fused into the first conv (two input refs).
    x1 = conv_transpose2x2(x1, p["up_w"], p["up_b"])
    dH = x2.shape[1] - x1.shape[1]
    dW = x2.shape[2] - x1.shape[2]
    if dH or dW:
        x1 = jnp.pad(x1, ((0, 0), (dH // 2, dH - dH // 2),
                          (dW // 2, dW - dW // 2), (0, 0)))
    c = p["conv"]
    h = conv3x3_bn_relu([x2, x1], [c["w1a"], c["w1b"]], c["s1"], c["b1"])
    return conv3x3_bn_relu([h], [c["w2"]], c["s2"], c["b2"])


# ----------------------------------------------------------------------------
# Parameter init (deterministic; shapes follow the PyTorch __init__, eval mode)
# ----------------------------------------------------------------------------
def _bn_fold(C, eps=1e-5):
    # eval-mode BN with gamma=1, beta=0, running_mean=0, running_var=1
    gamma = jnp.ones((C,), jnp.float32)
    beta = jnp.zeros((C,), jnp.float32)
    mean = jnp.zeros((C,), jnp.float32)
    var = jnp.ones((C,), jnp.float32)
    s = gamma / jnp.sqrt(var + eps)
    return s, beta - mean * s


def _conv_w(key, cin, cout):
    return jax.random.normal(key, (9, cin, cout), jnp.float32) / jnp.sqrt(9.0 * cin)


def _pad_cout(w, s, b, cpad):
    cout = w.shape[-1]
    if cpad == cout:
        return w, s, b
    return (jnp.pad(w, ((0, 0), (0, 0), (0, cpad - cout))),
            jnp.pad(s, (0, cpad - cout), constant_values=1.0),
            jnp.pad(b, (0, cpad - cout)))


def _pad_cin(w, cpad):
    cin = w.shape[1]
    if cpad == cin:
        return w
    return jnp.pad(w, ((0, 0), (0, cpad - cin), (0, 0)))


def init_double_conv(key, cin, cout, *, cin_pad=None, cout_pad=None):
    # DoubleConv(cin, cout) with mid_channels = cout; BN folded (eval mode).
    # cin_pad / cout_pad zero-pad channels to 128 for lane-dense stores; the
    # padded channels stay exactly zero through the whole network.
    cin_pad = cin_pad or cin
    cout_pad = cout_pad or cout
    k1, k2 = jax.random.split(key)
    w1 = _conv_w(k1, cin, cout); s1, b1 = _bn_fold(cout)
    w2 = _conv_w(k2, cout, cout); s2, b2 = _bn_fold(cout)
    w1, s1, b1 = _pad_cout(w1, s1, b1, cout_pad)
    w1 = _pad_cin(w1, cin_pad)
    w2, s2, b2 = _pad_cout(w2, s2, b2, cout_pad)
    w2 = _pad_cin(w2, cout_pad)
    return {"w1": w1.astype(_COMPUTE_DTYPE), "s1": s1, "b1": b1,
            "w2": w2.astype(_COMPUTE_DTYPE), "s2": s2, "b2": b2}


def init_up(key, cin, cout, *, skip_pad=None, cout_pad=None):
    # Up(cin, cout, bilinear=False): ConvTranspose2d(cin, cin//2, 2, 2) then
    # DoubleConv(cin, cout) on cat([skip, upsampled]).
    cup = cin // 2
    cskip = cin - cup
    skip_pad = skip_pad or cskip
    cout_pad = cout_pad or cout
    k1, k2, k3, k4 = jax.random.split(key, 4)
    up_w = jax.random.normal(k1, (cin, 4 * cup), jnp.float32) / jnp.sqrt(4.0 * cin)
    up_b = jax.random.normal(k2, (cup,), jnp.float32) * 0.01
    w1 = _conv_w(k3, cin, cout); s1, b1 = _bn_fold(cout)
    w2 = _conv_w(k4, cout, cout); s2, b2 = _bn_fold(cout)
    w1, s1, b1 = _pad_cout(w1, s1, b1, cout_pad)
    w1a = _pad_cin(w1[:, :cskip, :], skip_pad)      # skip (x2) half of cat([x2,x1])
    w1b = w1[:, cskip:, :]                          # upsampled (x1) half
    w2, s2, b2 = _pad_cout(w2, s2, b2, cout_pad)
    w2 = _pad_cin(w2, cout_pad)
    return {"up_w": up_w.astype(_COMPUTE_DTYPE),
            "up_b": up_b.astype(jnp.float32),
            "conv": {"w1a": w1a.astype(_COMPUTE_DTYPE),
                     "w1b": w1b.astype(_COMPUTE_DTYPE),
                     "s1": s1, "b1": b1,
                     "w2": w2.astype(_COMPUTE_DTYPE), "s2": s2, "b2": b2}}


def init_unet(key, n_channels, n_classes):
    ks = jax.random.split(key, 16)
    p = {
        "inc":   init_double_conv(ks[0], n_channels, 64, cout_pad=128),
        "down1": init_double_conv(ks[1], 64, 128, cin_pad=128),
        "down2": init_double_conv(ks[2], 128, 256),
        "down3": init_double_conv(ks[3], 256, 512),
        "down4": init_double_conv(ks[4], 512, 1024),
        "up1": init_up(ks[5], 1024, 512),
        "up2": init_up(ks[6], 512, 256),
        "up3": init_up(ks[7], 256, 128),
        "up4": init_up(ks[8], 128, 64, skip_pad=128, cout_pad=128),
    }
    # OutConv: Conv2d(64, n_classes, 1) + bias; rows padded to the 128-wide
    # (zero-upper) up4 activation, columns padded to 128 lanes (sliced later).
    ncls_pad = max(128, ((n_classes + 127) // 128) * 128)
    outc_w = jnp.zeros((128, ncls_pad), jnp.float32).at[:64, :n_classes].set(
        jax.random.normal(ks[9], (64, n_classes), jnp.float32) / 8.0)
    outc_b = jnp.zeros((ncls_pad,), jnp.float32).at[:n_classes].set(
        jax.random.normal(ks[10], (n_classes,), jnp.float32) * 0.01)
    p["outc_w"] = outc_w.astype(_COMPUTE_DTYPE)
    p["outc_b"] = outc_b

    # pseudo_label head: MaxPool2d(2) -> Flatten -> Dropout -> Linear(1024,1024)
    #                    -> BatchNorm1d(1024) -> Linear(1024,1)
    w1 = jax.random.normal(ks[11], (1024, 1024), jnp.float32) / 32.0
    b1 = jax.random.normal(ks[12], (1024,), jnp.float32) * 0.01
    s_bn, t_bn = _bn_fold(1024)
    w2 = jax.random.normal(ks[13], (1024, 1), jnp.float32) / 32.0
    b2 = jax.random.normal(ks[14], (1,), jnp.float32) * 0.01
    w2_pad = jnp.zeros((1024, 128), jnp.float32).at[:, :1].set(w2)
    b2_pad = jnp.zeros((128,), jnp.float32).at[:1].set(b2)
    p["pl"] = {
        "w1": w1.astype(_COMPUTE_DTYPE),
        "s1": s_bn.reshape(1, 1024),
        "b1": (s_bn * b1 + t_bn).reshape(1, 1024),   # BN1d folded into Linear bias
        "w2": w2_pad.astype(_COMPUTE_DTYPE),
        "b2": b2_pad.reshape(1, 128),
    }
    return p


# ----------------------------------------------------------------------------
# UNet forward (NHWC internally)
# ----------------------------------------------------------------------------
def unet_forward(x, params, n_classes):
    p = params
    x1 = inc_block(x, p["inc"])                        # (N,32,32,128) [real 64]
    x2 = double_conv(maxpool2(x1), p["down1"])         # (N,16,16,128)
    x3 = double_conv(maxpool2(x2), p["down2"])         # (N, 8, 8,256)
    x4 = double_conv(maxpool2(x3), p["down3"])         # (N, 4, 4,512)
    x5 = double_conv(maxpool2(x4), p["down4"])         # (N, 2, 2,1024)

    y = up_block(x5, x4, p["up1"])
    y = up_block(y, x3, p["up2"])
    y = up_block(y, x2, p["up3"])
    y = up_block(y, x1, p["up4"])                      # (N,32,32,128) [real 64]

    N, H, W, C = y.shape
    logits = fused_matmul(y.reshape(N * H * W, C), p["outc_w"], p["outc_b"],
                          relu=False, out_dtype=jnp.float32)
    logits = logits.reshape(N, H, W, -1)[..., :n_classes]

    # TODO(synk): Dropout is eval-mode identity; BatchNorm uses folded running
    # statistics (training-mode forward not reproduced).
    pseudo = pseudo_label_head(x5, p["pl"])
    return logits, pseudo, x5


def unet_apply(x_nchw, params, *, n_classes):
    # PyTorch NCHW in / NCHW out
    x = jnp.transpose(x_nchw, (0, 2, 3, 1)).astype(_COMPUTE_DTYPE)
    logits, pseudo, latent = unet_forward(x, params, n_classes)
    return (
        jnp.transpose(logits, (0, 3, 1, 2)).astype(jnp.float32),
        pseudo.astype(jnp.float32),
        jnp.transpose(latent, (0, 3, 1, 2)).astype(jnp.float32),
    )


# ----------------------------------------------------------------------------
# Correctness reference for the fused 3x3 conv kernel
# ----------------------------------------------------------------------------
def _conv3x3_reference(xs, ws, scale, bias, relu=True):
    x = jnp.concatenate(
        [v.astype(_COMPUTE_DTYPE).astype(jnp.float32) for v in xs], axis=-1)
    w = jnp.concatenate(
        [v.astype(_COMPUTE_DTYPE).astype(jnp.float32) for v in ws], axis=1)
    N, H, W, Cin = x.shape
    Cout = w.shape[-1]
    w_hwio = w.reshape(3, 3, Cin, Cout)
    y = jax.lax.conv_general_dilated(
        x, w_hwio, window_strides=(1, 1), padding="SAME",
        dimension_numbers=("NHWC", "HWIO", "NHWC"),
        precision=jax.lax.Precision.HIGHEST)
    y = y * scale.reshape(1, 1, 1, Cout) + bias.reshape(1, 1, 1, Cout)
    return jnp.maximum(y, 0.0) if relu else y


if __name__ == "__main__":
    key = jax.random.PRNGKey(0)
    kt = jax.random.split(key, 6)

    # --- smoke test 1: per-image (large-spatial) 9-tap path vs lax.conv -----
    xt = jax.random.normal(kt[0], (2, 16, 16, 16), jnp.float32)
    wt = jax.random.normal(kt[1], (9, 16, 128), jnp.float32) / 12.0
    st = jnp.full((128,), 0.7, jnp.float32)
    bt = jax.random.normal(kt[2], (128,), jnp.float32) * 0.1
    got = conv3x3_bn_relu([xt], [wt], st, bt).astype(jnp.float32)
    want = _conv3x3_reference([xt], [wt], st, bt)
    err = float(jnp.max(jnp.abs(got - want)))
    assert err < 0.05, f"per-image conv3x3 mismatch (max abs err {err})"

    # --- smoke test 2: batched deep path + fused two-input skip concat ------
    xa = jax.random.normal(kt[3], (2, 4, 4, 128), jnp.float32)
    xb = jax.random.normal(kt[4], (2, 4, 4, 128), jnp.float32)
    wa = jax.random.normal(kt[5], (9, 128, 128), jnp.float32) / 48.0
    wb = jax.random.normal(kt[0], (9, 128, 128), jnp.float32) / 48.0
    got = conv3x3_bn_relu([xa, xb], [wa, wb], st, bt).astype(jnp.float32)
    want = _conv3x3_reference([xa, xb], [wa, wb], st, bt)
    err = float(jnp.max(jnp.abs(got - want)))
    assert err < 0.05, f"batched fused-concat conv3x3 mismatch (max abs err {err})"

    # --- full UNet forward ---------------------------------------------------
    n_channels, n_classes = 3, 2
    N, H, W = 2, 32, 32  # 32x32 so the pseudo-label Linear(1024) input matches

    k_x, k_p = jax.random.split(key)
    x = jax.random.normal(k_x, (N, n_channels, H, W), jnp.float32)
    params = init_unet(k_p, n_channels, n_classes)

    fwd = jax.jit(functools.partial(unet_apply, n_classes=n_classes))
    logits, pseudo, latent = fwd(x, params)
    jax.block_until_ready((logits, pseudo, latent))

    assert logits.shape == (N, n_classes, H, W)
    assert pseudo.shape == (N, 1)
    assert latent.shape == (N, 1024, H // 16, W // 16)
    assert bool(jnp.isfinite(logits).all())
    assert bool(jnp.isfinite(pseudo).all())
    assert bool(jnp.isfinite(latent).all())
    print("KERNEL_OK")
</pallas_src>

<mosaic_0001>
module attributes {stable_mosaic.version = 11 : i64} {
  func.func @_conv3x3_kernel(%arg0: i32, %arg1: i32, %arg2: memref<1x290x16xbf16, #tpu.memory_space<vmem>>, %arg3: memref<144x128xbf16, #tpu.memory_space<vmem>>, %arg4: memref<1x128xf32, #tpu.memory_space<vmem>>, %arg5: memref<1x128xf32, #tpu.memory_space<vmem>>, %arg6: memref<1x256x128xbf16, #tpu.memory_space<vmem>>) attributes {dimension_semantics = [#tpu.dimension_semantics<parallel>, #tpu.dimension_semantics<parallel>], iteration_bounds = array<i64: 1, 2>, scalar_prefetch = 0 : i64, scratch_operands = 0 : i64, tpu.core_type = #tpu.core_type<tc>, window_params = [{transform_indices = @transform_0, window_bounds = array<i64: 1, 290, 16>}, {transform_indices = @transform_1, window_bounds = array<i64: 144, 128>}, {transform_indices = @transform_2, window_bounds = array<i64: 1, 128>}, {transform_indices = @transform_3, window_bounds = array<i64: 1, 128>}, {transform_indices = @transform_4, window_bounds = array<i64: 1, 256, 128>}]} {
    %0 = tpu.iota {dimensions = array<i32: 0>} : vector<256x1xi32>
    %c16_i32 = arith.constant 16 : i32
    %c0_i32 = arith.constant 0 : i32
    %1 = arith.cmpi eq, %c16_i32, %c0_i32 : i32
    %c1_i32 = arith.constant 1 : i32
    %2 = arith.select %1, %c1_i32, %c16_i32 : i32
    %3 = vector.broadcast %2 : i32 to vector<256x1xi32>
    %4 = arith.remsi %0, %3 : vector<256x1xi32>
    %c0_i32_0 = arith.constant 0 : i32
    %5 = vector.broadcast %c0_i32_0 : i32 to vector<256x1xi32>
    %6 = arith.cmpi ne, %4, %5 : vector<256x1xi32>
    %c0_i32_1 = arith.constant 0 : i32
    %7 = vector.broadcast %c0_i32_1 : i32 to vector<256x1xi32>
    %8 = arith.cmpi slt, %4, %7 : vector<256x1xi32>
    %c0_i32_2 = arith.constant 0 : i32
    %9 = arith.cmpi slt, %2, %c0_i32_2 : i32
    %10 = vector.broadcast %9 : i1 to vector<256x1xi1>
    %11 = vector.broadcast %10 : vector<256x1xi1> to vector<256x1xi1>
    %12 = arith.xori %8, %11 : vector<256x1xi1>
    %13 = arith.andi %12, %6 : vector<256x1xi1>
    %14 = vector.broadcast %2 : i32 to vector<256x1xi32>
    %15 = arith.addi %4, %14 : vector<256x1xi32>
    %16 = arith.select %13, %15, %4 : vector<256x1xi1>, vector<256x1xi32>
    %c0_i32_3 = arith.constant 0 : i32
    %17 = vector.broadcast %c0_i32_3 : i32 to vector<256x1xi32>
    %18 = arith.cmpi ne, %16, %17 : vector<256x1xi32>
    %19 = arith.extui %18 : vector<256x1xi1> to vector<256x1xi32>
    %20 = arith.sitofp %19 : vector<256x1xi32> to vector<256x1xf32>
    %21 = arith.truncf %20 : vector<256x1xf32> to vector<256x1xbf16>
    %c15_i32 = arith.constant 15 : i32
    %22 = vector.broadcast %c15_i32 : i32 to vector<256x1xi32>
    %23 = arith.cmpi ne, %16, %22 : vector<256x1xi32>
    %24 = arith.extui %23 : vector<256x1xi1> to vector<256x1xi32>
    %25 = arith.sitofp %24 : vector<256x1xi32> to vector<256x1xf32>
    %26 = arith.truncf %25 : vector<256x1xf32> to vector<256x1xbf16>
    %cst = arith.constant 0.000000e+00 : f32
    %27 = vector.broadcast %cst : f32 to vector<256x128xf32>
    %c0 = arith.constant 0 : index
    %c0_4 = arith.constant 0 : index
    %c0_5 = arith.constant 0 : index
    %28 = vector.load %arg2[%c0, %c0_4, %c0_5] : memref<1x290x16xbf16, #tpu.memory_space<vmem>>, vector<1x256x16xbf16>
    %29 = vector.shape_cast %28 : vector<1x256x16xbf16> to vector<256x16xbf16>
    %30 = vector.broadcast %21 : vector<256x1xbf16> to vector<256x16xbf16>
    %31 = arith.mulf %29, %30 : vector<256x16xbf16>
    %c0_6 = arith.constant 0 : index
    %c0_7 = arith.constant 0 : index
    %32 = vector.load %arg3[%c0_6, %c0_7] : memref<144x128xbf16, #tpu.memory_space<vmem>>, vector<16x128xbf16>
    %cst_8 = arith.constant dense<0.000000e+00> : vector<256x128xf32>
    %33 = tpu.matmul %31, %32, %cst_8 {dimension_numbers = #tpu.dot_dimension_numbers<[1], [0], [0], [1], [0, 0, 1, 1], [], []>} : vector<256x16xbf16>, vector<16x128xbf16>, vector<256x128xf32> -> vector<256x128xf32>
    %34 = arith.addf %27, %33 : vector<256x128xf32>
    %c0_9 = arith.constant 0 : index
    %c1 = arith.constant 1 : index
    %c0_10 = arith.constant 0 : index
    %35 = vector.load %arg2[%c0_9, %c1, %c0_10] : memref<1x290x16xbf16, #tpu.memory_space<vmem>>, vector<1x256x16xbf16>
    %36 = vector.shape_cast %35 : vector<1x256x16xbf16> to vector<256x16xbf16>
    %c16 = arith.constant 16 : index
    %c0_11 = arith.constant 0 : index
    %37 = vector.load %arg3[%c16, %c0_11] : memref<144x128xbf16, #tpu.memory_space<vmem>>, vector<16x128xbf16>
    %cst_12 = arith.constant dense<0.000000e+00> : vector<256x128xf32>
    %38 = tpu.matmul %36, %37, %cst_12 {dimension_numbers = #tpu.dot_dimension_numbers<[1], [0], [0], [1], [0, 0, 1, 1], [], []>} : vector<256x16xbf16>, vector<16x128xbf16>, vector<256x128xf32> -> vector<256x128xf32>
    %39 = arith.addf %34, %38 : vector<256x128xf32>
    %c0_13 = arith.constant 0 : index
    %c2 = arith.constant 2 : index
    %c0_14 = arith.constant 0 : index
    %40 = vector.load %arg2[%c0_13, %c2, %c0_14] : memref<1x290x16xbf16, #tpu.memory_space<vmem>>, vector<1x256x16xbf16>
    %41 = vector.shape_cast %40 : vector<1x256x16xbf16> to vector<256x16xbf16>
    %42 = vector.broadcast %26 : vector<256x1xbf16> to vector<256x16xbf16>
    %43 = arith.mulf %41, %42 : vector<256x16xbf16>
    %c32 = arith.constant 32 : index
    %c0_15 = arith.constant 0 : index
    %44 = vector.load %arg3[%c32, %c0_15] : memref<144x128xbf16, #tpu.memory_space<vmem>>, vector<16x128xbf16>
    %cst_16 = arith.constant dense<0.000000e+00> : vector<256x128xf32>
    %45 = tpu.matmul %43, %44, %cst_16 {dimension_numbers = #tpu.dot_dimension_numbers<[1], [0], [0], [1], [0, 0, 1, 1], [], []>} : vector<256x16xbf16>, vector<16x128xbf16>, vector<256x128xf32> -> vector<256x128xf32>
    %46 = arith.addf %39, %45 : vector<256x128xf32>
    %c0_17 = arith.constant 0 : index
    %c16_18 = arith.constant 16 : index
    %c0_19 = arith.constant 0 : index
    %47 = vector.load %arg2[%c0_17, %c16_18, %c0_19] : memref<1x290x16xbf16, #tpu.memory_space<vmem>>, vector<1x256x16xbf16>
    %48 = vector.shape_cast %47 : vector<1x256x16xbf16> to vector<256x16xbf16>
    %49 = vector.broadcast %21 : vector<256x1xbf16> to vector<256x16xbf16>
    %50 = arith.mulf %48, %49 : vector<256x16xbf16>
    %c48 = arith.constant 48 : index
    %c0_20 = arith.constant 0 : index
    %51 = vector.load %arg3[%c48, %c0_20] : memref<144x128xbf16, #tpu.memory_space<vmem>>, vector<16x128xbf16>
    %cst_21 = arith.constant dense<0.000000e+00> : vector<256x128xf32>
    %52 = tpu.matmul %50, %51, %cst_21 {dimension_numbers = #tpu.dot_dimension_numbers<[1], [0], [0], [1], [0, 0, 1, 1], [], []>} : vector<256x16xbf16>, vector<16x128xbf16>, vector<256x128xf32> -> vector<256x128xf32>
    %53 = arith.addf %46, %52 : vector<256x128xf32>
    %c0_22 = arith.constant 0 : index
    %c17 = arith.constant 17 : index
    %c0_23 = arith.constant 0 : index
    %54 = vector.load %arg2[%c0_22, %c17, %c0_23] : memref<1x290x16xbf16, #tpu.memory_space<vmem>>, vector<1x256x16xbf16>
    %55 = vector.shape_cast %54 : vector<1x256x16xbf16> to vector<256x16xbf16>
    %c64 = arith.constant 64 : index
    %c0_24 = arith.constant 0 : index
    %56 = vector.load %arg3[%c64, %c0_24] : memref<144x128xbf16, #tpu.memory_space<vmem>>, vector<16x128xbf16>
    %cst_25 = arith.constant dense<0.000000e+00> : vector<256x128xf32>
    %57 = tpu.matmul %55, %56, %cst_25 {dimension_numbers = #tpu.dot_dimension_numbers<[1], [0], [0], [1], [0, 0, 1, 1], [], []>} : vector<256x16xbf16>, vector<16x128xbf16>, vector<256x128xf32> -> vector<256x128xf32>
    %58 = arith.addf %53, %57 : vector<256x128xf32>
    %c0_26 = arith.constant 0 : index
    %c18 = arith.constant 18 : index
    %c0_27 = arith.constant 0 : index
    %59 = vector.load %arg2[%c0_26, %c18, %c0_27] : memref<1x290x16xbf16, #tpu.memory_space<vmem>>, vector<1x256x16xbf16>
    %60 = vector.shape_cast %59 : vector<1x256x16xbf16> to vector<256x16xbf16>
    %61 = vector.broadcast %26 : vector<256x1xbf16> to vector<256x16xbf16>
    %62 = arith.mulf %60, %61 : vector<256x16xbf16>
    %c80 = arith.constant 80 : index
    %c0_28 = arith.constant 0 : index
    %63 = vector.load %arg3[%c80, %c0_28] : memref<144x128xbf16, #tpu.memory_space<vmem>>, vector<16x128xbf16>
    %cst_29 = arith.constant dense<0.000000e+00> : vector<256x128xf32>
    %64 = tpu.matmul %62, %63, %cst_29 {dimension_numbers = #tpu.dot_dimension_numbers<[1], [0], [0], [1], [0, 0, 1, 1], [], []>} : vector<256x16xbf16>, vector<16x128xbf16>, vector<256x128xf32> -> vector<256x128xf32>
    %65 = arith.addf %58, %64 : vector<256x128xf32>
    %c0_30 = arith.constant 0 : index
    %c32_31 = arith.constant 32 : index
    %c0_32 = arith.constant 0 : index
    %66 = vector.load %arg2[%c0_30, %c32_31, %c0_32] : memref<1x290x16xbf16, #tpu.memory_space<vmem>>, vector<1x256x16xbf16>
    %67 = vector.shape_cast %66 : vector<1x256x16xbf16> to vector<256x16xbf16>
    %68 = vector.broadcast %21 : vector<256x1xbf16> to vector<256x16xbf16>
    %69 = arith.mulf %67, %68 : vector<256x16xbf16>
    %c96 = arith.constant 96 : index
    %c0_33 = arith.constant 0 : index
    %70 = vector.load %arg3[%c96, %c0_33] : memref<144x128xbf16, #tpu.memory_space<vmem>>, vector<16x128xbf16>
    %cst_34 = arith.constant dense<0.000000e+00> : vector<256x128xf32>
    %71 = tpu.matmul %69, %70, %cst_34 {dimension_numbers = #tpu.dot_dimension_numbers<[1], [0], [0], [1], [0, 0, 1, 1], [], []>} : vector<256x16xbf16>, vector<16x128xbf16>, vector<256x128xf32> -> vector<256x128xf32>
    %72 = arith.addf %65, %71 : vector<256x128xf32>
    %c0_35 = arith.constant 0 : index
    %c33 = arith.constant 33 : index
    %c0_36 = arith.constant 0 : index
    %73 = vector.load %arg2[%c0_35, %c33, %c0_36] : memref<1x290x16xbf16, #tpu.memory_space<vmem>>, vector<1x256x16xbf16>
    %74 = vector.shape_cast %73 : vector<1x256x16xbf16> to vector<256x16xbf16>
    %c112 = arith.constant 112 : index
    %c0_37 = arith.constant 0 : index
    %75 = vector.load %arg3[%c112, %c0_37] : memref<144x128xbf16, #tpu.memory_space<vmem>>, vector<16x128xbf16>
    %cst_38 = arith.constant dense<0.000000e+00> : vector<256x128xf32>
    %76 = tpu.matmul %74, %75, %cst_38 {dimension_numbers = #tpu.dot_dimension_numbers<[1], [0], [0], [1], [0, 0, 1, 1], [], []>} : vector<256x16xbf16>, vector<16x128xbf16>, vector<256x128xf32> -> vector<256x128xf32>
    %77 = arith.addf %72, %76 : vector<256x128xf32>
    %c0_39 = arith.constant 0 : index
    %c34 = arith.constant 34 : index
    %c0_40 = arith.constant 0 : index
    %78 = vector.load %arg2[%c0_39, %c34, %c0_40] : memref<1x290x16xbf16, #tpu.memory_space<vmem>>, vector<1x256x16xbf16>
    %79 = vector.shape_cast %78 : vector<1x256x16xbf16> to vector<256x16xbf16>
    %80 = vector.broadcast %26 : vector<256x1xbf16> to vector<256x16xbf16>
    %81 = arith.mulf %79, %80 : vector<256x16xbf16>
    %c128 = arith.constant 128 : index
    %c0_41 = arith.constant 0 : index
    %82 = vector.load %arg3[%c128, %c0_41] : memref<144x128xbf16, #tpu.memory_space<vmem>>, vector<16x128xbf16>
    %cst_42 = arith.constant dense<0.000000e+00> : vector<256x128xf32>
    %83 = tpu.matmul %81, %82, %cst_42 {dimension_numbers = #tpu.dot_dimension_numbers<[1], [0], [0], [1], [0, 0, 1, 1], [], []>} : vector<256x16xbf16>, vector<16x128xbf16>, vector<256x128xf32> -> vector<256x128xf32>
    %84 = arith.addf %77, %83 : vector<256x128xf32>
    %c0_43 = arith.constant 0 : index
    %c0_44 = arith.constant 0 : index
    %85 = vector.load %arg4[%c0_43, %c0_44] : memref<1x128xf32, #tpu.memory_space<vmem>>, vector<1x128xf32>
    %86 = vector.broadcast %85 : vector<1x128xf32> to vector<256x128xf32>
    %87 = arith.mulf %84, %86 : vector<256x128xf32>
    %c0_45 = arith.constant 0 : index
    %c0_46 = arith.constant 0 : index
    %88 = vector.load %arg5[%c0_45, %c0_46] : memref<1x128xf32, #tpu.memory_space<vmem>>, vector<1x128xf32>
    %89 = vector.broadcast %88 : vector<1x128xf32> to vector<256x128xf32>
    %90 = arith.addf %87, %89 : vector<256x128xf32>
    %cst_47 = arith.constant 0.000000e+00 : f32
    %91 = vector.broadcast %cst_47 : f32 to vector<256x128xf32>
    %92 = arith.maximumf %90, %91 : vector<256x128xf32>
    %93 = vector.shape_cast %92 : vector<256x128xf32> to vector<1x256x128xf32>
    %94 = arith.truncf %93 : vector<1x256x128xf32> to vector<1x256x128xbf16>
    %c0_48 = arith.constant 0 : index
    %c0_49 = arith.constant 0 : index
    %c0_50 = arith.constant 0 : index
    %95 = vector.load %arg6[%c0_48, %c0_49, %c0_50] : memref<1x256x128xbf16, #tpu.memory_space<vmem>>, vector<1x256x128xbf16>
    tpu.vector_store %arg6[%c0_48, %c0_49, %c0_50], %94 {strides = array<i32>} : memref<1x256x128xbf16, #tpu.memory_space<vmem>>, vector<1x256x128xbf16>,
    return
  }
  func.func @transform_0(%arg0: i32, %arg1: i32) -> (i32, i32, i32) {
    %c0_i32 = arith.constant 0 : i32
    %c0_i32_0 = arith.constant 0 : i32
    %c0_i32_1 = arith.constant 0 : i32
    return %arg1, %c0_i32, %c0_i32_0 : i32, i32, i32
  }
  func.func @transform_1(%arg0: i32, %arg1: i32) -> (i32, i32) {
    %c0_i32 = arith.constant 0 : i32
    %c0_i32_0 = arith.constant 0 : i32
    return %c0_i32, %arg0 : i32, i32
  }
  func.func @transform_2(%arg0: i32, %arg1: i32) -> (i32, i32) {
    %c0_i32 = arith.constant 0 : i32
    %c0_i32_0 = arith.constant 0 : i32
    return %c0_i32, %arg0 : i32, i32
  }
  func.func @transform_3(%arg0: i32, %arg1: i32) -> (i32, i32) {
    %c0_i32 = arith.constant 0 : i32
    %c0_i32_0 = arith.constant 0 : i32
    return %c0_i32, %arg0 : i32, i32
  }
  func.func @transform_4(%arg0: i32, %arg1: i32) -> (i32, i32, i32) {
    %c0_i32 = arith.constant 0 : i32
    %c0_i32_0 = arith.constant 0 : i32
    return %arg1, %c0_i32, %arg0 : i32, i32, i32
  }
}

</mosaic_0001>

<bundles_post_ra>
// kernel: tpu_custom_call.1
= control target key start
LH: loop header
LB: loop body
LE: loop exit
PB: predicated region body
PF: predicated region fallthrough
CT: control target
= control target key end

     0   :  { %9 = vsyncpa [#allocation3], 0  ;;  %s8967_s0 = inlined_call_operand.vmem [shape: bf16[2,290,16], index: 0, kind: input, shape index: {}]   ;;  %s8968_s1 = inlined_call_operand.vmem [shape: bf16[144,128], index: 1, kind: input, shape index: {}]   ;;  %s8969_s2 = inlined_call_operand.vmem [shape: f32[1,128], index: 2, kind: input, shape index: {}]   ;;  %s8970_s3 = inlined_call_operand.vmem [shape: f32[1,128], index: 3, kind: input, shape index: {}]   ;;  %s8971_s4 = inlined_call_operand.hbm [shape: bf16[2,256,128], index: 4, kind: output, shape index: {}]  }
   0x1   :  { %11 = vsyncpa [#allocation3 + $0x1], 0  ;;  %s7219_s15 = smov 0   ;;  %s7221_s16 = smov 0  }
   0x2   :  { %s7223_s17 = smov 0   ;;  %s7225_s18 = smov 0  }
   0x3   :  { %s7227_s19 = smov 0   ;;  %s7229_s20 = smov 0  }
   0x4 LB: > { %s5710_s21 = sadd.s32 4294967295, %s7185_s20   ;;  %s5711_s22 = sadd.s32 4294967294, %s7185_s20   ;;  %s7185_s20 = sphi %s7229_s20, %s17_s20   ;;  %s7181_s19 = sphi %s7227_s19, %s9250_s19   ;;  %s7177_s18 = sphi %s7225_s18, %s9249_s18   ;;  %s7173_s17 = sphi %s7223_s17, %s9248_s17   ;;  %s7169_s16 = sphi %s7221_s16, %s9247_s16   ;;  %s7165_s15 = sphi %s7219_s15, %s9246_s15  }
   0x5   : > { %s26_s23 = sadd.s32 1, %s7181_s19  ;;  %s142_s24 = sadd.s32 1, %s7173_s17 }
   0x6   : > { %p27_p0 = scmp.ge.s32.totalorder %s26_s23, 2  ;;  %p152_p1 = scmp.ne.s32.totalorder %s7173_s17, %s7169_s16 }
   0x7   : > { %p153_p2 = scmp.eq.s32.totalorder %s5710_s21, 1  ;;  %p158_p3 = scmp.ne.s32.totalorder %s7169_s16, %s7165_s15 }
   0x8   : > { %s9252_s23 = smov (%p27_p0, %s26_s23), 0  ;;  %p159_p5 = scmp.eq.s32.totalorder %s5711_s22, 1 }
   0x9   : > { %p7259_p4 = por %p153_p2, %p152_p1  ;;  %s137_s26 = ssub.s32 %s7181_s19, %s9252_s23 }
   0xa   : > { %p5717_p6 = scmp.ge.s32.totalorder %s7185_s20, 1  ;;  %p140_p7 = scmp.eq.s32.totalorder %s137_s26, 0 }
   0xb   : > { %p7266_p8 = por %p159_p5, %p158_p3  ;;  %p204_p9 = scmp.lt.s32.totalorder %s7185_s20, 3 }
   0xc   : > { %s7272_s28 = scalar_select %p140_p7, %s7173_s17, %s142_s24  }
   0xd   : > { %p205_p10 = pnand %p5717_p6, %p204_p9 }
   0xf   : > { %208 = sbr.rel (%p205_p10) target bundleno = 603 (0x25b), region = 36 }
  0x16   : > { %v7001_v0 = vld [vmem:[%s8968_s1 + $0x8] sm:$0xff]   ;;  %p240_p11 = scmp.lt.s32.totalorder %s7177_s18, 1  ;;  %v256_v1 = vlaneseq  ;;  %v7002_v2 = vld [vmem:[%s8968_s1 + $0x20] sm:$0xff]   ;;  %v7187_v4 = vmov 839922192   ;;  %vm1460_vm1 = vcmask 130048  }
  0x17   : > { %6375 = vmatprep.subr.bf16.mxu1 %v7001_v0  ;;  %6511 = vmatprep.subr.bf16.mxu0 %v7002_v2  ;;  %v946_v5 = vunpack.c.l.s4 %v7187_v4  ;;  %v7188_v7 = vmov 1985246804   ;;  %v7288_v9 = vld [vmem:[%s8968_s1] sm:$0xff]   ;;  %vm1321_vm0 = vsmask.f32 7424  ;;  %v7295_v13 = vld [vmem:[%s8968_s1 + $0x28] sm:$0xff]  }
  0x18   : > { %s241_s7 = scalar_select %p240_p11, %s7177_s18, 1  ;;  %v7282_v3 = vshrl.u32 %v256_v1, 7  ;;  %6376 = vmatpush3.bf16.msra.mxu1 %v7001_v0  ;;  %6512 = vmatpush3.bf16.msra.mxu0 %v7002_v2  ;;  %v953_v8 = vunpack.c.l.s4 %v7188_v7  ;;  %vm2206_vm2 = vcmask 1040384   ;;  %vm2207_vm3 = vcmask 1044484  }
  0x19   : > { %v947_v11 = vunpack.c.0.s8 %v946_v5  ;;  %6409 = vmatprep.subr.bf16.mxu1 %v7288_v9  ;;  %6545 = vmatprep.subr.bf16.mxu0 %v7295_v13  ;;  %v8974_v26 = vmov 0.0   ;;  %v8972_v32 = vmov 1.0   ;;  %vm7376_vm7 = vmor %vm2206_vm2, %vm2207_vm3  ;;  %vm2455_vm9 = vcmask 1046528   ;;  %s237_s22 = sand.u32 1, %s7169_s16   ;;  %s6126_s29 = sshll.u32 %s7177_s18, 11 }
  0x1a   : > { %s6939_s8 = smul.u32 148, %s241_s7  ;;  %v259_v6 = vadd.s32 16, %v7282_v3  ;;  %v258_v10 = vadd.s32 8, %v7282_v3  ;;  %v260_v12 = vadd.s32 24, %v7282_v3  ;;  %v954_v15 = vunpack.c.0.s8 %v953_v8  ;;  %s5718_s24 = sshll.u32 %s237_s22, 7 }
  0x1b   : > { %v7304_v17 = vadd.s32 40, %v7282_v3  ;;  %v7316_v22 = vsub.s32 %v947_v11, %v7282_v3  ;;  %s8833_s26 = scalar_lea.vmem [#allocation2], %s5718_s24  ;;  %s8913_s7 = scalar_lea.hbm %s8971_s4, %s6126_s29 }
  0x1c   : > { %s7300_s21 = scalar_lea.vmem %s8967_s0, %s6939_s8  ;;  %v307_v14 = vand.u32 15, %v259_v6  ;;  %v300_v16 = vand.u32 15, %v258_v10  ;;  %v314_v24 = vand.u32 15, %v260_v12  ;;  %v7323_v28 = vsub.s32 %v954_v15, %v7282_v3  ;;  %s5599_s30 = sshll.u32 %s8833_s26, 4  ;;  %s8915_s30 = int_to_ptr.vmem [resolvable:$true] %s5599_s30 }
  0x1d   : > { %v7307_v18 = vld [vmem:[%s7300_s21] sm:$0xf]  ;;  %v7310_v19 = vld [vmem:[%s7300_s21 + $0x4] sm:$0xf]  ;;  %v899_v20 = vld [vmem:[%s7300_s21 + $0x8] sm:$0xf] }
  0x1e   : > { %vm675_vm4 = vcmp.ne.s32.totalorder %v307_v14, 0  ;;  %v900_v21 = vld [vmem:[%s7300_s21 + $0xc] sm:$0xf]  ;;  %v5752_v23 = vcombine.low %v7307_v18, %v7310_v19  ;;  %v3129_v25 = vld [vmem:[%s7300_s21 + $0x8] sm:$0xf]  ;;  %vm786_vm5 = vcmp.ne.s32.totalorder %v300_v16, 15 }
  0x1f   : > { %v5721_v27 = vsel %vm675_vm4, 1.0, %v8974_v26  ;;  %v5753_v29 = vcombine.low %v899_v20, %v900_v21  ;;  %v7326_v30 = vld [vmem:[%s7300_s21 + $0xc] sm:$0xf]  ;;  %v7329_v31 = vld [vmem:[%s7300_s21 + $0x10] sm:$0xf]  ;;  %vm788_vm6 = vcmp.ne.s32.totalorder %v314_v24, 15 }
  0x20   : > { %v770_v33 = vpack.c.bf16 %v8972_v32, %v5721_v27  ;;  %v1323_v34 = vshrl.u32 %v5752_v23, 16  ;;  %v1325_v35 = vshll.u32 %v5752_v23, 16  ;;  %v7333_v36 = vld [vmem:[%s7300_s21 + $0x14] sm:$0xf]  ;;  %v5736_v39 = vsel %vm786_vm5, 1.0, %v8974_v26  ;;  %s8921_s18 = scalar_lea.sflag [#allocation3], %s237_s22 }
  0x21   : > { %v1330_v37 = vshll.u32 %v5753_v29, 16  ;;  %v1334_v38 = vshrl.u32 %v5753_v29, 16  ;;  %v5737_v40 = vsel %vm788_vm6, 1.0, %v8974_v26  ;;  %v7344_v44 = vpack.c.bf16 %v5736_v39, %v8972_v32  ;;  %v7357_v57 = vld [vmem:[%s7300_s21 + $0x10] sm:$0xf]  ;;  %s7107_s8 = scalar_lea.vmem %s8915_s30, 2048 }
  0x22   : > { %v7338_v41 = vrot.slane %v770_v33, %v7316_v22  ;;  %v7341_v42 = vrot.slane %v770_v33, %v7323_v28  ;;  %v1327_v43 = vrot.slane %v1325_v35, 1  ;;  %v882_v46 = vpack.c.bf16 %v5737_v40, %v8972_v32  ;;  %v7360_v58 = vld [vmem:[%s7300_s21 + $0x14] sm:$0xf]  ;;  %v7368_v63 = vld [vmem:[%s7300_s21 + $0x18] sm:$0xf]  ;;  %p7108_p12 = scmp.ne.s32.totalorder %s8915_s30, %s7107_s8  ;;  %s7191_s9 = smov [#allocation2]  }
  0x23   : > { %v1332_v45 = vrot.slane %v1330_v37, 1  ;;  %v5886_v47 = vcombine.low %v3129_v25, %v7326_v30  ;;  %v5887_v48 = vcombine.low %v7329_v31, %v7333_v36  ;;  %v1995_v52 = vrot.slane %v7344_v44, %v7323_v28  ;;  %v7371_v0 = vld [vmem:[%s7300_s21 + $0x1c] sm:$0xf]  ;;  %v7385_v12 = vld [vmem:[%s7300_s21 + $0x18] sm:$0xf]  ;;  %s7111_s10 = sshll.u32 %s7191_s9, 4  ;;  %s7112_s10 = int_to_ptr.vmem [resolvable:$false] %s7111_s10 }
  0x24   : > { %9077 = vst [vmem:[#allocation5_spill] sm:$0xff] %v7338_v41  ;;  %9078 = vst [vmem:[#allocation6_spill] sm:$0xff] %v7341_v42  ;;  %v1203_v49 = vmul.bf16 %v7338_v41, %v899_v20  ;;  %v1204_v50 = vmul.bf16 %v7341_v42, %v900_v21  ;;  %v1328_v51 = vor.u32 %v1327_v43, %v1323_v34  ;;  %v328_v11 = vand.u32 15, %v7304_v17  ;;  %v7390_v21 = vld [vmem:[%s7300_s21 + $0x1c] sm:$0xf]  ;;  %v7416_v43 = vld [vmem:[%s8968_s1 + $0x10] sm:$0xff]   ;;  %p7109_p13 = pnand %p7108_p12, %p7259_p4  ;;  %p7114_p1 = scmp.lt.s32.totalorder %s8915_s30, %s7112_s10 }
  0x25   : > { %v1336_v53 = vor.u32 %v1334_v38, %v1332_v45  ;;  %v2002_v54 = vrot.slane %v882_v46, %v7316_v22  ;;  %v2009_v55 = vrot.slane %v882_v46, %v7323_v28  ;;  %v3248_v56 = vshrl.u32 %v5886_v47, 16  ;;  %v7397_v27 = vld [vmem:[%s7300_s21 + $0x20] sm:$0xf]  ;;  %v7400_v17 = vld [vmem:[%s7300_s21 + $0x24] sm:$0xf]  ;;  %s7113_s11 = scalar_lea.vmem %s7112_s10, 4096 }
  0x26   : > { %v1333_v59 = vsel %vm1321_vm0, %v1328_v51, %v1332_v45  ;;  %v7363_v60 = vcombine.low %v1203_v49, %v1204_v50  ;;  %v7365_v61 = vrot.slane %v1995_v52, 7  ;;  %v3250_v62 = vshll.u32 %v5886_v47, 16  ;;  %v7424_v49 = vld [vmem:[%s7300_s21 + $0x20] sm:$0xf]  ;;  %v7427_v50 = vld [vmem:[%s7300_s21 + $0x24] sm:$0xf]  ;;  %p7110_p0 = pneg %p7109_p13  ;;  %p7115_p2 = scmp.lt.s32.totalorder %s7113_s11, %s7107_s8 }
  0x27   : > { %6377 = vmatprep.mubr.msk.bf16.mxu1 %vm1460_vm1, %v1333_v59  ;;  %v2214_v2 = vrot.slane %v2002_v54, 7  ;;  %v2217_v4 = vrot.slane %v2009_v55, 7  ;;  %v3255_v5 = vshll.u32 %v5887_v48, 16  ;;  %v3259_v6 = vshrl.u32 %v5887_v48, 16  ;;  %v7521_v34 = vld [vmem:[%s7300_s21 + $0x40] sm:$0xf] }
  0x28   : > { %v2213_v7 = vrot.slane %v7365_v61, 4  ;;  %v3252_v8 = vrot.slane %v3250_v62, 1  ;;  %v5754_v10 = vcombine.low %v7357_v57, %v7360_v58  ;;  %v5888_v20 = vcombine.low %v7368_v63, %v7371_v0  ;;  %p7116_p3 = por %p7115_p2, %p7114_p1 }
  0x29   : > { %v2216_v14 = vrot.slane %v2214_v2, 4  ;;  %v2219_v15 = vrot.slane %v2217_v4, 4  ;;  %v3257_v16 = vrot.slane %v3255_v5, 1  ;;  %vm790_vm8 = vcmp.ne.s32.totalorder %v328_v11, 15  ;;  %v7437_v5 = vld [vmem:[%s7300_s21 + $0x2c] sm:$0xf] }
  0x2a   : > { %v7394_v23 = vsel %vm7376_vm7, %v2213_v7, %v2214_v2  ;;  %v3253_v24 = vor.u32 %v3252_v8, %v3248_v56  ;;  %v1338_v25 = vshll.u32 %v5754_v10, 16  ;;  %v5738_v35 = vsel %vm790_vm8, 1.0, %v8974_v26  ;;  %v7433_v56 = vld [vmem:[%s7300_s21 + $0x28] sm:$0xf]  ;;  %p7117_p5 = pnand %p7116_p3, %p7110_p0 }
  0x2b   : > { %9081 = vst [vmem:[#allocation7_spill] sm:$0xff] %v7394_v23  ;;  %v7404_v29 = vsel %vm7376_vm7, %v2216_v14, %v2217_v4  ;;  %v3261_v33 = vor.u32 %v3259_v6, %v3257_v16  ;;  %v883_v40 = vpack.c.bf16 %v5738_v35, %v8972_v32  ;;  %v3263_v45 = vshll.u32 %v5888_v20, 16 }
  0x2c   : > { %9082 = vst [vmem:[#allocation8_spill] sm:$0xff] %v7404_v29  ;;  %v3258_v37 = vsel %vm1321_vm0, %v3253_v24, %v3257_v16  ;;  %v1340_v39 = vrot.slane %v1338_v25, 1  ;;  %v5755_v46 = vcombine.low %v7385_v12, %v7390_v21  ;;  %v1342_v47 = vshrl.u32 %v5754_v10, 16  ;;  %v7447_v10 = vld [vmem:[%s8968_s1 + $0x30] sm:$0xff]   ;;  %v7454_v24 = vld [vmem:[%s7300_s21 + $0x2c] sm:$0xf] }
  0x2d   : > { %6513 = vmatprep.mubr.msk.bf16.mxu0 %vm1460_vm1, %v3258_v37  ;;  %v5889_v48 = vcombine.low %v7397_v27, %v7400_v17  ;;  %v2016_v52 = vrot.slane %v883_v40, %v7316_v22  ;;  %v2023_v54 = vrot.slane %v883_v40, %v7323_v28  ;;  %v3267_v55 = vshrl.u32 %v5888_v20, 16  ;;  %9084 = vst [vmem:[#allocation10_spill] sm:$0xff] %v7454_v24  ;;  %v7468_v40 = vld [vmem:[%s7300_s21 + $0x34] sm:$0xf] }
  0x2e   : > { %v1341_v51 = vsel %vm1321_vm0, %v1336_v53, %v1340_v39  ;;  %v3265_v59 = vrot.slane %v3263_v45, 1  ;;  %v1344_v62 = vor.u32 %v1342_v47, %v1340_v39  ;;  %v1346_v2 = vshll.u32 %v5755_v46, 16  ;;  %v7465_v39 = vld [vmem:[%s7300_s21 + $0x30] sm:$0xf]  ;;  %v7512_v45 = vld [vmem:[%s7300_s21 + $0x40] sm:$0xf] }
  0x2f   : > { %6378 = vmatmul.mubr.msk.bf16.vlgmr.msra.gmra.mrb[0].mxu1 %vm1460_vm1, %v1341_v51  ;;  %v3271_v4 = vshll.u32 %v5889_v48, 16  ;;  %v2220_v53 = vrot.slane %v2016_v52, 7  ;;  %v7440_v6 = vrot.slane %v2023_v54, 7  ;;  %v5756_v7 = vcombine.low %v7424_v49, %v7427_v50  ;;  %v7476_v51 = vld [vmem:[%s7300_s21 + $0x30] sm:$0xf] }
  0x30   : > { %6410 = vmatpush3.bf16.msra.mxu1 %v7288_v9  ;;  %v1350_v8 = vshrl.u32 %v5755_v46, 16  ;;  %v3266_v11 = vsel %vm1321_vm0, %v3261_v33, %v3265_v59  ;;  %v1348_v14 = vrot.slane %v1346_v2, 1  ;;  %v3269_v16 = vor.u32 %v3267_v55, %v3265_v59  ;;  %v7451_v9 = vld [vmem:[%s7300_s21 + $0x28] sm:$0xf]  ;;  %9086 = vst [vmem:[#allocation12_spill] sm:$0xff] %v7476_v51 }
  0x31   : > { %v3273_v20 = vrot.slane %v3271_v4, 1  ;;  %9083 = vst [vmem:[#allocation9_spill] sm:$0xff] %v7451_v9  ;;  %6443 = vmatprep.subr.bf16.mxu1 %v7416_v43  ;;  %v7459_v25 = vsel %vm7376_vm7, %v2219_v15, %v2220_v53  ;;  %v2222_v35 = vrot.slane %v2220_v53, 4  ;;  %6514 = vmatmul.mubr.msk.bf16.vlgmr.msra.gmra.mrb[0].mxu0 %vm1460_vm1, %v3266_v11  ;;  %v1354_v37 = vshll.u32 %v5756_v7, 16  ;;  %v7486_v59 = vld [vmem:[%s7300_s21 + $0x34] sm:$0xf] }
  0x32   : > { %9085 = vst [vmem:[#allocation11_spill] sm:$0xff] %v7459_v25  ;;  %v5890_v33 = vcombine.low %v7433_v56, %v7437_v5  ;;  %6546 = vmatpush3.bf16.msra.mxu0 %v7295_v13  ;;  %v1349_v15 = vsel %vm1321_vm0, %v1344_v62, %v1348_v14  ;;  %v1352_v47 = vor.u32 %v1350_v8, %v1348_v14  ;;  %v3275_v54 = vshrl.u32 %v5889_v48, 16  ;;  %v7495_v8 = vld [vmem:[%s7300_s21 + $0x38] sm:$0xf]  ;;  %v7498_v11 = vld [vmem:[%s7300_s21 + $0x3c] sm:$0xf] }
  0x33   : > { %v3274_v46 = vsel %vm1321_vm0, %v3269_v16, %v3273_v20  ;;  %v7481_v52 = vsel %vm7376_vm7, %v2222_v35, %v7440_v6  ;;  %6381 = vmatprep.mubr.msk.bf16.mxu1 %vm1460_vm1, %v1349_v15  ;;  %v1356_v13 = vrot.slane %v1354_v37, 1  ;;  %9088 = vst [vmem:[#allocation14_spill] sm:$0xff] %v7486_v59  ;;  %v5757_v2 = vcombine.low %v7451_v9, %v7454_v24  ;;  %v7503_v37 = vld [vmem:[%s7300_s21 + $0x38] sm:$0xf]  ;;  %v7506_v15 = vld [vmem:[%s7300_s21 + $0x3c] sm:$0xf] }
  0x34   : > { %9087 = vst [vmem:[#allocation13_spill] sm:$0xff] %v7481_v52  ;;  %6517 = vmatprep.mubr.msk.bf16.mxu0 %vm1460_vm1, %v3274_v46  ;;  %v3279_v55 = vshll.u32 %v5890_v33, 16  ;;  %v1358_v4 = vshrl.u32 %v5756_v7, 16  ;;  %v5891_v53 = vcombine.low %v7465_v39, %v7468_v40  ;;  %6579 = vmatprep.subr.bf16.mxu0 %v7447_v10  ;;  %v3277_v14 = vor.u32 %v3275_v54, %v3273_v20 }
  0x35   : > { %v1357_v48 = vsel %vm1321_vm0, %v1352_v47, %v1356_v13  ;;  %v3283_v35 = vshrl.u32 %v5890_v33, 16  ;;  %9089 = vst [vmem:[#allocation15_spill] sm:$0xff] %v7503_v37  ;;  %9090 = vst [vmem:[#allocation16_spill] sm:$0xff] %v7506_v15  ;;  %v1362_v46 = vshll.u32 %v5757_v2, 16  ;;  %v5758_v26 = vcombine.low %v7476_v51, %v7486_v59  ;;  %v7515_v47 = vld [vmem:[%s7300_s21 + $0x44] sm:$0xf] }
  0x36   : > { %v3281_v16 = vrot.slane %v3279_v55, 1  ;;  %v1360_v7 = vor.u32 %v1358_v4, %v1356_v13  ;;  %v3287_v32 = vshll.u32 %v5891_v53, 16  ;;  %v1366_v54 = vshrl.u32 %v5757_v2, 16  ;;  %v7539_v59 = vld [vmem:[%s7300_s21 + $0x4c] sm:$0xf] }
  0x37   : > { %6382 = vmatmul.mubr.msk.bf16.gmra.mrb[4].mxu1 %vm1460_vm1, %v1357_v48  ;;  %v5892_v55 = vcombine.low %v7495_v8, %v7498_v11  ;;  %v1364_v48 = vrot.slane %v1362_v46, 1  ;;  %v1370_v4 = vshll.u32 %v5758_v26, 16  ;;  %v3291_v62 = vshrl.u32 %v5891_v53, 16 }
  0x38   : > { %v3282_v20 = vsel %vm1321_vm0, %v3277_v14, %v3281_v16  ;;  %v3285_v33 = vor.u32 %v3283_v35, %v3281_v16  ;;  %v3289_v13 = vrot.slane %v3287_v32, 1  ;;  %v5759_v42 = vcombine.low %v7503_v37, %v7506_v15  ;;  %v7529_v14 = vld [vmem:[%s7300_s21 + $0x44] sm:$0xf]  ;;  %v7532_v16 = vld [vmem:[%s7300_s21 + $0x48] sm:$0xf] }
  0x39   : > { %6518 = vmatmul.mubr.msk.bf16.gmra.mrb[4].mxu0 %vm1460_vm1, %v3282_v20  ;;  %v3295_v38 = vshll.u32 %v5892_v55, 16  ;;  %v1374_v41 = vshrl.u32 %v5758_v26, 16  ;;  %v5893_v2 = vcombine.low %v7512_v45, %v7515_v47  ;;  %v1365_v32 = vsel %vm1321_vm0, %v1360_v7, %v1364_v48 }
  0x3a   : > { %v3290_v53 = vsel %vm1321_vm0, %v3285_v33, %v3289_v13  ;;  %v1368_v35 = vor.u32 %v1366_v54, %v1364_v48  ;;  %v1372_v46 = vrot.slane %v1370_v4, 1  ;;  %6385 = vmatprep.mubr.msk.bf16.mxu1 %vm1460_vm1, %v1365_v32  ;;  %v3293_v26 = vor.u32 %v3291_v62, %v3289_v13  ;;  %v7545_v33 = vld [vmem:[%s7300_s21 + $0x48] sm:$0xf]  ;;  %v7548_v54 = vld [vmem:[%s7300_s21 + $0x4c] sm:$0xf] }
  0x3b   : > { %6521 = vmatprep.mubr.msk.bf16.mxu0 %vm1460_vm1, %v3290_v53  ;;  %v3297_v20 = vrot.slane %v3295_v38, 1  ;;  %v1378_v15 = vshll.u32 %v5759_v42, 16  ;;  %v3299_v37 = vshrl.u32 %v5892_v55, 16  ;;  %v3303_v9 = vshll.u32 %v5893_v2, 16 }
  0x3c   : > { %v1373_v51 = vsel %vm1321_vm0, %v1368_v35, %v1372_v46  ;;  %v1376_v24 = vor.u32 %v1374_v41, %v1372_v46  ;;  %v5760_v7 = vcombine.low %v7521_v34, %v7529_v14  ;;  %v1382_v55 = vshrl.u32 %v5759_v42, 16  ;;  %v7563_v42 = vld [vmem:[%s7300_s21 + $0x54] sm:$0xf] }
  0x3d   : > { %v3298_v62 = vsel %vm1321_vm0, %v3293_v26, %v3297_v20  ;;  %v1380_v38 = vrot.slane %v1378_v15, 1  ;;  %v3301_v48 = vor.u32 %v3299_v37, %v3297_v20  ;;  %v3305_v13 = vrot.slane %v3303_v9, 1  ;;  %v7560_v37 = vld [vmem:[%s7300_s21 + $0x50] sm:$0xf] }
  0x3e   : > { %v1386_v4 = vshll.u32 %v5760_v7, 16  ;;  %v7554_v41 = vcombine.low %v7532_v16, %v7539_v59  ;;  %v3307_v32 = vshrl.u32 %v5893_v2, 16  ;;  %v5761_v46 = vcombine.low %v7545_v33, %v7548_v54 }
  0x3f   : > { %6386 = vmatmul.mubr.msk.bf16.gmra.mrb[8].mxu1 %vm1460_vm1, %v1373_v51  ;;  %v1381_v53 = vsel %vm1321_vm0, %v1376_v24, %v1380_v38  ;;  %v1384_v35 = vor.u32 %v1382_v55, %v1380_v38  ;;  %v1390_v15 = vshrl.u32 %v5760_v7, 16  ;;  %v3306_v9 = vsel %vm1321_vm0, %v3301_v48, %v3305_v13  ;;  %v7580_v48 = vld [vmem:[%s7300_s21 + $0x58] sm:$0xf] }
  0x40   : > { %9091 = vst [vmem:[#allocation17_spill] sm:$0xff] %v7554_v41  ;;  %6389 = vmatprep.mubr.msk.bf16.mxu1 %vm1460_vm1, %v1381_v53  ;;  %v1388_v51 = vrot.slane %v1386_v4, 1  ;;  %v3309_v2 = vor.u32 %v3307_v32, %v3305_v13  ;;  %v3311_v24 = vshll.u32 %v7554_v41, 16  ;;  %v1394_v26 = vshll.u32 %v5761_v46, 16  ;;  %v7583_v13 = vld [vmem:[%s7300_s21 + $0x5c] sm:$0xf] }
  0x41   : > { %6522 = vmatmul.mubr.msk.bf16.gmra.mrb[8].mxu0 %vm1460_vm1, %v3298_v62  ;;  %v1988_v20 = vrot.slane %v7344_v44, %v7316_v22  ;;  %v9092_v7 = vmul.bf16 %v7333_v36, %v7404_v29  ;;  %v9093_v38 = vmul.bf16 %v7329_v31, %v7394_v23  ;;  %9094 = vst [vmem:[#allocation18_spill] sm:$0xff] %v7583_v13  ;;  %v3626_v32 = vld [vmem:[%s7300_s21 + $0x8] sm:$0xe] }
  0x42   : > { %6525 = vmatprep.mubr.msk.bf16.mxu0 %vm1460_vm1, %v3306_v9  ;;  %v1389_v62 = vsel %vm1321_vm0, %v1384_v35, %v1388_v51  ;;  %v7587_v44 = vrot.slane %v3311_v24, 1  ;;  %v1392_v4 = vor.u32 %v1390_v15, %v1388_v51  ;;  %v5762_v36 = vcombine.low %v7560_v37, %v7563_v42  ;;  %v7608_v24 = vld [vmem:[%s7300_s21 + $0x60] sm:$0xf] }
  0x43   : > { %v7577_v55 = vcombine.low %v9093_v38, %v9092_v7  ;;  %v1396_v31 = vrot.slane %v1394_v26, 1  ;;  %v7592_v53 = vrot.slane %v1988_v20, 7  ;;  %v1398_v38 = vshrl.u32 %v5761_v46, 16  ;;  %9099 = vst [vmem:[#allocation21_spill] sm:$0xff] %v7608_v24  ;;  %v7611_v26 = vld [vmem:[%s7300_s21 + $0x64] sm:$0xf] }
  0x44   : > { %9095 = vst [vmem:[#allocation19_spill] sm:$0xff] %v7587_v44  ;;  %v3314_v41 = vsel %vm1321_vm0, %v3309_v2, %v7587_v44  ;;  %v1402_v29 = vshll.u32 %v5762_v36, 16  ;;  %v9097_v35 = vmul.bf16 %v7371_v0, %v7481_v52  ;;  %v9098_v15 = vmul.bf16 %v7368_v63, %v7459_v25  ;;  %9100 = vst [vmem:[#allocation22_spill] sm:$0xff] %v7611_v26 }
  0x45   : > { %9096 = vst [vmem:[#allocation20_spill] sm:$0xff] %v7592_v53  ;;  %v3746_v7 = vrot.slane %v7577_v55, 1  ;;  %v5763_v51 = vcombine.low %v7580_v48, %v7583_v13  ;;  %v1397_v46 = vsel %vm1321_vm0, %v1392_v4, %v1396_v31  ;;  %v2210_v2 = vrot.slane %v7592_v53, 4  ;;  %v7640_v13 = vld [vmem:[%s7300_s21 + $0x70] sm:$0xf] }
  0x46   : > { %v7603_v9 = vcombine.low %v9098_v15, %v9097_v35  ;;  %v3627_v0 = vmul.bf16 %v3626_v32, %v7592_v53  ;;  %v1400_v20 = vor.u32 %v1398_v38, %v1396_v31  ;;  %v1404_v63 = vrot.slane %v1402_v29, 1  ;;  %v924_v29 = vld [vmem:[%s7300_s21 + $0x6c] sm:$0xf] }
  0x47   : > { %6390 = vmatmul.mubr.msk.bf16.gmra.mrb[12].mxu1 %vm1460_vm1, %v1389_v62  ;;  %v1406_v35 = vshrl.u32 %v5762_v36, 16  ;;  %v1410_v15 = vshll.u32 %v5763_v51, 16  ;;  %v7622_v44 = vsel %vm7376_vm7, %v2210_v2, %v7365_v61  ;;  %v264_v4 = vadd.s32 56, %v7282_v3  ;;  %v923_v62 = vld [vmem:[%s7300_s21 + $0x68] sm:$0xf] }
  0x48   : > { %v9003_v55 = vrot.slane %v7603_v9, 1  ;;  %6393 = vmatprep.mubr.msk.bf16.mxu1 %vm1460_vm1, %v1397_v46  ;;  %9101 = vst [vmem:[#allocation23_spill] sm:$0xff] %v7622_v44  ;;  %v2225_v52 = vrot.slane %v7440_v6, 4  ;;  %v5764_v32 = vcombine.low %v7608_v24, %v7611_v26  ;;  %v3628_v36 = vmul.bf16 %v7326_v30, %v7622_v44 }
  0x49   : > { %v1405_v31 = vsel %vm1321_vm0, %v1400_v20, %v1404_v63  ;;  %v1408_v38 = vor.u32 %v1406_v35, %v1404_v63  ;;  %6526 = vmatmul.mubr.msk.bf16.gmra.mrb[12].mxu0 %vm1460_vm1, %v3314_v41  ;;  %v1412_v6 = vrot.slane %v1410_v15, 1  ;;  %v342_v46 = vand.u32 15, %v264_v4 }
  0x4a   : > { %v3749_v61 = vsel %vm2455_vm9, %v3746_v7, %v9003_v55  ;;  %v1414_v2 = vshrl.u32 %v5763_v51, 16  ;;  %v1418_v25 = vshll.u32 %v5764_v32, 16  ;;  %v5920_v23 = vcombine.low %v3627_v0, %v3628_v36  ;;  %v7643_v55 = vld [vmem:[%s7300_s21 + $0x74] sm:$0xf] }
  0x4b   : > { %v266_v53 = vadd.s32 72, %v7282_v3  ;;  %v5765_v26 = vcombine.low %v923_v62, %v924_v29  ;;  %v1422_v30 = vshrl.u32 %v5764_v32, 16  ;;  %v1413_v20 = vsel %vm1321_vm0, %v1408_v38, %v1412_v6 }
  0x4c   : > { %vm792_vm10 = vcmp.ne.s32.totalorder %v342_v46, 15  ;;  %v1416_v44 = vor.u32 %v1414_v2, %v1412_v6  ;;  %v1420_v24 = vrot.slane %v1418_v25, 1  ;;  %v3745_v63 = vrot.slane %v5920_v23, 1 }
  0x4d   : > { %v9102_v41 = vmov 0.0   ;;  %v356_v15 = vand.u32 15, %v266_v53  ;;  %v1426_v51 = vshll.u32 %v5765_v26, 16  ;;  %v9103_v4 = vmov 1.0  }
  0x4e   : > { %v5739_v35 = vsel %vm792_vm10, 1.0, %v9102_v41  ;;  %v1421_v36 = vsel %vm1321_vm0, %v1416_v44, %v1420_v24  ;;  %v1424_v62 = vor.u32 %v1422_v30, %v1420_v24  ;;  %v268_v32 = vadd.s32 88, %v7282_v3 }
  0x4f   : > { %v884_v0 = vpack.c.bf16 %v5739_v35, %v9103_v4  ;;  %v3747_v29 = vsel %vm2455_vm9, %v3745_v63, %v3746_v7  ;;  %6394 = vmatmul.mubr.msk.bf16.gmra.mrb[16].mxu1 %vm1460_vm1, %v1405_v31  ;;  %vm794_vm11 = vcmp.ne.s32.totalorder %v356_v15, 15  ;;  %v1428_v25 = vrot.slane %v1426_v51, 1  ;;  %v7663_v7 = vld [vmem:[%s8968_s1 + $0x38] sm:$0xff]  }
  0x50   : > { %v7653_v23 = vcombine.low %v7640_v13, %v7643_v55  ;;  %6547 = vmatprep.mubr.msk.bf16.mxu0 %vm1460_vm1, %v3747_v29  ;;  %6397 = vmatprep.mubr.msk.bf16.mxu1 %vm1460_vm1, %v1413_v20  ;;  %v5740_v24 = vsel %vm794_vm11, 1.0, %v9102_v41  ;;  %v370_v38 = vand.u32 15, %v268_v32  ;;  %v1430_v46 = vshrl.u32 %v5765_v26, 16  ;;  %v7680_v29 = vld [vmem:[%s7300_s21 + $0x78] sm:$0xf] }
  0x51   : > { %v2030_v53 = vrot.slane %v884_v0, %v7316_v22  ;;  %v2037_v44 = vrot.slane %v884_v0, %v7323_v28  ;;  %v885_v31 = vpack.c.bf16 %v5740_v24, %v9103_v4  ;;  %v1429_v6 = vsel %vm1321_vm0, %v1424_v62, %v1428_v25  ;;  %6548 = vmatmul.mubr.msk.bf16.vlgmr.msra.gmra.mrb[0].mxu0 %vm1460_vm1, %v3749_v61 }
  0x52   : > { %v1434_v2 = vshll.u32 %v7653_v23, 16  ;;  %vm796_vm12 = vcmp.ne.s32.totalorder %v370_v38, 15  ;;  %v270_v63 = vadd.s32 104, %v7282_v3  ;;  %6580 = vmatpush3.bf16.msra.mxu0 %v7447_v10  ;;  %v1432_v26 = vor.u32 %v1430_v46, %v1428_v25  ;;  %v7692_v46 = vld [vmem:[%s7300_s21 + $0x7c] sm:$0xf] }
  0x53   : > { %v2226_v30 = vrot.slane %v2030_v53, 7  ;;  %v2229_v20 = vrot.slane %v2037_v44, 7  ;;  %v2044_v35 = vrot.slane %v885_v31, %v7316_v22  ;;  %v2051_v15 = vrot.slane %v885_v31, %v7323_v28  ;;  %6613 = vmatprep.subr.bf16.mxu0 %v7663_v7 }
  0x54   : > { %v5741_v51 = vsel %vm796_vm12, 1.0, %v9102_v41  ;;  %v1436_v24 = vrot.slane %v1434_v2, 1  ;;  %v384_v31 = vand.u32 15, %v270_v63 }
  0x55   : > { %v7676_v0 = vsel %vm7376_vm7, %v2225_v52, %v2226_v30  ;;  %v2228_v61 = vrot.slane %v2226_v30, 4  ;;  %v2231_v62 = vrot.slane %v2229_v20, 4  ;;  %v886_v32 = vpack.c.bf16 %v5741_v51, %v9103_v4 }
  0x56   : > { %v3633_v10 = vmul.bf16 %v7397_v27, %v7676_v0  ;;  %v2232_v53 = vrot.slane %v2044_v35, 7  ;;  %v2235_v44 = vrot.slane %v2051_v15, 7  ;;  %v1437_v51 = vsel %vm1321_vm0, %v1432_v26, %v1436_v24 }
  0x57   : > { %v7687_v25 = vsel %vm7376_vm7, %v2228_v61, %v2229_v20  ;;  %v2058_v52 = vrot.slane %v886_v32, %v7316_v22  ;;  %v2065_v38 = vrot.slane %v886_v32, %v7323_v28  ;;  %6398 = vmatmul.mubr.msk.bf16.gmra.mrb[20].mxu1 %vm1460_vm1, %v1421_v36  ;;  %vm798_vm13 = vcmp.ne.s32.totalorder %v384_v31, 15 }
  0x58   : > { %v3634_v30 = vmul.bf16 %v7400_v17, %v7687_v25  ;;  %v7699_v27 = vsel %vm7376_vm7, %v2231_v62, %v2232_v53  ;;  %v2234_v2 = vrot.slane %v2232_v53, 4  ;;  %v2237_v35 = vrot.slane %v2235_v44, 4  ;;  %6401 = vmatprep.mubr.msk.bf16.mxu1 %vm1460_vm1, %v1429_v6 }
  0x59   : > { %v3635_v20 = vmul.bf16 %v7433_v56, %v7699_v27  ;;  %v2238_v15 = vrot.slane %v2058_v52, 7  ;;  %v2241_v63 = vrot.slane %v2065_v38, 7  ;;  %v5767_v36 = vcombine.low %v7680_v29, %v7692_v46 }
  0x5a   : > { %v5923_v61 = vcombine.low %v3633_v10, %v3634_v30  ;;  %v7707_v17 = vsel %vm7376_vm7, %v2234_v2, %v2235_v44  ;;  %v5742_v26 = vsel %vm798_vm13, 1.0, %v9102_v41  ;;  %v1235_v30 = vld [vmem:[%s7300_s21 + $0x80] sm:$0x1]  ;;  %v9107_v2 = vrot.slane %v7603_v9, 1 }
  0x5b   : > { %9104 = vst [vmem:[#allocation24_spill] sm:$0xff] %v7707_v17  ;;  %v3636_v62 = vmul.bf16 %v7437_v5, %v7707_v17  ;;  %v7715_v56 = vsel %vm7376_vm7, %v2237_v35, %v2238_v15  ;;  %v2240_v6 = vrot.slane %v2238_v15, 4  ;;  %v887_v53 = vpack.c.bf16 %v5742_v26, %v9103_v4 }
  0x5c   : > { %9105 = vst [vmem:[#allocation25_spill] sm:$0xff] %v7715_v56  ;;  %v3750_v32 = vrot.slane %v5923_v61, 1  ;;  %v3637_v10 = vmul.bf16 %v7465_v39, %v7715_v56  ;;  %v2243_v44 = vrot.slane %v2241_v63, 4  ;;  %v1438_v5 = vshrl.u32 %v7653_v23, 16 }
  0x5d   : > { %v5924_v52 = vcombine.low %v3635_v20, %v3636_v62  ;;  %v7723_v38 = vsel %vm7376_vm7, %v2240_v6, %v2241_v63  ;;  %v1442_v31 = vshll.u32 %v5767_v36, 16  ;;  %v2072_v39 = vrot.slane %v887_v53, %v7316_v22 }
  0x5e   : > { %9106 = vst [vmem:[#allocation26_spill] sm:$0xff] %v7723_v38  ;;  %v3751_v35 = vsel %vm2455_vm9, %v9107_v2, %v3750_v32  ;;  %v3638_v15 = vmul.bf16 %v7468_v40, %v7723_v38  ;;  %v2079_v61 = vrot.slane %v887_v53, %v7323_v28  ;;  %v1440_v63 = vor.u32 %v1438_v5, %v1436_v24 }
  0x5f   : > { %6551 = vmatprep.mubr.msk.bf16.mxu0 %vm1460_vm1, %v3751_v35  ;;  %v3752_v20 = vrot.slane %v5924_v52, 1  ;;  %v1444_v62 = vrot.slane %v1442_v31, 1  ;;  %v272_v23 = vadd.s32 120, %v7282_v3  ;;  %6402 = vmatmul.mubr.msk.bf16.gmra.mrb[24].mxu1 %vm1460_vm1, %v1437_v51  ;;  %v2244_v9 = vrot.slane %v2072_v39, 7  ;;  %v7760_v35 = vld [vmem:[%s7300_s21 + $0x58] sm:$0xf] }
  0x60   : > { %v5925_v6 = vcombine.low %v3637_v10, %v3638_v15  ;;  %v2247_v26 = vrot.slane %v2079_v61, 7  ;;  %v5768_v2 = vcombine.low %v1235_v30, %v1235_v30  ;;  %v1446_v17 = vshrl.u32 %v5767_v36, 16  ;;  %v7763_v15 = vld [vmem:[%s7300_s21 + $0x5c] sm:$0xf] }
  0x61   : > { %v3753_v56 = vsel %vm2455_vm9, %v3750_v32, %v3752_v20  ;;  %v1445_v40 = vsel %vm1321_vm0, %v1440_v63, %v1444_v62  ;;  %v398_v38 = vand.u32 15, %v272_v23  ;;  %v7742_v24 = vsel %vm7376_vm7, %v2243_v44, %v2244_v9 }
  0x62   : > { %6552 = vmatmul.mubr.msk.bf16.gmra.mrb[4].mxu0 %vm1460_vm1, %v3753_v56  ;;  %v3754_v53 = vrot.slane %v5925_v6, 1  ;;  %v2246_v52 = vrot.slane %v2244_v9, 4  ;;  %6405 = vmatprep.mubr.msk.bf16.mxu1 %vm1460_vm1, %v1445_v40  ;;  %v2249_v51 = vrot.slane %v2247_v26, 4  ;;  %v3639_v32 = vmul.bf16 %v7495_v8, %v7742_v24 }
  0x63   : > { %vm800_vm14 = vcmp.ne.s32.totalorder %v398_v38, 15  ;;  %v1448_v10 = vor.u32 %v1446_v17, %v1444_v62  ;;  %v1450_v5 = vshll.u32 %v5768_v2, 16  ;;  %v274_v31 = vadd.s32 136, %v7282_v3 }
  0x64   : > { %v3755_v36 = vsel %vm2455_vm9, %v3752_v20, %v3754_v53  ;;  %v7750_v56 = vsel %vm7376_vm7, %v2246_v52, %v2247_v26  ;;  %v5743_v44 = vsel %vm800_vm14, 1.0, %v9102_v41  ;;  %v293_v17 = vand.u32 15, %v7282_v3 }
  0x65   : > { %6555 = vmatprep.mubr.msk.bf16.mxu0 %vm1460_vm1, %v3755_v36  ;;  %v3640_v30 = vmul.bf16 %v7498_v11, %v7750_v56  ;;  %v888_v8 = vpack.c.bf16 %v5743_v44, %v9103_v4  ;;  %v1452_v38 = vrot.slane %v1450_v5, 1  ;;  %v412_v39 = vand.u32 15, %v274_v31 }
  0x66   : > { %v276_v61 = vadd.s32 152, %v7282_v3  ;;  %v278_v20 = vadd.s32 168, %v7282_v3  ;;  %v7769_v63 = vcombine.low %v7760_v35, %v7763_v15  ;;  %vm673_vm2 = vcmp.ne.s32.totalorder %v293_v17, 0 }
  0x67   : > { %v5926_v62 = vcombine.low %v3639_v32, %v3640_v30  ;;  %v2086_v11 = vrot.slane %v888_v8, %v7316_v22  ;;  %v2093_v23 = vrot.slane %v888_v8, %v7323_v28  ;;  %v1453_v6 = vsel %vm1321_vm0, %v1448_v10, %v1452_v38 }
  0x68   : > { %9108 = vst [vmem:[#allocation27_spill] sm:$0xff] %v7769_v63  ;;  %6406 = vmatmul.mubr.msk.bf16.gmra.mrb[28].mxu1 %vm1460_vm1, %v1453_v6  ;;  %vm802_vm15 = vcmp.ne.s32.totalorder %v412_v39, 15  ;;  %v426_v9 = vand.u32 15, %v276_v61  ;;  %v440_v26 = vand.u32 15, %v278_v20  ;;  %v5720_v32 = vsel %vm673_vm2, 1.0, %v9102_v41 }
  0x69   : > { %v3756_v2 = vrot.slane %v5926_v62, 1  ;;  %v2250_v40 = vrot.slane %v2086_v11, 7  ;;  %v2253_v52 = vrot.slane %v2093_v23, 7  ;;  %v5744_v5 = vsel %vm802_vm15, 1.0, %v9102_v41  ;;  %v3154_v63 = vld [vmem:[%s7300_s21 + $0x6c] sm:$0xf] }
  0x6a   : > { %v889_v36 = vpack.c.bf16 %v5744_v5, %v9103_v4  ;;  %vm804_vm3 = vcmp.ne.s32.totalorder %v426_v9, 15  ;;  %vm806_vm4 = vcmp.ne.s32.totalorder %v440_v26, 15  ;;  %v769_v39 = vpack.c.bf16 %v9103_v4, %v5720_v32 }
  0x6b   : > { %v3757_v44 = vsel %vm2455_vm9, %v3754_v53, %v3756_v2  ;;  %v7781_v10 = vsel %vm7376_vm7, %v2249_v51, %v2250_v40  ;;  %v2252_v31 = vrot.slane %v2250_v40, 4  ;;  %v2255_v30 = vrot.slane %v2253_v52, 4 }
  0x6c   : > { %6556 = vmatmul.mubr.msk.bf16.gmra.mrb[8].mxu0 %vm1460_vm1, %v3757_v44  ;;  %v3641_v8 = vmul.bf16 %v7512_v45, %v7781_v10  ;;  %v2100_v38 = vrot.slane %v889_v36, %v7316_v22  ;;  %v2107_v17 = vrot.slane %v889_v36, %v7323_v28  ;;  %v5745_v51 = vsel %vm804_vm3, 1.0, %v9102_v41 }
  0x6d   : > { %v7791_v53 = vsel %vm7376_vm7, %v2252_v31, %v2253_v52  ;;  %v5746_v61 = vsel %vm806_vm4, 1.0, %v9102_v41  ;;  %v261_v20 = vadd.s32 32, %v7282_v3  ;;  %v7799_v23 = vrot.slane %v769_v39, %v7316_v22 }
  0x6e   : > { %v3642_v62 = vmul.bf16 %v7515_v47, %v7791_v53  ;;  %v2256_v45 = vrot.slane %v2100_v38, 7  ;;  %v2259_v11 = vrot.slane %v2107_v17, 7  ;;  %v7802_v6 = vrot.slane %v769_v39, %v7323_v28 }
  0x6f   : > { %9109 = vst [vmem:[#allocation28_spill] sm:$0xff] %v7799_v23  ;;  %v890_v9 = vpack.c.bf16 %v5745_v51, %v9103_v4  ;;  %v891_v26 = vpack.c.bf16 %v5746_v61, %v9103_v4  ;;  %v321_v40 = vand.u32 15, %v261_v20  ;;  %v1201_v36 = vmul.bf16 %v7799_v23, %v7307_v18 }
  0x70   : > { %9110 = vst [vmem:[#allocation29_spill] sm:$0xff] %v7802_v6  ;;  %v5927_v52 = vcombine.low %v3641_v8, %v3642_v62  ;;  %v7808_v5 = vsel %vm7376_vm7, %v2255_v30, %v2256_v45  ;;  %v2258_v47 = vrot.slane %v2256_v45, 4  ;;  %v1202_v44 = vmul.bf16 %v7802_v6, %v7310_v19  ;;  %v3147_v19 = vld [vmem:[%s7300_s21 + $0x50] sm:$0xf] }
  0x71   : > { %9111 = vst [vmem:[#allocation30_spill] sm:$0xff] %v7808_v5  ;;  %v3643_v32 = vmul.bf16 %v7532_v16, %v7808_v5  ;;  %v2114_v31 = vrot.slane %v890_v9, %v7316_v22  ;;  %v2121_v38 = vrot.slane %v890_v9, %v7323_v28  ;;  %v2261_v30 = vrot.slane %v2259_v11, 4 }
  0x72   : > { %v3758_v8 = vrot.slane %v5927_v52, 1  ;;  %v7820_v17 = vsel %vm7376_vm7, %v2258_v47, %v2259_v11  ;;  %v2128_v39 = vrot.slane %v891_v26, %v7316_v22  ;;  %v5786_v16 = vcombine.low %v1201_v36, %v1202_v44  ;;  %v7831_v11 = vld [vmem:[%s8968_s1 + $0x18] sm:$0xff]  }
  0x73   : > { %9112 = vst [vmem:[#allocation31_spill] sm:$0xff] %v7820_v17  ;;  %v3644_v18 = vmul.bf16 %v7539_v59, %v7820_v17  ;;  %v2262_v51 = vrot.slane %v2114_v31, 7  ;;  %v2265_v61 = vrot.slane %v2121_v38, 7  ;;  %v2135_v62 = vrot.slane %v891_v26, %v7323_v28 }
  0x74   : > { %v3759_v20 = vsel %vm2455_vm9, %v3756_v2, %v3758_v8  ;;  %v2268_v45 = vrot.slane %v2128_v39, 7  ;;  %vm677_vm5 = vcmp.ne.s32.totalorder %v321_v40, 0  ;;  %6411 = vmatprep.mubr.msk.bf16.mxu1 %vm1460_vm1, %v5786_v16  ;;  %v3148_v2 = vld [vmem:[%s7300_s21 + $0x54] sm:$0xf]  ;;  %v280_v16 = vadd.s32 184, %v7282_v3 }
  0x75   : > { %6559 = vmatprep.mubr.msk.bf16.mxu0 %vm1460_vm1, %v3759_v20  ;;  %v5928_v9 = vcombine.low %v3643_v32, %v3644_v18  ;;  %v7837_v59 = vsel %vm7376_vm7, %v2261_v30, %v2262_v51  ;;  %v2264_v52 = vrot.slane %v2262_v51, 4  ;;  %v2267_v47 = vrot.slane %v2265_v61, 4  ;;  %6412 = vmatmul.mubr.msk.bf16.vlgmr.msra.gmra.mrb[0].mxu1 %vm1460_vm1, %v7363_v60 }
  0x76   : > { %9113 = vst [vmem:[#allocation32_spill] sm:$0xff] %v7837_v59  ;;  %v3645_v26 = vmul.bf16 %v3147_v19, %v7837_v59  ;;  %v2270_v40 = vrot.slane %v2268_v45, 4  ;;  %v7843_v36 = vrot.slane %v2135_v62, 7  ;;  %v5722_v44 = vsel %vm677_vm5, 1.0, %v9102_v41  ;;  %6444 = vmatpush3.bf16.msra.mxu1 %v7416_v43 }
  0x77   : > { %v3760_v32 = vrot.slane %v5928_v9, 1  ;;  %v7848_v31 = vsel %vm7376_vm7, %v2264_v52, %v2265_v61  ;;  %v7853_v38 = vsel %vm7376_vm7, %v2267_v47, %v2268_v45  ;;  %v771_v30 = vpack.c.bf16 %v9103_v4, %v5722_v44  ;;  %6477 = vmatprep.subr.bf16.mxu1 %v7831_v11 }
  0x78   : > { %9114 = vst [vmem:[#allocation33_spill] sm:$0xff] %v7848_v31  ;;  %9115 = vst [vmem:[#allocation34_spill] sm:$0xff] %v7853_v38  ;;  %v3646_v60 = vmul.bf16 %v3148_v2, %v7848_v31  ;;  %v7860_v39 = vsel %vm7376_vm7, %v2270_v40, %v7843_v36  ;;  %v3647_v18 = vmul.bf16 %v7760_v35, %v7853_v38  ;;  %v454_v62 = vand.u32 15, %v280_v16 }
  0x79   : > { %9116 = vst [vmem:[#allocation35_spill] sm:$0xff] %v7860_v39  ;;  %v3761_v43 = vsel %vm2455_vm9, %v3758_v8, %v3760_v32  ;;  %v3648_v51 = vmul.bf16 %v7763_v15, %v7860_v39  ;;  %v7870_v61 = vrot.slane %v771_v30, %v7316_v22  ;;  %v7873_v19 = vrot.slane %v771_v30, %v7323_v28 }
  0x7a   : > { %6560 = vmatmul.mubr.msk.bf16.gmra.mrb[12].mxu0 %vm1460_vm1, %v3761_v43  ;;  %v5929_v20 = vcombine.low %v3645_v26, %v3646_v60  ;;  %v2273_v35 = vrot.slane %v7843_v36, 4  ;;  %v263_v45 = vadd.s32 48, %v7282_v3  ;;  %v282_v52 = vadd.s32 200, %v7282_v3 }
  0x7b   : > { %9117 = vst [vmem:[#allocation36_spill] sm:$0xff] %v7870_v61  ;;  %9118 = vst [vmem:[#allocation37_spill] sm:$0xff] %v7873_v19  ;;  %v7878_v9 = vcombine.low %v3647_v18, %v3648_v51  ;;  %v1205_v8 = vmul.bf16 %v7870_v61, %v7357_v57  ;;  %v1206_v15 = vmul.bf16 %v7873_v19, %v7360_v58  ;;  %vm808_vm6 = vcmp.ne.s32.totalorder %v454_v62, 15 }
  0x7c   : > { %v3762_v2 = vrot.slane %v5929_v20, 1  ;;  %v335_v47 = vand.u32 15, %v263_v45  ;;  %v265_v26 = vadd.s32 64, %v7282_v3  ;;  %v5747_v44 = vsel %vm808_vm6, 1.0, %v9102_v41 }
  0x7d   : > { %v9010_v40 = vrot.slane %v7878_v9, 1  ;;  %v5788_v36 = vcombine.low %v1205_v8, %v1206_v15  ;;  %v468_v30 = vand.u32 15, %v282_v52  ;;  %v892_v57 = vpack.c.bf16 %v5747_v44, %v9103_v4 }
  0x7e   : > { %v3763_v60 = vsel %vm2455_vm9, %v3760_v32, %v3762_v2  ;;  %vm679_vm8 = vcmp.ne.s32.totalorder %v335_v47, 0  ;;  %v349_v18 = vand.u32 15, %v265_v26  ;;  %v284_v43 = vadd.s32 216, %v7282_v3  ;;  %v3151_v47 = vld [vmem:[%s7300_s21 + $0x60] sm:$0xf] }
  0x7f   : > { %6563 = vmatprep.mubr.msk.bf16.mxu0 %vm1460_vm1, %v3763_v60  ;;  %v3765_v58 = vsel %vm2455_vm9, %v3762_v2, %v9010_v40  ;;  %6415 = vmatprep.mubr.msk.bf16.mxu1 %vm1460_vm1, %v5788_v36  ;;  %v5723_v16 = vsel %vm679_vm8, 1.0, %v9102_v41  ;;  %vm810_vm10 = vcmp.ne.s32.totalorder %v468_v30, 15  ;;  %v2142_v32 = vrot.slane %v892_v57, %v7316_v22 }
  0x80   : > { %v2149_v51 = vrot.slane %v892_v57, %v7323_v28  ;;  %v772_v20 = vpack.c.bf16 %v9103_v4, %v5723_v16  ;;  %v5748_v62 = vsel %vm810_vm10, 1.0, %v9102_v41  ;;  %vm681_vm11 = vcmp.ne.s32.totalorder %v349_v18, 0 }
  0x81   : > { %v893_v45 = vpack.c.bf16 %v5748_v62, %v9103_v4  ;;  %v482_v8 = vand.u32 15, %v284_v43  ;;  %v267_v15 = vadd.s32 80, %v7282_v3  ;;  %v2274_v52 = vrot.slane %v2142_v32, 7 }
  0x82   : > { %6564 = vmatmul.mubr.msk.bf16.gmra.mrb[16].mxu0 %vm1460_vm1, %v3765_v58  ;;  %v2277_v2 = vrot.slane %v2149_v51, 7  ;;  %v7906_v26 = vrot.slane %v772_v20, %v7316_v22  ;;  %v7909_v36 = vrot.slane %v772_v20, %v7323_v28  ;;  %v5724_v60 = vsel %vm681_vm11, 1.0, %v9102_v41  ;;  %v3152_v58 = vld [vmem:[%s7300_s21 + $0x64] sm:$0xf] }
  0x83   : > { %v2156_v44 = vrot.slane %v893_v45, %v7316_v22  ;;  %v2163_v30 = vrot.slane %v893_v45, %v7323_v28  ;;  %vm812_vm12 = vcmp.ne.s32.totalorder %v482_v8, 15  ;;  %v7916_v57 = vsel %vm7376_vm7, %v2273_v35, %v2274_v52  ;;  %v3153_v45 = vld [vmem:[%s7300_s21 + $0x68] sm:$0xf] }
  0x84   : > { %9119 = vst [vmem:[#allocation38_spill] sm:$0xff] %v7906_v26  ;;  %9120 = vst [vmem:[#allocation39_spill] sm:$0xff] %v7909_v36  ;;  %v2276_v18 = vrot.slane %v2274_v52, 4  ;;  %v1207_v16 = vmul.bf16 %v7906_v26, %v7385_v12  ;;  %v1208_v43 = vmul.bf16 %v7909_v36, %v7390_v21  ;;  %v3649_v32 = vmul.bf16 %v3151_v47, %v7916_v57 }
  0x85   : > { %9121 = vst [vmem:[#allocation40_spill] sm:$0xff] %v7916_v57  ;;  %v2279_v51 = vrot.slane %v2277_v2, 4  ;;  %v2280_v20 = vrot.slane %v2156_v44, 7  ;;  %v2283_v62 = vrot.slane %v2163_v30, 7  ;;  %v773_v52 = vpack.c.bf16 %v9103_v4, %v5724_v60  ;;  %v3159_v57 = vld [vmem:[%s7300_s21 + $0x80] sm:$0xf] }
  0x86   : > { %v7927_v8 = vsel %vm7376_vm7, %v2276_v18, %v2277_v2  ;;  %v5789_v35 = vcombine.low %v1207_v16, %v1208_v43  ;;  %v5749_v40 = vsel %vm812_vm12, 1.0, %v9102_v41 }
  0x87   : > { %9122 = vst [vmem:[#allocation41_spill] sm:$0xff] %v7927_v8  ;;  %v3650_v12 = vmul.bf16 %v3152_v58, %v7927_v8  ;;  %v7934_v21 = vsel %vm7376_vm7, %v2279_v51, %v2280_v20  ;;  %v2282_v47 = vrot.slane %v2280_v20, 4  ;;  %v894_v44 = vpack.c.bf16 %v5749_v40, %v9103_v4 }
  0x88   : > { %9123 = vst [vmem:[#allocation42_spill] sm:$0xff] %v7934_v21  ;;  %6416 = vmatmul.mubr.msk.bf16.gmra.mrb[4].mxu1 %vm1460_vm1, %v5789_v35  ;;  %v3651_v2 = vmul.bf16 %v3153_v45, %v7934_v21  ;;  %v7941_v30 = vrot.slane %v773_v52, %v7316_v22  ;;  %v7944_v60 = vrot.slane %v773_v52, %v7323_v28  ;;  %v2285_v18 = vrot.slane %v2283_v62, 4 }
  0x89   : > { %v5931_v58 = vcombine.low %v3649_v32, %v3650_v12  ;;  %v7948_v16 = vsel %vm7376_vm7, %v2282_v47, %v2283_v62  ;;  %v2170_v43 = vrot.slane %v894_v44, %v7316_v22  ;;  %v2177_v40 = vrot.slane %v894_v44, %v7323_v28  ;;  %v3155_v62 = vld [vmem:[%s7300_s21 + $0x70] sm:$0xf] }
  0x8a   : > { %9124 = vst [vmem:[#allocation43_spill] sm:$0xff] %v7941_v30  ;;  %9125 = vst [vmem:[#allocation44_spill] sm:$0xff] %v7944_v60  ;;  %v3652_v51 = vmul.bf16 %v3154_v63, %v7948_v16  ;;  %v1209_v20 = vmul.bf16 %v7941_v30, %v7424_v49  ;;  %v1210_v45 = vmul.bf16 %v7944_v60, %v7427_v50  ;;  %v363_v35 = vand.u32 15, %v267_v15 }
  0x8b   : > { %9126 = vst [vmem:[#allocation45_spill] sm:$0xff] %v7948_v16  ;;  %v3766_v52 = vrot.slane %v5931_v58, 1  ;;  %v2286_v32 = vrot.slane %v2170_v43, 7  ;;  %v7957_v12 = vrot.slane %v2177_v40, 7  ;;  %v286_v47 = vadd.s32 232, %v7282_v3 }
  0x8c   : > { %v5932_v21 = vcombine.low %v3651_v2, %v3652_v51  ;;  %v5790_v8 = vcombine.low %v1209_v20, %v1210_v45  ;;  %vm683_vm13 = vcmp.ne.s32.totalorder %v363_v35, 0  ;;  %v269_v63 = vadd.s32 96, %v7282_v3  ;;  %v3156_v58 = vld [vmem:[%s7300_s21 + $0x74] sm:$0xf] }
  0x8d   : > { %v9127_v44 = vrot.slane %v7878_v9, 1  ;;  %v7967_v50 = vsel %vm7376_vm7, %v2285_v18, %v2286_v32  ;;  %v2288_v15 = vrot.slane %v2286_v32, 4  ;;  %v5725_v43 = vsel %vm683_vm13, 1.0, %v9102_v41 }
  0x8e   : > { %9128 = vst [vmem:[#allocation46_spill] sm:$0xff] %v7967_v50  ;;  %v3768_v40 = vrot.slane %v5932_v21, 1  ;;  %6419 = vmatprep.mubr.msk.bf16.mxu1 %vm1460_vm1, %v5790_v8  ;;  %v3653_v2 = vmul.bf16 %v3155_v62, %v7967_v50  ;;  %v774_v51 = vpack.c.bf16 %v9103_v4, %v5725_v43  ;;  %v496_v9 = vand.u32 15, %v286_v47 }
  0x8f   : > { %v3767_v49 = vsel %vm2455_vm9, %v9127_v44, %v3766_v52  ;;  %v7978_v20 = vsel %vm7376_vm7, %v2288_v15, %v7957_v12  ;;  %v2291_v18 = vrot.slane %v7957_v12, 4  ;;  %v377_v45 = vand.u32 15, %v269_v63  ;;  %v9132_v44 = vld [vmem:[#allocation9_spill] sm:$0xff] }
  0x90   : > { %6567 = vmatprep.mubr.msk.bf16.mxu0 %vm1460_vm1, %v3767_v49  ;;  %9129 = vst [vmem:[#allocation47_spill] sm:$0xff] %v7978_v20  ;;  %v288_v35 = vadd.s32 248, %v7282_v3  ;;  %v3769_v32 = vsel %vm2455_vm9, %v3766_v52, %v3768_v40  ;;  %v3654_v21 = vmul.bf16 %v3156_v58, %v7978_v20  ;;  %v7985_v8 = vrot.slane %v774_v51, %v7316_v22  ;;  %v9133_v49 = vld [vmem:[#allocation10_spill] sm:$0xff] }
  0x91   : > { %v7988_v62 = vrot.slane %v774_v51, %v7323_v28  ;;  %6568 = vmatmul.mubr.msk.bf16.gmra.mrb[20].mxu0 %vm1460_vm1, %v3769_v32  ;;  %vm814_vm14 = vcmp.ne.s32.totalorder %v496_v9, 15  ;;  %vm685_vm15 = vcmp.ne.s32.totalorder %v377_v45, 0  ;;  %v271_v12 = vadd.s32 112, %v7282_v3  ;;  %v9137_v20 = vld [vmem:[#allocation14_spill] sm:$0xff] }
  0x92   : > { %9130 = vst [vmem:[#allocation48_spill] sm:$0xff] %v7985_v8  ;;  %v510_v47 = vand.u32 15, %v288_v35  ;;  %v7992_v63 = vcombine.low %v3653_v2, %v3654_v21  ;;  %v1211_v52 = vmul.bf16 %v7985_v8, %v9132_v44  ;;  %v5750_v58 = vsel %vm814_vm14, 1.0, %v9102_v41 }
  0x93   : > { %9131 = vst [vmem:[#allocation49_spill] sm:$0xff] %v7988_v62  ;;  %v1212_v15 = vmul.bf16 %v7988_v62, %v9133_v49  ;;  %v895_v43 = vpack.c.bf16 %v5750_v58, %v9103_v4  ;;  %v5726_v51 = vsel %vm685_vm15, 1.0, %v9102_v41  ;;  %v391_v9 = vand.u32 15, %v271_v12 }
  0x94   : > { %vm816_vm2 = vcmp.ne.s32.totalorder %v510_v47, 15  ;;  %v9016_v45 = vrot.slane %v7992_v63, 1  ;;  %v775_v2 = vpack.c.bf16 %v9103_v4, %v5726_v51  ;;  %v3157_v51 = vld [vmem:[%s7300_s21 + $0x78] sm:$0xf] }
  0x95   : > { %v5791_v35 = vcombine.low %v1211_v52, %v1212_v15  ;;  %v5751_v32 = vsel %vm816_vm2, 1.0, %v9102_v41  ;;  %v2184_v21 = vrot.slane %v895_v43, %v7316_v22  ;;  %v2191_v44 = vrot.slane %v895_v43, %v7323_v28 }
  0x96   : > { %v896_v49 = vpack.c.bf16 %v5751_v32, %v9103_v4  ;;  %vm687_vm3 = vcmp.ne.s32.totalorder %v391_v9, 0  ;;  %v3771_v47 = vsel %vm2455_vm9, %v3768_v40, %v9016_v45  ;;  %v8012_v12 = vrot.slane %v775_v2, %v7316_v22  ;;  %v3158_v32 = vld [vmem:[%s7300_s21 + $0x7c] sm:$0xf] }
  0x97   : > { %6420 = vmatmul.mubr.msk.bf16.gmra.mrb[8].mxu1 %vm1460_vm1, %v5791_v35  ;;  %v8015_v52 = vrot.slane %v775_v2, %v7323_v28  ;;  %v5727_v15 = vsel %vm687_vm3, 1.0, %v9102_v41  ;;  %6571 = vmatprep.mubr.msk.bf16.mxu0 %vm1460_vm1, %v3771_v47  ;;  %v2292_v58 = vrot.slane %v2184_v21, 7  ;;  %v2295_v43 = vrot.slane %v2191_v44, 7  ;;  %v9136_v35 = vld [vmem:[#allocation12_spill] sm:$0xff] }
  0x98   : > { %9134 = vst [vmem:[#allocation9_spill] sm:$0xff] %v8012_v12  ;;  %v2198_v9 = vrot.slane %v896_v49, %v7316_v22  ;;  %v2205_v40 = vrot.slane %v896_v49, %v7323_v28  ;;  %v1213_v45 = vmul.bf16 %v8012_v12, %v9136_v35  ;;  %v776_v50 = vpack.c.bf16 %v9103_v4, %v5727_v15 }
  0x99   : > { %9135 = vst [vmem:[#allocation10_spill] sm:$0xff] %v8015_v52  ;;  %v1214_v2 = vmul.bf16 %v8015_v52, %v9137_v20  ;;  %v273_v47 = vadd.s32 128, %v7282_v3  ;;  %v8031_v21 = vsel %vm7376_vm7, %v2291_v18, %v2292_v58  ;;  %v2294_v44 = vrot.slane %v2292_v58, 4  ;;  %v3160_v58 = vld [vmem:[%s7300_s21 + $0x84] sm:$0xf] }
  0x9a   : > { %9138 = vst [vmem:[#allocation12_spill] sm:$0xff] %v8031_v21  ;;  %v2297_v16 = vrot.slane %v2295_v43, 4  ;;  %v2298_v49 = vrot.slane %v2198_v9, 7  ;;  %v3655_v39 = vmul.bf16 %v3157_v51, %v8031_v21  ;;  %v2301_v38 = vrot.slane %v2205_v40, 7  ;;  %v3161_v51 = vld [vmem:[%s7300_s21 + $0x88] sm:$0x1] }
  0x9b   : > { %v5792_v35 = vcombine.low %v1213_v45, %v1214_v2  ;;  %v8036_v31 = vrot.slane %v776_v50, %v7316_v22  ;;  %v8040_v20 = vsel %vm7376_vm7, %v2294_v44, %v2295_v43  ;;  %v8048_v9 = vrot.slane %v776_v50, %v7323_v28  ;;  %v9143_v2 = vld [vmem:[#allocation15_spill] sm:$0xff] }
  0x9c   : > { %9140 = vst [vmem:[#allocation50_spill] sm:$0xff] %v8040_v20  ;;  %v8044_v15 = vsel %vm7376_vm7, %v2297_v16, %v2298_v49  ;;  %v2300_v18 = vrot.slane %v2298_v49, 4  ;;  %v3656_v45 = vmul.bf16 %v3158_v32, %v8040_v20  ;;  %v8056_v44 = vrot.slane %v2301_v38, 4  ;;  %v9145_v49 = vld [vmem:[#allocation16_spill] sm:$0xff] }
  0x9d   : > { %9139 = vst [vmem:[#allocation14_spill] sm:$0xff] %v8036_v31  ;;  %9141 = vst [vmem:[#allocation51_spill] sm:$0xff] %v8044_v15  ;;  %6423 = vmatprep.mubr.msk.bf16.mxu1 %vm1460_vm1, %v5792_v35  ;;  %v3657_v40 = vmul.bf16 %v3159_v57, %v8044_v15  ;;  %v1215_v43 = vmul.bf16 %v8036_v31, %v9143_v2  ;;  %v1216_v50 = vmul.bf16 %v8048_v9, %v9145_v49  ;;  %v4025_v15 = vld [vmem:[%s7300_s21 + $0x10] sm:$0xf] }
  0x9e   : > { %9142 = vst [vmem:[#allocation52_spill] sm:$0xff] %v8048_v9  ;;  %v8060_v16 = vsel %vm7376_vm7, %v2300_v18, %v2301_v38  ;;  %v405_v21 = vand.u32 15, %v273_v47  ;;  %v5934_v59 = vcombine.low %v3655_v39, %v3656_v45  ;;  %v3659_v35 = vmul.bf16 %v3161_v51, %v8056_v44  ;;  %v4026_v18 = vld [vmem:[%s7300_s21 + $0x14] sm:$0xf] }
  0x9f   : > { %9144 = vst [vmem:[#allocation15_spill] sm:$0xff] %v8060_v16  ;;  %v3658_v32 = vmul.bf16 %v3160_v58, %v8060_v16  ;;  %v5793_v57 = vcombine.low %v1215_v43, %v1216_v50  ;;  %v275_v2 = vadd.s32 144, %v7282_v3  ;;  %v9146_v58 = vrot.slane %v7992_v63, 1  ;;  %v4027_v63 = vld [vmem:[%s7300_s21 + $0x18] sm:$0xf] }
  0xa0   : > { %vm689_vm4 = vcmp.ne.s32.totalorder %v405_v21, 0  ;;  %v3772_v20 = vrot.slane %v5934_v59, 1  ;;  %v5936_v1 = vcombine.low %v3659_v35, %v3659_v35  ;;  %v4057_v45 = vmul.bf16 %v4025_v15, %v7799_v23 }
  0xa1   : > { %v5935_v17 = vcombine.low %v3657_v40, %v3658_v32  ;;  %v5728_v38 = vsel %vm689_vm4, 1.0, %v9102_v41  ;;  %6424 = vmatmul.mubr.msk.bf16.gmra.mrb[12].mxu1 %vm1460_vm1, %v5793_v57  ;;  %v419_v47 = vand.u32 15, %v275_v2  ;;  %v277_v59 = vadd.s32 160, %v7282_v3 }
  0xa2   : > { %v777_v39 = vpack.c.bf16 %v9103_v4, %v5728_v38  ;;  %v3773_v51 = vsel %vm2455_vm9, %v9146_v58, %v3772_v20  ;;  %v4058_v49 = vmul.bf16 %v4026_v18, %v7802_v6  ;;  %v4028_v38 = vld [vmem:[%s7300_s21 + $0x1c] sm:$0xf]  ;;  %v9149_v18 = vld [vmem:[#allocation5_spill] sm:$0xff] }
  0xa3   : > { %v3774_v21 = vrot.slane %v5935_v17, 1  ;;  %6572 = vmatmul.mubr.msk.bf16.gmra.mrb[24].mxu0 %vm1460_vm1, %v3773_v51  ;;  %vm691_vm7 = vcmp.ne.s32.totalorder %v419_v47, 0  ;;  %v3776_v17 = vrot.slane %v5936_v1, 1  ;;  %v433_v32 = vand.u32 15, %v277_v59  ;;  %v4029_v51 = vld [vmem:[%s7300_s21 + $0x20] sm:$0xf] }
  0xa4   : > { %v8079_v40 = vrot.slane %v777_v39, %v7316_v22  ;;  %v8082_v43 = vrot.slane %v777_v39, %v7323_v28  ;;  %v5729_v15 = vsel %vm691_vm7, 1.0, %v9102_v41  ;;  %v4059_v39 = vmul.bf16 %v4027_v63, %v9149_v18 }
  0xa5   : > { %v3775_v50 = vsel %vm2455_vm9, %v3772_v20, %v3774_v21  ;;  %v778_v2 = vpack.c.bf16 %v9103_v4, %v5729_v15  ;;  %vm693_vm5 = vcmp.ne.s32.totalorder %v433_v32, 0  ;;  %v279_v20 = vadd.s32 176, %v7282_v3  ;;  %v4030_v15 = vld [vmem:[%s7300_s21 + $0x24] sm:$0xf] }
  0xa6   : > { %9147 = vst [vmem:[#allocation16_spill] sm:$0xff] %v8079_v40  ;;  %9148 = vst [vmem:[#allocation53_spill] sm:$0xff] %v8082_v43  ;;  %6575 = vmatprep.mubr.msk.bf16.mxu0 %vm1460_vm1, %v3775_v50  ;;  %v1217_v35 = vmul.bf16 %v8079_v40, %v7521_v34  ;;  %v1218_v57 = vmul.bf16 %v8082_v43, %v7529_v14  ;;  %v5730_v34 = vsel %vm693_vm5, 1.0, %v9102_v41  ;;  %v281_v18 = vadd.s32 192, %v7282_v3 }
  0xa7   : > { %v8098_v47 = vrot.slane %v778_v2, %v7316_v22  ;;  %v8101_v58 = vrot.slane %v778_v2, %v7323_v28  ;;  %v3777_v14 = vsel %vm2455_vm9, %v3774_v21, %v3776_v17  ;;  %v5954_v59 = vcombine.low %v4057_v45, %v4058_v49 }
  0xa8   : > { %v5794_v1 = vcombine.low %v1217_v35, %v1218_v57  ;;  %v779_v50 = vpack.c.bf16 %v9103_v4, %v5730_v34  ;;  %v447_v63 = vand.u32 15, %v279_v20  ;;  %v9152_v57 = vld [vmem:[#allocation6_spill] sm:$0xff]  ;;  %v4061_v49 = vmul.bf16 %v4029_v51, %v7870_v61  ;;  %v9170_v61 = vld [vmem:[#allocation8_spill] sm:$0xff] }
  0xa9   : > { %9150 = vst [vmem:[#allocation54_spill] sm:$0xff] %v8098_v47  ;;  %9151 = vst [vmem:[#allocation55_spill] sm:$0xff] %v8101_v58  ;;  %v1219_v32 = vmul.bf16 %v8098_v47, %v7545_v33  ;;  %v1220_v35 = vmul.bf16 %v8101_v58, %v7548_v54  ;;  %v4060_v2 = vmul.bf16 %v4028_v38, %v9152_v57  ;;  %v461_v38 = vand.u32 15, %v281_v18 }
  0xaa   : > { %6427 = vmatprep.mubr.msk.bf16.mxu1 %vm1460_vm1, %v5794_v1  ;;  %v8116_v21 = vrot.slane %v779_v50, %v7316_v22  ;;  %v8119_v45 = vrot.slane %v779_v50, %v7323_v28  ;;  %vm695_vm6 = vcmp.ne.s32.totalorder %v447_v63, 0  ;;  %v4062_v17 = vmul.bf16 %v4030_v15, %v7873_v19  ;;  %v4032_v15 = vld [vmem:[%s7300_s21 + $0x2c] sm:$0xf] }
  0xab   : > { %6576 = vmatmul.mubr.msk.bf16.gmra.mrb[28].mxu0 %vm1460_vm1, %v3777_v14  ;;  %v5795_v33 = vcombine.low %v1219_v32, %v1220_v35  ;;  %v5731_v54 = vsel %vm695_vm6, 1.0, %v9102_v41  ;;  %v283_v51 = vadd.s32 208, %v7282_v3  ;;  %v4031_v14 = vld [vmem:[%s7300_s21 + $0x28] sm:$0xf]  ;;  %vm697_vm8 = vcmp.ne.s32.totalorder %v461_v38, 0  ;;  %v9157_v38 = vld [vmem:[#allocation18_spill] sm:$0xff] }
  0xac   : > { %9153 = vst [vmem:[#allocation56_spill] sm:$0xff] %v8116_v21  ;;  %9154 = vst [vmem:[#allocation57_spill] sm:$0xff] %v8119_v45  ;;  %6581 = vmatprep.mubr.msk.bf16.mxu0 %vm1460_vm1, %v5954_v59  ;;  %v1221_v20 = vmul.bf16 %v8116_v21, %v7560_v37  ;;  %v1222_v1 = vmul.bf16 %v8119_v45, %v7563_v42  ;;  %v780_v34 = vpack.c.bf16 %v9103_v4, %v5731_v54  ;;  %v7065_v19 = vld [vmem:[%s7300_s21 + $0xc] sm:$0xf] }
  0xad   : > { %6428 = vmatmul.mubr.msk.bf16.gmra.mrb[16].mxu1 %vm1460_vm1, %v5795_v33  ;;  %v5732_v37 = vsel %vm697_vm8, 1.0, %v9102_v41  ;;  %v5955_v42 = vcombine.low %v4059_v39, %v4060_v2  ;;  %v475_v32 = vand.u32 15, %v283_v51  ;;  %v285_v35 = vadd.s32 224, %v7282_v3  ;;  %v4033_v2 = vld [vmem:[%s7300_s21 + $0x30] sm:$0xf] }
  0xae   : > { %v5796_v50 = vcombine.low %v1221_v20, %v1222_v1  ;;  %v8135_v18 = vrot.slane %v780_v34, %v7316_v22  ;;  %v8138_v59 = vrot.slane %v780_v34, %v7323_v28  ;;  %v781_v63 = vpack.c.bf16 %v9103_v4, %v5732_v37  ;;  %v4034_v51 = vld [vmem:[%s7300_s21 + $0x34] sm:$0xf] }
  0xaf   : > { %v5956_v33 = vcombine.low %v4061_v49, %v4062_v17  ;;  %v4063_v1 = vmul.bf16 %v4031_v14, %v7906_v26  ;;  %vm699_vm10 = vcmp.ne.s32.totalorder %v475_v32, 0  ;;  %v4064_v17 = vmul.bf16 %v4032_v15, %v7909_v36  ;;  %v8164_v14 = vld [vmem:[%s8968_s1 + $0x40] sm:$0xff]   ;;  %v9162_v26 = vld [vmem:[#allocation22_spill] sm:$0xff] }
  0xb0   : > { %9155 = vst [vmem:[#allocation58_spill] sm:$0xff] %v8135_v18  ;;  %9156 = vst [vmem:[#allocation59_spill] sm:$0xff] %v8138_v59  ;;  %6431 = vmatprep.mubr.msk.bf16.mxu1 %vm1460_vm1, %v5796_v50  ;;  %v1223_v54 = vmul.bf16 %v8135_v18, %v7580_v48  ;;  %v1224_v20 = vmul.bf16 %v8138_v59, %v9157_v38  ;;  %v8151_v34 = vrot.slane %v781_v63, %v7316_v22  ;;  %v1965_v15 = vld [vmem:[%s7300_s21] sm:$0xe] }
  0xb1   : > { %v8154_v39 = vrot.slane %v781_v63, %v7323_v28  ;;  %v489_v50 = vand.u32 15, %v285_v35  ;;  %v5733_v48 = vsel %vm699_vm10, 1.0, %v9102_v41  ;;  %v287_v37 = vadd.s32 240, %v7282_v3  ;;  %9160 = vst [vmem:[#allocation61_spill] sm:$0xff] %v8164_v14  ;;  %v9161_v63 = vld [vmem:[#allocation21_spill] sm:$0xff] }
  0xb2   : > { %9158 = vst [vmem:[#allocation18_spill] sm:$0xff] %v8151_v34  ;;  %v5797_v49 = vcombine.low %v1223_v54, %v1224_v20  ;;  %v1225_v38 = vmul.bf16 %v8151_v34, %v9161_v63  ;;  %v782_v35 = vpack.c.bf16 %v9103_v4, %v5733_v48  ;;  %v4065_v3 = vmul.bf16 %v4033_v2, %v7941_v30  ;;  %v7061_v63 = vld [vmem:[%s7300_s21 + $0x4] sm:$0xf] }
  0xb3   : > { %9159 = vst [vmem:[#allocation60_spill] sm:$0xff] %v8154_v39  ;;  %6582 = vmatmul.mubr.msk.bf16.vlgmr.msra.gmra.mrb[0].mxu0 %vm1460_vm1, %v5955_v42  ;;  %v1226_v32 = vmul.bf16 %v8154_v39, %v9162_v26  ;;  %vm701_vm11 = vcmp.ne.s32.totalorder %v489_v50, 0  ;;  %v4066_v42 = vmul.bf16 %v4034_v51, %v7944_v60  ;;  %v503_v20 = vand.u32 15, %v287_v37  ;;  %v9165_v51 = vld [vmem:[#allocation20_spill] sm:$0xff]  ;;  %v9166_v37 = vld [vmem:[#allocation23_spill] sm:$0xff] }
  0xb4   : > { %6614 = vmatpush3.bf16.msra.mxu0 %v7663_v7  ;;  %6585 = vmatprep.mubr.msk.bf16.mxu0 %vm1460_vm1, %v5956_v33  ;;  %v5734_v54 = vsel %vm701_vm11, 1.0, %v9102_v41  ;;  %v8180_v50 = vrot.slane %v782_v35, %v7316_v22  ;;  %v8183_v7 = vrot.slane %v782_v35, %v7323_v28  ;;  %v5957_v2 = vcombine.low %v4063_v1, %v4064_v17  ;;  %v8197_v35 = vld [vmem:[%s7300_s21 + $0x6c] sm:$0xf]  ;;  %v4035_v17 = vld [vmem:[%s7300_s21 + $0x38] sm:$0xf]  ;;  %v9169_v30 = vld [vmem:[#allocation7_spill] sm:$0xff] }
  0xb5   : > { %6432 = vmatmul.mubr.msk.bf16.gmra.mrb[20].mxu1 %vm1460_vm1, %v5797_v49  ;;  %v5798_v26 = vcombine.low %v1225_v38, %v1226_v32  ;;  %v783_v33 = vpack.c.bf16 %v9103_v4, %v5734_v54  ;;  %vm703_vm12 = vcmp.ne.s32.totalorder %v503_v20, 0  ;;  %v2337_v48 = vmul.bf16 %v9165_v51, %v1965_v15  ;;  %6647 = vmatprep.subr.bf16.mxu0 %v8164_v14  ;;  %v8192_v38 = vld [vmem:[%s7300_s21 + $0x68] sm:$0xf]  ;;  %v4036_v15 = vld [vmem:[%s7300_s21 + $0x3c] sm:$0xf] }
  0xb6   : > { %9163 = vst [vmem:[#allocation21_spill] sm:$0xff] %v8180_v50  ;;  %9164 = vst [vmem:[#allocation22_spill] sm:$0xff] %v8183_v7  ;;  %v2338_v49 = vmul.bf16 %v7061_v63, %v9166_v37  ;;  %v1227_v32 = vmul.bf16 %v8192_v38, %v8180_v50  ;;  %v1228_v1 = vmul.bf16 %v8197_v35, %v8183_v7  ;;  %v5735_v63 = vsel %vm703_vm12, 1.0, %v9102_v41  ;;  %v7064_v60 = vld [vmem:[%s7300_s21 + $0x8] sm:$0xf] }
  0xb7   : > { %6435 = vmatprep.mubr.msk.bf16.mxu1 %vm1460_vm1, %v5798_v26  ;;  %v8204_v54 = vrot.slane %v783_v33, %v7316_v22  ;;  %v8207_v20 = vrot.slane %v783_v33, %v7323_v28  ;;  %v5958_v26 = vcombine.low %v4065_v3, %v4066_v42  ;;  %v2339_v36 = vmul.bf16 %v7064_v60, %v9169_v30  ;;  %v4037_v37 = vld [vmem:[%s7300_s21 + $0x40] sm:$0xf]  ;;  %v4038_v51 = vld [vmem:[%s7300_s21 + $0x44] sm:$0xf] }
  0xb8   : > { %v2340_v57 = vmul.bf16 %v7065_v19, %v9170_v61  ;;  %v5799_v6 = vcombine.low %v1227_v32, %v1228_v1  ;;  %v784_v33 = vpack.c.bf16 %v9103_v4, %v5735_v63  ;;  %v4067_v3 = vmul.bf16 %v4035_v17, %v7985_v8  ;;  %v7069_v1 = vld [vmem:[%s7300_s21 + $0x1c] sm:$0xf]  ;;  %v9187_v8 = vld [vmem:[#allocation45_spill] sm:$0xff] }
  0xb9   : > { %9167 = vst [vmem:[#allocation62_spill] sm:$0xff] %v8204_v54  ;;  %9168 = vst [vmem:[#allocation63_spill] sm:$0xff] %v8207_v20  ;;  %v1229_v23 = vmul.bf16 %v8204_v54, %v7640_v13  ;;  %v1230_v14 = vmul.bf16 %v8207_v20, %v7643_v55  ;;  %v4068_v41 = vmul.bf16 %v4036_v15, %v7988_v62  ;;  %v4039_v15 = vld [vmem:[%s7300_s21 + $0x48] sm:$0xf]  ;;  %v9186_v62 = vld [vmem:[#allocation42_spill] sm:$0xff] }
  0xba   : > { %v5819_v60 = vcombine.low %v2337_v48, %v2338_v49  ;;  %v8225_v42 = vrot.slane %v784_v33, %v7316_v22  ;;  %v8228_v13 = vrot.slane %v784_v33, %v7323_v28  ;;  %v5820_v55 = vcombine.low %v2339_v36, %v2340_v57  ;;  %v7066_v36 = vld [vmem:[%s7300_s21 + $0x10] sm:$0xf]  ;;  %v9173_v57 = vld [vmem:[#allocation11_spill] sm:$0xff]  ;;  %v7068_v49 = vld [vmem:[%s7300_s21 + $0x18] sm:$0xf] }
  0xbb   : > { %6586 = vmatmul.mubr.msk.bf16.gmra.mrb[4].mxu0 %vm1460_vm1, %v5957_v2  ;;  %v5800_v19 = vcombine.low %v1229_v23, %v1230_v14  ;;  %v4069_v4 = vmul.bf16 %v4037_v37, %v8012_v12  ;;  %v4070_v32 = vmul.bf16 %v4038_v51, %v8015_v52  ;;  %v5959_v28 = vcombine.low %v4067_v3, %v4068_v41  ;;  %v7067_v2 = vld [vmem:[%s7300_s21 + $0x14] sm:$0xf]  ;;  %v4041_v33 = vld [vmem:[%s7300_s21 + $0x50] sm:$0xf]  ;;  %v8388_v52 = vld [vmem:[%s7300_s21 + $0x38] sm:$0xf] }
  0xbc   : > { %9171 = vst [vmem:[#allocation7_spill] sm:$0xff] %v8225_v42  ;;  %9172 = vst [vmem:[#allocation8_spill] sm:$0xff] %v8228_v13  ;;  %6589 = vmatprep.mubr.msk.bf16.mxu0 %vm1460_vm1, %v5958_v26  ;;  %v1231_v23 = vmul.bf16 %v8225_v42, %v7680_v29  ;;  %v1232_v22 = vmul.bf16 %v8228_v13, %v7692_v46  ;;  %v2341_v14 = vmul.bf16 %v7066_v36, %v9173_v57  ;;  %v9174_v51 = vld [vmem:[#allocation13_spill] sm:$0xff]  ;;  %v4040_v26 = vld [vmem:[%s7300_s21 + $0x4c] sm:$0xf] }
  0xbd   : > { %6436 = vmatmul.mubr.msk.bf16.gmra.mrb[24].mxu1 %vm1460_vm1, %v5799_v6  ;;  %v2342_v48 = vmul.bf16 %v7067_v2, %v9174_v51  ;;  %v2456_v6 = vrot.slane %v5819_v60, 1  ;;  %v2457_v37 = vrot.slane %v5820_v55, 1  ;;  %v2343_v29 = vmul.bf16 %v7068_v49, %v7676_v0  ;;  %v4042_v3 = vld [vmem:[%s7300_s21 + $0x54] sm:$0xf]  ;;  %v9175_v2 = vld [vmem:[#allocation24_spill] sm:$0xff] }
  0xbe   : > { %6439 = vmatprep.mubr.msk.bf16.mxu1 %vm1460_vm1, %v5800_v19  ;;  %v2344_v17 = vmul.bf16 %v7069_v1, %v7687_v25  ;;  %v5960_v46 = vcombine.low %v4069_v4, %v4070_v32  ;;  %v5801_v63 = vcombine.low %v1231_v23, %v1232_v22  ;;  %v4071_v60 = vmul.bf16 %v4039_v15, %v8036_v31  ;;  %v7070_v22 = vld [vmem:[%s7300_s21 + $0x20] sm:$0xf]  ;;  %v9176_v1 = vld [vmem:[#allocation25_spill] sm:$0xff]  ;;  %v9177_v15 = vld [vmem:[#allocation26_spill] sm:$0xff] }
  0xbf   : > { %v5821_v41 = vcombine.low %v2341_v14, %v2342_v48  ;;  %v4072_v19 = vmul.bf16 %v4040_v26, %v8048_v9  ;;  %v2458_v55 = vsel %vm2455_vm9, %v2456_v6, %v2457_v37  ;;  %v4073_v4 = vmul.bf16 %v4041_v33, %v8079_v40  ;;  %v7071_v14 = vld [vmem:[%s7300_s21 + $0x24] sm:$0xf]  ;;  %v4043_v33 = vld [vmem:[%s7300_s21 + $0x58] sm:$0xf]  ;;  %v8378_v40 = vld [vmem:[%s7300_s21 + $0x30] sm:$0xf] }
  0xc0   : > { %v5822_v36 = vcombine.low %v2343_v29, %v2344_v17  ;;  %v4074_v32 = vmul.bf16 %v4042_v3, %v8082_v43  ;;  %v2346_v48 = vmul.bf16 %v7071_v14, %v9175_v2  ;;  %v7072_v29 = vld [vmem:[%s7300_s21 + $0x28] sm:$0xf]  ;;  %v4044_v3 = vld [vmem:[%s7300_s21 + $0x5c] sm:$0xf] }
  0xc1   : > { %v2459_v23 = vrot.slane %v5821_v41, 1  ;;  %v5961_v6 = vcombine.low %v4071_v60, %v4072_v19  ;;  %v2347_v17 = vmul.bf16 %v7072_v29, %v9176_v1  ;;  %v4046_v41 = vld [vmem:[%s7300_s21 + $0x64] sm:$0xf]  ;;  %v4075_v60 = vmul.bf16 %v4043_v33, %v8098_v47  ;;  %v8391_v12 = vld [vmem:[%s7300_s21 + $0x3c] sm:$0xf] }
  0xc2   : > { %v2461_v49 = vrot.slane %v5822_v36, 1  ;;  %v4076_v19 = vmul.bf16 %v4044_v3, %v8101_v58  ;;  %v4047_v3 = vld [vmem:[%s7300_s21 + $0x68] sm:$0xf]  ;;  %v7086_v58 = vld [vmem:[%s7300_s21 + $0x5c] sm:$0xf] }
  0xc3   : > { %6590 = vmatmul.mubr.msk.bf16.gmra.mrb[8].mxu0 %vm1460_vm1, %v5959_v28  ;;  %v2345_v28 = vmul.bf16 %v7070_v22, %v7699_v27  ;;  %v2460_v43 = vsel %vm2455_vm9, %v2457_v37, %v2459_v23 }
  0xc4   : > { %6593 = vmatprep.mubr.msk.bf16.mxu0 %vm1460_vm1, %v5960_v46  ;;  %v7073_v46 = vld [vmem:[%s7300_s21 + $0x2c] sm:$0xf]  ;;  %v2462_v36 = vsel %vm2455_vm9, %v2459_v23, %v2461_v49  ;;  %v5963_v29 = vcombine.low %v4075_v60, %v4076_v19 }
  0xc5   : > { %6440 = vmatmul.mubr.msk.bf16.gmra.mrb[28].mxu1 %vm1460_vm1, %v5801_v63  ;;  %v2348_v26 = vmul.bf16 %v7073_v46, %v9177_v15  ;;  %v5962_v63 = vcombine.low %v4073_v4, %v4074_v32  ;;  %v5823_v22 = vcombine.low %v2345_v28, %v2346_v48  ;;  %v4078_v32 = vmul.bf16 %v4046_v41, %v8119_v45  ;;  %v7074_v28 = vld [vmem:[%s7300_s21 + $0x30] sm:$0xf]  ;;  %v7075_v48 = vld [vmem:[%s7300_s21 + $0x34] sm:$0xf]  ;;  %v7076_v46 = vld [vmem:[%s7300_s21 + $0x38] sm:$0xf] }
  0xc6   : > { %6445 = vmatprep.mubr.msk.bf16.mxu1 %vm1460_vm1, %v2458_v55  ;;  %v4045_v55 = vld [vmem:[%s7300_s21 + $0x60] sm:$0xf]  ;;  %v2349_v23 = vmul.bf16 %v7074_v28, %v7742_v24  ;;  %v4049_v41 = vld [vmem:[%s7300_s21 + $0x70] sm:$0xf] }
  0xc7   : > { %v5824_v14 = vcombine.low %v2347_v17, %v2348_v26  ;;  %v4077_v4 = vmul.bf16 %v4045_v55, %v8116_v21  ;;  %v2463_v37 = vrot.slane %v5823_v22, 1  ;;  %v7077_v26 = vld [vmem:[%s7300_s21 + $0x3c] sm:$0xf]  ;;  %v4048_v55 = vld [vmem:[%s7300_s21 + $0x6c] sm:$0xf] }
  0xc8   : > { %v4050_v22 = vld [vmem:[%s7300_s21 + $0x74] sm:$0xf]  ;;  %v4054_v21 = vld [vmem:[%s7300_s21 + $0x84] sm:$0xf] }
  0xc9   : > { %v2465_v17 = vrot.slane %v5824_v14, 1  ;;  %v5964_v33 = vcombine.low %v4077_v4, %v4078_v32  ;;  %v2464_v60 = vsel %vm2455_vm9, %v2461_v49, %v2463_v37  ;;  %v4080_v14 = vmul.bf16 %v4048_v55, %v8138_v59  ;;  %v9180_v55 = vld [vmem:[#allocation32_spill] sm:$0xff] }
  0xca   : > { %v4081_v49 = vmul.bf16 %v4049_v41, %v8151_v34  ;;  %v4082_v28 = vmul.bf16 %v4050_v22, %v8154_v39  ;;  %v7082_v22 = vld [vmem:[%s7300_s21 + $0x4c] sm:$0xf] }
  0xcb   : > { %6594 = vmatmul.mubr.msk.bf16.gmra.mrb[12].mxu0 %vm1460_vm1, %v5961_v6  ;;  %v2350_v6 = vmul.bf16 %v7075_v48, %v7750_v56  ;;  %v2466_v4 = vsel %vm2455_vm9, %v2463_v37, %v2465_v17  ;;  %v8313_v48 = vld [vmem:[%s7300_s21 + $0x14] sm:$0xf] }
  0xcc   : > { %6597 = vmatprep.mubr.msk.bf16.mxu0 %vm1460_vm1, %v5962_v63  ;;  %v8294_v63 = vld [vmem:[%s8968_s1 + $0x20] sm:$0xff]  }
  0xcd   : > { %6446 = vmatmul.mubr.msk.bf16.vlgmr.msra.gmra.mrb[0].mxu1 %vm1460_vm1, %v2460_v43  ;;  %v2351_v43 = vmul.bf16 %v7076_v46, %v7781_v10  ;;  %9178 = vst [vmem:[#allocation11_spill] sm:$0xff] %v8294_v63  ;;  %v5825_v19 = vcombine.low %v2349_v23, %v2350_v6  ;;  %v4418_v23 = vld [vmem:[%s7300_s21 + $0x10] sm:$0xf]  ;;  %v7079_v6 = vld [vmem:[%s7300_s21 + $0x40] sm:$0xf] }
  0xce   : > { %6478 = vmatpush3.bf16.msra.mxu1 %v7831_v11  ;;  %6449 = vmatprep.mubr.msk.bf16.mxu1 %vm1460_vm1, %v2462_v36  ;;  %v2352_v11 = vmul.bf16 %v7077_v26, %v7791_v53  ;;  %v4079_v36 = vmul.bf16 %v4047_v3, %v8135_v18  ;;  %v4051_v46 = vld [vmem:[%s7300_s21 + $0x78] sm:$0xf]  ;;  %v7080_v26 = vld [vmem:[%s7300_s21 + $0x44] sm:$0xf]  ;;  %v7081_v3 = vld [vmem:[%s7300_s21 + $0x48] sm:$0xf]  ;;  %v5987_v59 = vcombine.low %v4418_v23, %v8313_v48 }
  0xcf   : > { %6681 = vmatprep.subr.bf16.mxu1 %v8294_v63  ;;  %v2467_v37 = vrot.slane %v5825_v19, 1  ;;  %v2355_v41 = vmul.bf16 %v7081_v3, %v9180_v55  ;;  %v8330_v19 = vld [vmem:[%s7300_s21 + $0x18] sm:$0xf]  ;;  %v8333_v18 = vld [vmem:[%s7300_s21 + $0x1c] sm:$0xf]  ;;  %v4083_v45 = vmul.bf16 %v4051_v46, %v8180_v50 }
  0xd0   : > { %v8306_v32 = vcombine.low %v2351_v43, %v2352_v11  ;;  %v4052_v43 = vld [vmem:[%s7300_s21 + $0x7c] sm:$0xf]  ;;  %v9179_v11 = vld [vmem:[#allocation31_spill] sm:$0xff]  ;;  %v5965_v34 = vcombine.low %v4079_v36, %v4080_v14  ;;  %v4539_v23 = vshll.u32 %v5987_v59, 16 }
  0xd1   : > { %v4053_v3 = vld [vmem:[%s7300_s21 + $0x80] sm:$0xf]  ;;  %v2468_v36 = vsel %vm2455_vm9, %v2465_v17, %v2467_v37  ;;  %v4086_v17 = vmul.bf16 %v4054_v21, %v8207_v20 }
  0xd2   : > { %v4085_v46 = vmul.bf16 %v4053_v3, %v8204_v54  ;;  %v7084_v3 = vld [vmem:[%s7300_s21 + $0x54] sm:$0xf]  ;;  %v4541_v20 = vrot.slane %v4539_v23, 1  ;;  %v8368_v54 = vld [vmem:[%s7300_s21 + $0x20] sm:$0xf] }
  0xd3   : > { %6598 = vmatmul.mubr.msk.bf16.gmra.mrb[16].mxu0 %vm1460_vm1, %v5963_v29  ;;  %v2353_v29 = vmul.bf16 %v7079_v6, %v7808_v5  ;;  %v2469_v6 = vrot.slane %v8306_v32, 1  ;;  %v8434_v5 = vld [vmem:[%s7300_s21 + $0x48] sm:$0xf] }
  0xd4   : > { %6601 = vmatprep.mubr.msk.bf16.mxu0 %vm1460_vm1, %v5964_v33  ;;  %v2354_v33 = vmul.bf16 %v7080_v26, %v9179_v11  ;;  %v4084_v26 = vmul.bf16 %v4052_v43, %v8183_v7  ;;  %v9182_v43 = vld [vmem:[#allocation34_spill] sm:$0xff]  ;;  %v8371_v7 = vld [vmem:[%s7300_s21 + $0x24] sm:$0xf]  ;;  %v5968_v47 = vcombine.low %v4085_v46, %v4086_v17 }
  0xd5   : > { %6450 = vmatmul.mubr.msk.bf16.gmra.mrb[4].mxu1 %vm1460_vm1, %v2464_v60  ;;  %v9181_v60 = vld [vmem:[#allocation33_spill] sm:$0xff] }
  0xd6   : > { %6453 = vmatprep.mubr.msk.bf16.mxu1 %vm1460_vm1, %v2466_v4  ;;  %v2356_v39 = vmul.bf16 %v7082_v22, %v9181_v60  ;;  %v5966_v4 = vcombine.low %v4081_v49, %v4082_v28  ;;  %v5827_v14 = vcombine.low %v2353_v29, %v2354_v33  ;;  %v2470_v49 = vsel %vm2455_vm9, %v2467_v37, %v2469_v6  ;;  %v4056_v29 = vld [vmem:[%s7300_s21 + $0x8c] sm:$0xf]  ;;  %v7083_v37 = vld [vmem:[%s7300_s21 + $0x50] sm:$0xf] }
  0xd7   : > { %v8346_v28 = vcombine.low %v8330_v19, %v8333_v18  ;;  %v2357_v33 = vmul.bf16 %v7083_v37, %v9182_v43  ;;  %v4088_v9 = vmul.bf16 %v4056_v29, %v8228_v13  ;;  %v7090_v43 = vld [vmem:[%s7300_s21 + $0x74] sm:$0xf] }
  0xd8   : > { %v8340_v32 = vcombine.low %v2355_v41, %v2356_v39  ;;  %v5967_v39 = vcombine.low %v4083_v45, %v4084_v26  ;;  %v8357_v41 = vld [vmem:[%s7300_s21 + $0x28] sm:$0xf]  ;;  %v2471_v22 = vrot.slane %v5827_v14, 1  ;;  %v9183_v45 = vld [vmem:[#allocation35_spill] sm:$0xff] }
  0xd9   : > { %v2358_v26 = vmul.bf16 %v7084_v3, %v9183_v45  ;;  %v4544_v37 = vshll.u32 %v8346_v28, 16  ;;  %v9184_v14 = vld [vmem:[#allocation40_spill] sm:$0xff]  ;;  %v8381_v3 = vld [vmem:[%s7300_s21 + $0x34] sm:$0xf]  ;;  %v7089_v45 = vld [vmem:[%s7300_s21 + $0x70] sm:$0xf] }
  0xda   : > { %v2473_v21 = vrot.slane %v8340_v32, 1  ;;  %v9185_v32 = vld [vmem:[#allocation41_spill] sm:$0xff] }
  0xdb   : > { %6602 = vmatmul.mubr.msk.bf16.gmra.mrb[20].mxu0 %vm1460_vm1, %v5965_v34  ;;  %v4055_v34 = vld [vmem:[%s7300_s21 + $0x88] sm:$0xf]  ;;  %v5829_v17 = vcombine.low %v2357_v33, %v2358_v26  ;;  %v4546_v29 = vrot.slane %v4544_v37, 1  ;;  %v5992_v33 = vcombine.low %v8388_v52, %v8391_v12  ;;  %v9189_v37 = vld [vmem:[#allocation47_spill] sm:$0xff] }
  0xdc   : > { %6605 = vmatprep.mubr.msk.bf16.mxu0 %vm1460_vm1, %v5966_v4  ;;  %v4537_v4 = vshrl.u32 %v5987_v59, 16  ;;  %v2360_v59 = vmul.bf16 %v7086_v58, %v9185_v32  ;;  %v4087_v23 = vmul.bf16 %v4055_v34, %v8225_v42  ;;  %v2472_v58 = vsel %vm2455_vm9, %v2469_v6, %v2471_v22  ;;  %v7087_v6 = vld [vmem:[%s7300_s21 + $0x60] sm:$0xf] }
  0xdd   : > { %6454 = vmatmul.mubr.msk.bf16.gmra.mrb[8].mxu1 %vm1460_vm1, %v2468_v36  ;;  %v8364_v36 = vld [vmem:[%s7300_s21 + $0x2c] sm:$0xf]  ;;  %v2474_v46 = vsel %vm2455_vm9, %v2471_v22, %v2473_v21  ;;  %v5991_v42 = vcombine.low %v8378_v40, %v8381_v3  ;;  %v2361_v22 = vmul.bf16 %v7087_v6, %v9186_v62  ;;  %v8418_v6 = vld [vmem:[%s7300_s21 + $0x44] sm:$0xf]  ;;  %v2475_v62 = vrot.slane %v5829_v17, 1 }
  0xde   : > { %6457 = vmatprep.mubr.msk.bf16.mxu1 %vm1460_vm1, %v2470_v49  ;;  %v7085_v49 = vld [vmem:[%s7300_s21 + $0x58] sm:$0xf]  ;;  %v5990_v31 = vcombine.low %v8357_v41, %v8364_v36  ;;  %v4542_v34 = vor.u32 %v4541_v20, %v4537_v4  ;;  %v5969_v63 = vcombine.low %v4087_v23, %v4088_v9 }
  0xdf   : > { %v2359_v50 = vmul.bf16 %v7085_v49, %v9184_v14  ;;  %v5989_v49 = vcombine.low %v8368_v54, %v8371_v7  ;;  %v4576_v14 = vshll.u32 %v5992_v33, 16  ;;  %v9191_v9 = vld [vmem:[#allocation50_spill] sm:$0xff] }
  0xe0   : > { %v4560_v26 = vshll.u32 %v5990_v31, 16  ;;  %v2366_v23 = vmul.bf16 %v7090_v43, %v9191_v9  ;;  %v4564_v60 = vshrl.u32 %v5990_v31, 16  ;;  %v8437_v43 = vld [vmem:[%s7300_s21 + $0x4c] sm:$0xf] }
  0xe1   : > { %v8398_v13 = vcombine.low %v2359_v50, %v2360_v59  ;;  %v9188_v50 = vld [vmem:[#allocation46_spill] sm:$0xff]  ;;  %v8415_v59 = vld [vmem:[%s7300_s21 + $0x40] sm:$0xf]  ;;  %v4552_v32 = vshll.u32 %v5989_v49, 16  ;;  %v4578_v31 = vrot.slane %v4576_v14, 1 }
  0xe2   : > { %v2363_v4 = vmul.bf16 %v8192_v38, %v9188_v50  ;;  %v4556_v38 = vshrl.u32 %v5989_v49, 16  ;;  %v4568_v50 = vshll.u32 %v5991_v42, 16  ;;  %v4572_v49 = vshrl.u32 %v5991_v42, 16  ;;  %v7092_v14 = vld [vmem:[%s7300_s21 + $0x7c] sm:$0xf] }
  0xe3   : > { %6606 = vmatmul.mubr.msk.bf16.gmra.mrb[24].mxu0 %vm1460_vm1, %v5967_v39  ;;  %v7088_v39 = vld [vmem:[%s7300_s21 + $0x64] sm:$0xf]  ;;  %v4554_v11 = vrot.slane %v4552_v32, 1  ;;  %v4580_v42 = vshrl.u32 %v5992_v33, 16  ;;  %v8450_v33 = vcombine.low %v8434_v5, %v8437_v43 }
  0xe4   : > { %6609 = vmatprep.mubr.msk.bf16.mxu0 %vm1460_vm1, %v5968_v47  ;;  %v2362_v20 = vmul.bf16 %v7088_v39, %v9187_v8  ;;  %v2364_v47 = vmul.bf16 %v8197_v35, %v9189_v37  ;;  %v4547_v39 = vsel %vm1321_vm0, %v4542_v34, %v4546_v29  ;;  %v2477_v8 = vrot.slane %v8398_v13, 1  ;;  %v9190_v35 = vld [vmem:[#allocation12_spill] sm:$0xff] }
  0xe5   : > { %6458 = vmatmul.mubr.msk.bf16.gmra.mrb[12].mxu1 %vm1460_vm1, %v2472_v58  ;;  %v4548_v58 = vshrl.u32 %v8346_v28, 16  ;;  %v2365_v37 = vmul.bf16 %v7089_v45, %v9190_v35  ;;  %v5993_v28 = vcombine.low %v8415_v59, %v8418_v6  ;;  %v2476_v13 = vsel %vm2455_vm9, %v2473_v21, %v2475_v62 }
  0xe6   : > { %6461 = vmatprep.mubr.msk.bf16.mxu1 %vm1460_vm1, %v2474_v46  ;;  %v4562_v46 = vrot.slane %v4560_v26, 1  ;;  %v5831_v17 = vcombine.low %v2361_v22, %v2362_v20  ;;  %v5832_v34 = vcombine.low %v2363_v4, %v2364_v47  ;;  %v2478_v45 = vsel %vm2455_vm9, %v2475_v62, %v2477_v8  ;;  %v7091_v20 = vld [vmem:[%s7300_s21 + $0x78] sm:$0xf]  ;;  %v8453_v47 = vld [vmem:[%s7300_s21 + $0x50] sm:$0xf] }
  0xe7   : > { %v4550_v55 = vor.u32 %v4548_v58, %v4546_v29  ;;  %v4570_v35 = vrot.slane %v4568_v50, 1  ;;  %v8440_v22 = vcombine.low %v2365_v37, %v2366_v23  ;;  %v4584_v21 = vshll.u32 %v5993_v28, 16  ;;  %v9192_v50 = vld [vmem:[#allocation51_spill] sm:$0xff]  ;;  %v8458_v23 = vld [vmem:[%s7300_s21 + $0x54] sm:$0xf] }
  0xe8   : > { %v2479_v62 = vrot.slane %v5831_v17, 1  ;;  %v4566_v32 = vor.u32 %v4564_v60, %v4562_v46  ;;  %v2481_v29 = vrot.slane %v5832_v34, 1  ;;  %v2367_v4 = vmul.bf16 %v7091_v20, %v9192_v50  ;;  %v4915_v17 = vld [vmem:[%s7300_s21 + $0x10] sm:$0xe] }
  0xe9   : > { %v4574_v26 = vor.u32 %v4572_v49, %v4570_v35  ;;  %v2368_v37 = vmul.bf16 %v7092_v14, %v8060_v16  ;;  %v4555_v58 = vsel %vm1321_vm0, %v4550_v55, %v4554_v11  ;;  %v2483_v60 = vrot.slane %v8440_v22, 1  ;;  %v7093_v55 = vld [vmem:[%s7300_s21 + $0x80] sm:$0x1] }
  0xea   : > { %v4571_v49 = vsel %vm1321_vm0, %v4566_v32, %v4570_v35  ;;  %v2482_v20 = vsel %vm2455_vm9, %v2479_v62, %v2481_v29  ;;  %v9193_v35 = vld [vmem:[#allocation20_spill] sm:$0xff]  ;;  %v9194_v22 = vld [vmem:[#allocation23_spill] sm:$0xff] }
  0xeb   : > { %6610 = vmatmul.mubr.msk.bf16.gmra.mrb[28].mxu0 %vm1460_vm1, %v5969_v63  ;;  %v4558_v63 = vor.u32 %v4556_v38, %v4554_v11  ;;  %v4586_v38 = vrot.slane %v4584_v21, 1  ;;  %v4579_v14 = vsel %vm1321_vm0, %v4574_v26, %v4578_v31  ;;  %v8466_v16 = vcombine.low %v2367_v4, %v2368_v37  ;;  %v8491_v4 = vld [vmem:[%s7300_s21 + $0x58] sm:$0xf] }
  0xec   : > { %6615 = vmatprep.mubr.msk.bf16.mxu0 %vm1460_vm1, %v4547_v39  ;;  %v4582_v39 = vor.u32 %v4580_v42, %v4578_v31  ;;  %v4592_v11 = vshll.u32 %v8450_v33, 16  ;;  %v4917_v31 = vmul.bf16 %v8313_v48, %v9194_v22  ;;  %v9195_v42 = vld [vmem:[#allocation61_spill] sm:$0xff]  ;;  %v2484_v21 = vsel %vm2455_vm9, %v2481_v29, %v2483_v60  ;;  %v2736_v48 = vld [vmem:[%s7300_s21 + $0x8] sm:$0xf] }
  0xed   : > { %6462 = vmatmul.mubr.msk.bf16.gmra.mrb[16].mxu1 %vm1460_vm1, %v2476_v13  ;;  %v4563_v34 = vsel %vm1321_vm0, %v4558_v63, %v4562_v46  ;;  %v2480_v13 = vsel %vm2455_vm9, %v2477_v8, %v2479_v62  ;;  %v2369_v46 = vmul.bf16 %v7093_v55, %v8056_v44  ;;  %v8474_v8 = vcombine.low %v8453_v47, %v8458_v23  ;;  %v9197_v55 = vld [vmem:[#allocation29_spill] sm:$0xff] }
  0xee   : > { %6465 = vmatprep.mubr.msk.bf16.mxu1 %vm1460_vm1, %v2478_v45  ;;  %v4588_v45 = vshrl.u32 %v5993_v28, 16  ;;  %v4916_v28 = vmul.bf16 %v4915_v17, %v9193_v35  ;;  %v8483_v63 = vsel %vm1321_vm0, %v4582_v39, %v4586_v38  ;;  %v4918_v62 = vmul.bf16 %v8330_v19, %v9169_v30  ;;  %v2737_v17 = vld [vmem:[%s7300_s21 + $0xc] sm:$0xf]  ;;  %v2738_v22 = vld [vmem:[%s7300_s21 + $0x10] sm:$0xf] }
  0xef   : > { %v4596_v26 = vshrl.u32 %v8450_v33, 16  ;;  %v4919_v37 = vmul.bf16 %v8333_v18, %v9170_v61  ;;  %v2485_v29 = vrot.slane %v8466_v16, 1  ;;  %v4594_v39 = vrot.slane %v4592_v11, 1  ;;  %v9196_v18 = vld [vmem:[#allocation28_spill] sm:$0xff] }
  0xf0   : > { %v4590_v32 = vor.u32 %v4588_v45, %v4586_v38  ;;  %v4920_v30 = vmul.bf16 %v8368_v54, %v9173_v57  ;;  %v4921_v19 = vmul.bf16 %v8371_v7, %v9174_v51  ;;  %v5835_v33 = vcombine.low %v2369_v46, %v2369_v46 }
  0xf1   : > { %v4600_v38 = vshll.u32 %v8474_v8, 16  ;;  %v2768_v45 = vmul.bf16 %v2736_v48, %v9196_v18  ;;  %v4922_v16 = vmul.bf16 %v8357_v41, %v7676_v0  ;;  %v4923_v11 = vmul.bf16 %v8364_v36, %v7687_v25 }
  0xf2   : > { %v2769_v54 = vmul.bf16 %v2737_v17, %v9197_v55  ;;  %v4604_v57 = vshrl.u32 %v8474_v8, 16  ;;  %v4925_v0 = vmul.bf16 %v8381_v3, %v9175_v2  ;;  %v2486_v25 = vsel %vm2455_vm9, %v2483_v60, %v2485_v29 }
  0xf3   : > { %6616 = vmatmul.mubr.msk.bf16.vlgmr.msra.gmra.mrb[0].mxu0 %vm1460_vm1, %v4555_v58  ;;  %v6021_v58 = vcombine.low %v4916_v28, %v4917_v31  ;;  %v6024_v35 = vcombine.low %v4922_v16, %v4923_v11  ;;  %v4924_v28 = vmul.bf16 %v8378_v40, %v7699_v27  ;;  %v4595_v41 = vsel %vm1321_vm0, %v4590_v32, %v4594_v39  ;;  %v4439_v32 = vld [vmem:[%s7300_s21 + $0x64] sm:$0xf] }
  0xf4   : > { %6648 = vmatpush3.bf16.msra.mxu0 %v9195_v42  ;;  %6619 = vmatprep.mubr.msk.bf16.mxu0 %vm1460_vm1, %v4563_v34  ;;  %v8499_v34 = vld [vmem:[%s7300_s21 + $0x5c] sm:$0xf]  ;;  %v2487_v36 = vrot.slane %v5835_v33, 1  ;;  %v4926_v3 = vmul.bf16 %v8388_v52, %v9176_v1  ;;  %v4598_v60 = vor.u32 %v4596_v26, %v4594_v39  ;;  %v5853_v31 = vcombine.low %v2768_v45, %v2769_v54  ;;  %v2739_v42 = vld [vmem:[%s7300_s21 + $0x14] sm:$0xf]  ;;  %v9201_v11 = vld [vmem:[#allocation31_spill] sm:$0xff] }
  0xf5   : > { %6466 = vmatmul.mubr.msk.bf16.gmra.mrb[20].mxu1 %vm1460_vm1, %v2480_v13  ;;  %v6022_v13 = vcombine.low %v4918_v62, %v4919_v37  ;;  %v5034_v61 = vrot.slane %v6021_v58, 1  ;;  %v8514_v7 = vcombine.low %v8491_v4, %v8499_v34  ;;  %v5039_v40 = vrot.slane %v6024_v35, 1  ;;  %v2740_v39 = vld [vmem:[%s7300_s21 + $0x18] sm:$0xf]  ;;  %v4440_v33 = vld [vmem:[%s7300_s21 + $0x68] sm:$0xf] }
  0xf6   : > { %6469 = vmatprep.mubr.msk.bf16.mxu1 %vm1460_vm1, %v2482_v20  ;;  %v6023_v20 = vcombine.low %v4920_v30, %v4921_v19  ;;  %v6025_v2 = vcombine.low %v4924_v28, %v4925_v0  ;;  %v4927_v62 = vmul.bf16 %v8391_v12, %v9177_v15  ;;  %v4928_v52 = vmul.bf16 %v8415_v59, %v7742_v24  ;;  %v9198_v15 = vld [vmem:[#allocation5_spill] sm:$0xff] }
  0xf7   : > { %v5035_v51 = vrot.slane %v6022_v13, 1  ;;  %v4929_v1 = vmul.bf16 %v8418_v6, %v7750_v56  ;;  %v4608_v12 = vshll.u32 %v8514_v7, 16  ;;  %v2770_v26 = vmul.bf16 %v2738_v22, %v9198_v15  ;;  %v9199_v56 = vld [vmem:[#allocation6_spill] sm:$0xff]  ;;  %v9205_v0 = vld [vmem:[#allocation33_spill] sm:$0xff] }
  0xf8   : > { %v5037_v46 = vrot.slane %v6023_v20, 1  ;;  %v5041_v37 = vrot.slane %v6025_v2, 1  ;;  %v6026_v58 = vcombine.low %v4926_v3, %v4927_v62  ;;  %v4930_v24 = vmul.bf16 %v8434_v5, %v7781_v10  ;;  %v2741_v13 = vld [vmem:[%s7300_s21 + $0x1c] sm:$0xf]  ;;  %v9207_v2 = vld [vmem:[#allocation35_spill] sm:$0xff] }
  0xf9   : > { %v8525_v8 = vsel %vm2455_vm9, %v5034_v61, %v5035_v51  ;;  %v6027_v30 = vcombine.low %v4928_v52, %v4929_v1  ;;  %v4931_v59 = vmul.bf16 %v8437_v43, %v7791_v53  ;;  %v2771_v6 = vmul.bf16 %v2739_v42, %v9199_v56  ;;  %v4441_v61 = vld [vmem:[%s7300_s21 + $0x6c] sm:$0xf]  ;;  %v9200_v20 = vld [vmem:[#allocation30_spill] sm:$0xff]  ;;  %v2743_v52 = vld [vmem:[%s7300_s21 + $0x24] sm:$0xf] }
  0xfa   : > { %v8530_v27 = vsel %vm2455_vm9, %v5035_v51, %v5037_v46  ;;  %v8542_v48 = vsel %vm2455_vm9, %v5037_v46, %v5039_v40  ;;  %v8553_v17 = vsel %vm2455_vm9, %v5039_v40, %v5041_v37  ;;  %v4932_v16 = vmul.bf16 %v8453_v47, %v9200_v20  ;;  %v9202_v43 = vld [vmem:[#allocation36_spill] sm:$0xff]  ;;  %v9206_v22 = vld [vmem:[#allocation34_spill] sm:$0xff]  ;;  %v4442_v1 = vld [vmem:[%s7300_s21 + $0x70] sm:$0xf] }
  0xfb   : > { %6620 = vmatmul.mubr.msk.bf16.gmra.mrb[4].mxu0 %vm1460_vm1, %v4571_v49  ;;  %v4602_v49 = vrot.slane %v4600_v38, 1  ;;  %v5043_v38 = vrot.slane %v6026_v58, 1  ;;  %v5045_v18 = vrot.slane %v6027_v30, 1  ;;  %v6028_v45 = vcombine.low %v4930_v24, %v4931_v59  ;;  %v9203_v46 = vld [vmem:[#allocation32_spill] sm:$0xff] }
  0xfc   : > { %6623 = vmatprep.mubr.msk.bf16.mxu0 %vm1460_vm1, %v4579_v14  ;;  %v4438_v14 = vld [vmem:[%s7300_s21 + $0x60] sm:$0xf]  ;;  %v4933_v10 = vmul.bf16 %v8458_v23, %v9201_v11  ;;  %v4610_v5 = vrot.slane %v4608_v12, 1  ;;  %v2772_v55 = vmul.bf16 %v2740_v39, %v9202_v43  ;;  %v4934_v23 = vmul.bf16 %v8491_v4, %v9203_v46  ;;  %v2744_v12 = vld [vmem:[%s7300_s21 + $0x28] sm:$0xf]  ;;  %v9214_v43 = vld [vmem:[#allocation42_spill] sm:$0xff] }
  0xfd   : > { %6470 = vmatmul.mubr.msk.bf16.gmra.mrb[24].mxu1 %vm1460_vm1, %v2484_v21  ;;  %v2488_v21 = vsel %vm2455_vm9, %v2485_v29, %v2487_v36  ;;  %v8560_v19 = vcombine.low %v4438_v14, %v4439_v32  ;;  %v4612_v29 = vshrl.u32 %v8514_v7, 16  ;;  %v4606_v53 = vor.u32 %v4604_v57, %v4602_v49  ;;  %v9204_v57 = vld [vmem:[#allocation37_spill] sm:$0xff]  ;;  %v9208_v58 = vld [vmem:[#allocation40_spill] sm:$0xff] }
  0xfe   : > { %6473 = vmatprep.mubr.msk.bf16.mxu1 %vm1460_vm1, %v2486_v25  ;;  %v8574_v54 = vsel %vm2455_vm9, %v5041_v37, %v5043_v38  ;;  %v8578_v7 = vsel %vm2455_vm9, %v5043_v38, %v5045_v18  ;;  %v5047_v47 = vrot.slane %v6028_v45, 1  ;;  %v6029_v51 = vcombine.low %v4932_v16, %v4933_v10  ;;  %v2745_v30 = vld [vmem:[%s7300_s21 + $0x2c] sm:$0xf]  ;;  %v9211_v45 = vld [vmem:[#allocation39_spill] sm:$0xff] }
  0xff   : > { %v2773_v35 = vmul.bf16 %v2741_v13, %v9204_v57  ;;  %v8585_v28 = vcombine.low %v4440_v33, %v4441_v61  ;;  %v4935_v25 = vmul.bf16 %v8499_v34, %v9205_v0  ;;  %v4936_v40 = vmul.bf16 %v4438_v14, %v9206_v22  ;;  %v9210_v13 = vld [vmem:[#allocation41_spill] sm:$0xff]  ;;  %v9212_v16 = vld [vmem:[#allocation43_spill] sm:$0xff]  ;;  %v9213_v10 = vld [vmem:[#allocation44_spill] sm:$0xff] }
 0x100   : > { %v8592_v36 = vsel %vm2455_vm9, %v5045_v18, %v5047_v47  ;;  %v5049_v4 = vrot.slane %v6029_v51, 1  ;;  %v4937_v3 = vmul.bf16 %v4439_v32, %v9207_v2  ;;  %v4603_v42 = vsel %vm1321_vm0, %v4598_v60, %v4602_v49  ;;  %v9209_v49 = vld [vmem:[#allocation38_spill] sm:$0xff]  ;;  %v9216_v57 = vld [vmem:[#allocation11_spill] sm:$0xff]  ;;  %v2747_v2 = vld [vmem:[%s7300_s21 + $0x34] sm:$0xf] }
 0x101   : > { %v4611_v62 = vsel %vm1321_vm0, %v4606_v53, %v4610_v5  ;;  %v5854_v37 = vcombine.low %v2770_v26, %v2771_v6  ;;  %v6030_v34 = vcombine.low %v4934_v23, %v4935_v25  ;;  %v4938_v32 = vmul.bf16 %v4440_v33, %v9208_v58  ;;  %v4444_v6 = vld [vmem:[%s7300_s21 + $0x78] sm:$0xf]  ;;  %v9215_v23 = vld [vmem:[#allocation45_spill] sm:$0xff]  ;;  %v4449_v58 = vld [vmem:[%s7300_s21 + $0x8c] sm:$0xf] }
 0x102   : > { %v8603_v15 = vsel %vm2455_vm9, %v5047_v47, %v5049_v4  ;;  %v6031_v14 = vcombine.low %v4936_v40, %v4937_v3  ;;  %v4620_v39 = vshrl.u32 %v8560_v19, 16  ;;  %v4624_v60 = vshll.u32 %v8585_v28, 16  ;;  %v9217_v25 = vld [vmem:[#allocation46_spill] sm:$0xff]  ;;  %v2746_v40 = vld [vmem:[%s7300_s21 + $0x30] sm:$0xf] }
 0x103   : > { %6624 = vmatmul.mubr.msk.bf16.gmra.mrb[8].mxu0 %vm1460_vm1, %v8483_v63  ;;  %v4616_v63 = vshll.u32 %v8560_v19, 16  ;;  %v5051_v24 = vrot.slane %v6030_v34, 1  ;;  %v5855_v56 = vcombine.low %v2772_v55, %v2773_v35  ;;  %v4939_v18 = vmul.bf16 %v4441_v61, %v9210_v13 }
 0x104   : > { %6627 = vmatprep.mubr.msk.bf16.mxu0 %vm1460_vm1, %v4595_v41  ;;  %v2742_v41 = vld [vmem:[%s7300_s21 + $0x20] sm:$0xf]  ;;  %v5053_v38 = vrot.slane %v6031_v14, 1  ;;  %v2775_v20 = vmul.bf16 %v2743_v52, %v9211_v45  ;;  %v2776_v19 = vmul.bf16 %v2744_v12, %v9212_v16  ;;  %v2777_v53 = vmul.bf16 %v2745_v30, %v9213_v10  ;;  %v4448_v14 = vld [vmem:[%s7300_s21 + $0x88] sm:$0xf]  ;;  %v9221_v45 = vld [vmem:[#allocation49_spill] sm:$0xff] }
 0x105   : > { %6474 = vmatmul.mubr.msk.bf16.gmra.mrb[28].mxu1 %vm1460_vm1, %v2488_v21  ;;  %v4443_v21 = vld [vmem:[%s7300_s21 + $0x74] sm:$0xf]  ;;  %v2774_v26 = vmul.bf16 %v2742_v41, %v9209_v49  ;;  %v4618_v59 = vrot.slane %v4616_v63, 1  ;;  %v8617_v11 = vsel %vm2455_vm9, %v5049_v4, %v5051_v24  ;;  %v6032_v61 = vcombine.low %v4938_v32, %v4939_v18  ;;  %v9219_v49 = vld [vmem:[#allocation48_spill] sm:$0xff] }
 0x106   : > { %6479 = vmatprep.mubr.msk.bf16.mxu1 %vm1460_vm1, %v5853_v31  ;;  %v4614_v31 = vor.u32 %v4612_v29, %v4610_v5  ;;  %v4445_v29 = vld [vmem:[%s7300_s21 + $0x7c] sm:$0xf]  ;;  %v5999_v33 = vcombine.low %v4442_v1, %v4443_v21  ;;  %v8622_v5 = vsel %vm2455_vm9, %v5051_v24, %v5053_v38  ;;  %v4940_v55 = vmul.bf16 %v4442_v1, %v9214_v43  ;;  %v4446_v1 = vld [vmem:[%s7300_s21 + $0x80] sm:$0xf]  ;;  %v9220_v30 = vld [vmem:[#allocation12_spill] sm:$0xff] }
 0x107   : > { %v4622_v47 = vor.u32 %v4620_v39, %v4618_v59  ;;  %v4626_v51 = vrot.slane %v4624_v60, 1  ;;  %v8626_v46 = vcombine.low %v4444_v6, %v4445_v29  ;;  %v4941_v63 = vmul.bf16 %v4443_v21, %v9215_v23  ;;  %v4447_v21 = vld [vmem:[%s7300_s21 + $0x84] sm:$0xf] }
 0x108   : > { %v4628_v35 = vshrl.u32 %v8585_v28, 16  ;;  %v5055_v0 = vrot.slane %v6032_v61, 1  ;;  %v4942_v41 = vmul.bf16 %v4444_v6, %v9217_v25  ;;  %v4619_v4 = vsel %vm1321_vm0, %v4614_v31, %v4618_v59  ;;  %v9222_v61 = vld [vmem:[#allocation15_spill] sm:$0xff] }
 0x109   : > { %v4632_v22 = vshll.u32 %v5999_v33, 16  ;;  %v6033_v3 = vcombine.low %v4940_v55, %v4941_v63  ;;  %v5857_v52 = vcombine.low %v2776_v19, %v2777_v53  ;;  %v4636_v34 = vshrl.u32 %v5999_v33, 16  ;;  %v9223_v55 = vld [vmem:[#allocation9_spill] sm:$0xff] }
 0x10a   : > { %v8640_v28 = vsel %vm2455_vm9, %v5053_v38, %v5055_v0  ;;  %v4627_v12 = vsel %vm1321_vm0, %v4622_v47, %v4626_v51  ;;  %v4640_v31 = vshll.u32 %v8626_v46, 16  ;;  %v4630_v60 = vor.u32 %v4628_v35, %v4626_v51  ;;  %v2749_v38 = vld [vmem:[%s7300_s21 + $0x3c] sm:$0xf]  ;;  %v4450_v63 = vld [vmem:[%s7300_s21 + $0x90] sm:$0x1] }
 0x10b   : > { %6628 = vmatmul.mubr.msk.bf16.gmra.mrb[12].mxu0 %vm1460_vm1, %v4603_v42  ;;  %v9218_v42 = vld [vmem:[#allocation47_spill] sm:$0xff]  ;;  %v5057_v32 = vrot.slane %v6033_v3, 1  ;;  %v4944_v24 = vmul.bf16 %v4446_v1, %v9220_v30  ;;  %v4945_v59 = vmul.bf16 %v4447_v21, %v9191_v9  ;;  %v6001_v6 = vcombine.low %v4446_v1, %v4447_v21  ;;  %v9224_v51 = vld [vmem:[#allocation10_spill] sm:$0xff]  ;;  %v2752_v1 = vld [vmem:[%s7300_s21 + $0x48] sm:$0xf] }
 0x10c   : > { %6631 = vmatprep.mubr.msk.bf16.mxu0 %vm1460_vm1, %v4611_v62  ;;  %v4943_v62 = vmul.bf16 %v4445_v29, %v9218_v42  ;;  %v2748_v29 = vld [vmem:[%s7300_s21 + $0x38] sm:$0xf]  ;;  %v6002_v33 = vcombine.low %v4448_v14, %v4449_v58  ;;  %v4946_v19 = vmul.bf16 %v4448_v14, %v9192_v50  ;;  %v4642_v10 = vrot.slane %v4640_v31, 1  ;;  %v2750_v42 = vld [vmem:[%s7300_s21 + $0x40] sm:$0xf] }
 0x10d   : > { %6480 = vmatmul.mubr.msk.bf16.vlgmr.msra.gmra.mrb[0].mxu1 %vm1460_vm1, %v5854_v37  ;;  %v5856_v37 = vcombine.low %v2774_v26, %v2775_v20  ;;  %v2778_v26 = vmul.bf16 %v2746_v40, %v9219_v49  ;;  %v8653_v13 = vsel %vm2455_vm9, %v5055_v0, %v5057_v32  ;;  %v2779_v20 = vmul.bf16 %v2747_v2, %v9221_v45  ;;  %v9225_v14 = vld [vmem:[#allocation14_spill] sm:$0xff]  ;;  %v9226_v49 = vld [vmem:[#allocation52_spill] sm:$0xff] }
 0x10e   : > { %6682 = vmatpush3.bf16.msra.mxu1 %v9216_v57  ;;  %6483 = vmatprep.mubr.msk.bf16.mxu1 %vm1460_vm1, %v5855_v56  ;;  %v6034_v39 = vcombine.low %v4942_v41, %v4943_v62  ;;  %v4634_v56 = vrot.slane %v4632_v22, 1  ;;  %v6035_v16 = vcombine.low %v4944_v24, %v4945_v59  ;;  %v4947_v43 = vmul.bf16 %v4449_v58, %v9222_v61  ;;  %v9227_v24 = vld [vmem:[#allocation16_spill] sm:$0xff]  ;;  %v2757_v61 = vld [vmem:[%s7300_s21 + $0x5c] sm:$0xf] }
 0x10f   : > { %v2780_v47 = vmul.bf16 %v2748_v29, %v9223_v55  ;;  %v2781_v23 = vmul.bf16 %v2749_v38, %v9224_v51  ;;  %v4644_v50 = vshrl.u32 %v8626_v46, 16  ;;  %v4648_v35 = vshll.u32 %v6001_v6, 16  ;;  %v9230_v51 = vld [vmem:[#allocation55_spill] sm:$0xff] }
 0x110   : > { %v5059_v18 = vrot.slane %v6034_v39, 1  ;;  %v4638_v9 = vor.u32 %v4636_v34, %v4634_v56  ;;  %v5061_v57 = vrot.slane %v6035_v16, 1  ;;  %v6036_v0 = vcombine.low %v4946_v19, %v4947_v43  ;;  %v2754_v19 = vld [vmem:[%s7300_s21 + $0x50] sm:$0xf] }
 0x111   : > { %v4948_v25 = vmul.bf16 %v4450_v63, %v8056_v44  ;;  %v4635_v41 = vsel %vm1321_vm0, %v4630_v60, %v4634_v56  ;;  %v4652_v22 = vshrl.u32 %v6001_v6, 16  ;;  %v4656_v3 = vshll.u32 %v6002_v33, 16  ;;  %v2753_v44 = vld [vmem:[%s7300_s21 + $0x4c] sm:$0xf]  ;;  %v9228_v56 = vld [vmem:[#allocation53_spill] sm:$0xff] }
 0x112   : > { %v8660_v53 = vsel %vm2455_vm9, %v5057_v32, %v5059_v18  ;;  %v8671_v40 = vsel %vm2455_vm9, %v5059_v18, %v5061_v57  ;;  %v4643_v2 = vsel %vm1321_vm0, %v4638_v9, %v4642_v10  ;;  %v5063_v62 = vrot.slane %v6036_v0, 1  ;;  %v2755_v9 = vld [vmem:[%s7300_s21 + $0x54] sm:$0xf] }
 0x113   : > { %6632 = vmatmul.mubr.msk.bf16.gmra.mrb[16].mxu0 %vm1460_vm1, %v4619_v4  ;;  %v5858_v4 = vcombine.low %v2778_v26, %v2779_v20  ;;  %v5859_v46 = vcombine.low %v2780_v47, %v2781_v23  ;;  %v4650_v34 = vrot.slane %v4648_v35, 1  ;;  %v4646_v31 = vor.u32 %v4644_v50, %v4642_v10  ;;  %v2756_v10 = vld [vmem:[%s7300_s21 + $0x58] sm:$0xf]  ;;  %v9232_v50 = vld [vmem:[#allocation57_spill] sm:$0xff] }
 0x114   : > { %6635 = vmatprep.mubr.msk.bf16.mxu0 %vm1460_vm1, %v4627_v12  ;;  %v8680_v21 = vsel %vm2455_vm9, %v5061_v57, %v5063_v62  ;;  %v2782_v58 = vmul.bf16 %v2750_v42, %v9225_v14  ;;  %v6003_v32 = vcombine.low %v4450_v63, %v4450_v63  ;;  %v4658_v60 = vrot.slane %v4656_v3, 1  ;;  %v9231_v63 = vld [vmem:[#allocation56_spill] sm:$0xff]  ;;  %v9233_v42 = vld [vmem:[#allocation58_spill] sm:$0xff]  ;;  %v2762_v14 = vld [vmem:[%s7300_s21 + $0x70] sm:$0xf] }
 0x115   : > { %6484 = vmatmul.mubr.msk.bf16.gmra.mrb[4].mxu1 %vm1460_vm1, %v5856_v37  ;;  %v6037_v37 = vcombine.low %v4948_v25, %v4948_v25  ;;  %v4654_v39 = vor.u32 %v4652_v22, %v4650_v34  ;;  %v2784_v59 = vmul.bf16 %v2752_v1, %v9227_v24  ;;  %v2785_v6 = vmul.bf16 %v2753_v44, %v9228_v56  ;;  %v2759_v22 = vld [vmem:[%s7300_s21 + $0x64] sm:$0xf]  ;;  %v2761_v3 = vld [vmem:[%s7300_s21 + $0x6c] sm:$0xf]  ;;  %v9239_v24 = vld [vmem:[#allocation62_spill] sm:$0xff] }
 0x116   : > { %6487 = vmatprep.mubr.msk.bf16.mxu1 %vm1460_vm1, %v5857_v52  ;;  %v2751_v52 = vld [vmem:[%s7300_s21 + $0x44] sm:$0xf]  ;;  %v4651_v29 = vsel %vm1321_vm0, %v4646_v31, %v4650_v34  ;;  %v4660_v38 = vshrl.u32 %v6002_v33, 16  ;;  %v4664_v18 = vshll.u32 %v6003_v32, 16  ;;  %v9229_v33 = vld [vmem:[#allocation54_spill] sm:$0xff]  ;;  %v2787_v23 = vmul.bf16 %v2755_v9, %v9230_v51  ;;  %v9236_v1 = vld [vmem:[#allocation60_spill] sm:$0xff] }
 0x117   : > { %v5065_v12 = vrot.slane %v6037_v37, 1  ;;  %v2783_v26 = vmul.bf16 %v2751_v52, %v9226_v49  ;;  %v4659_v45 = vsel %vm1321_vm0, %v4654_v39, %v4658_v60  ;;  %v5861_v16 = vcombine.low %v2784_v59, %v2785_v6  ;;  %v9234_v37 = vld [vmem:[#allocation59_spill] sm:$0xff]  ;;  %v9235_v52 = vld [vmem:[#allocation18_spill] sm:$0xff]  ;;  %v9237_v39 = vld [vmem:[#allocation21_spill] sm:$0xff] }
 0x118   : > { %v4662_v43 = vor.u32 %v4660_v38, %v4658_v60  ;;  %v4666_v55 = vrot.slane %v4664_v18, 1  ;;  %v2786_v47 = vmul.bf16 %v2754_v19, %v9229_v33  ;;  %v2788_v57 = vmul.bf16 %v2756_v10, %v9231_v63  ;;  %v2765_v32 = vld [vmem:[%s7300_s21 + $0x7c] sm:$0xf]  ;;  %v9240_v56 = vld [vmem:[#allocation63_spill] sm:$0xff] }
 0x119   : > { %v8687_v30 = vsel %vm2455_vm9, %v5063_v62, %v5065_v12  ;;  %v5860_v20 = vcombine.low %v2782_v58, %v2783_v26  ;;  %v2789_v35 = vmul.bf16 %v2757_v61, %v9232_v50  ;;  %v2793_v44 = vmul.bf16 %v2761_v3, %v9236_v1  ;;  %v2763_v58 = vld [vmem:[%s7300_s21 + $0x74] sm:$0xf]  ;;  %v9238_v49 = vld [vmem:[#allocation22_spill] sm:$0xff]  ;;  %v9242_v10 = vld [vmem:[#allocation7_spill] sm:$0xff] }
 0x11a   : > { %v4667_v0 = vsel %vm1321_vm0, %v4662_v43, %v4666_v55  ;;  %v5862_v25 = vcombine.low %v2786_v47, %v2787_v23  ;;  %v2794_v60 = vmul.bf16 %v2762_v14, %v9237_v39  ;;  %v2795_v26 = vmul.bf16 %v2763_v58, %v9238_v49  ;;  %v9243_v43 = vld [vmem:[#allocation8_spill] sm:$0xff]  ;;  %v9244_v33 = vld [vmem:[#allocation19_spill] sm:$0xff]  ;;  %v7102_v58 = vld [vmem:[%s7300_s21 + $0x78] sm:$0xf] }
 0x11b   : > { %6636 = vmatmul.mubr.msk.bf16.gmra.mrb[20].mxu0 %vm1460_vm1, %v4635_v41  ;;  %v5863_v41 = vcombine.low %v2788_v57, %v2789_v35  ;;  %v2797_v6 = vmul.bf16 %v2765_v32, %v9240_v56  ;;  %v7097_v23 = vld [vmem:[%s7300_s21 + $0x64] sm:$0xf] }
 0x11c   : > { %6639 = vmatprep.mubr.msk.bf16.mxu0 %vm1460_vm1, %v4643_v2  ;;  %v2760_v2 = vld [vmem:[%s7300_s21 + $0x68] sm:$0xf]  ;;  %v5866_v18 = vcombine.low %v2794_v60, %v2795_v26  ;;  %v9245_v50 = vld [vmem:[#allocation27_spill] sm:$0xff] }
 0x11d   : > { %6488 = vmatmul.mubr.msk.bf16.gmra.mrb[8].mxu1 %vm1460_vm1, %v5858_v4  ;;  %v2758_v4 = vld [vmem:[%s7300_s21 + $0x60] sm:$0xf]  ;;  %v2792_v34 = vmul.bf16 %v2760_v2, %v9235_v52  ;;  %v3327_v35 = vshll.u32 %v9245_v50, 16  ;;  %v7099_v2 = vld [vmem:[%s7300_s21 + $0x6c] sm:$0xf] }
 0x11e   : > { %6491 = vmatprep.mubr.msk.bf16.mxu1 %vm1460_vm1, %v5859_v46  ;;  %v2790_v62 = vmul.bf16 %v2758_v4, %v9233_v42  ;;  %v2791_v46 = vmul.bf16 %v2759_v22, %v9234_v37  ;;  %v7098_v22 = vld [vmem:[%s7300_s21 + $0x68] sm:$0xf]  ;;  %v7100_v37 = vld [vmem:[%s7300_s21 + $0x70] sm:$0xf]  ;;  %v7105_v26 = vld [vmem:[%s7300_s21 + $0x84] sm:$0xf] }
 0x11f   : > { %v5865_v31 = vcombine.low %v2792_v34, %v2793_v44  ;;  %v3329_v4 = vrot.slane %v3327_v35, 1  ;;  %v5898_v3 = vcombine.low %v7098_v22, %v7099_v2  ;;  %v8818_v22 = vld [vmem:[%s8970_s3] ss:$0 sm:$0xff] }
 0x120   : > { %v5864_v12 = vcombine.low %v2790_v62, %v2791_v46  ;;  %v7101_v46 = vld [vmem:[%s7300_s21 + $0x74] sm:$0xf] }
 0x121   : > { %v5899_v52 = vcombine.low %v7100_v37, %v7101_v46  ;;  %v3343_v34 = vshll.u32 %v5898_v3, 16 }
 0x123   : > { %6640 = vmatmul.mubr.msk.bf16.gmra.mrb[24].mxu0 %vm1460_vm1, %v4651_v29  ;;  %v7094_v29 = vld [vmem:[%s7300_s21 + $0x50] sm:$0xf]  ;;  %v3345_v14 = vrot.slane %v3343_v34, 1 }
 0x124   : > { %6643 = vmatprep.mubr.msk.bf16.mxu0 %vm1460_vm1, %v4659_v45 }
 0x125   : > { %6492 = vmatmul.mubr.msk.bf16.gmra.mrb[12].mxu1 %vm1460_vm1, %v5860_v20  ;;  %v2767_v20 = vld [vmem:[%s7300_s21 + $0x84] sm:$0xf] }
 0x126   : > { %6495 = vmatprep.mubr.msk.bf16.mxu1 %vm1460_vm1, %v5861_v16  ;;  %v9241_v16 = vld [vmem:[#allocation17_spill] sm:$0xff]  ;;  %v2799_v55 = vmul.bf16 %v2767_v20, %v9243_v43 }
 0x127   : > { %v3315_v19 = vshrl.u32 %v9241_v16, 16 }
 0x129   : > { %v3317_v47 = vor.u32 %v3315_v19, %v9244_v33 }
 0x12b   : > { %6644 = vmatmul.mubr.msk.bf16.gmra.mrb[28].mxu0 %vm1460_vm1, %v4667_v0 }
 0x12c   : > { %6649 = vmatprep.mubr.msk.bf16.mxu0 %vm1460_vm1, %v8525_v8  ;;  %v2764_v8 = vld [vmem:[%s7300_s21 + $0x78] sm:$0xf] }
 0x12d   : > { %6496 = vmatmul.mubr.msk.bf16.gmra.mrb[16].mxu1 %vm1460_vm1, %v5862_v25  ;;  %v2796_v59 = vmul.bf16 %v2764_v8, %v9239_v24  ;;  %v3331_v25 = vshrl.u32 %v9245_v50, 16  ;;  %v7103_v8 = vld [vmem:[%s7300_s21 + $0x7c] sm:$0xf] }
 0x12e   : > { %6499 = vmatprep.mubr.msk.bf16.mxu1 %vm1460_vm1, %v5863_v41  ;;  %v5900_v32 = vcombine.low %v7102_v58, %v7103_v8 }
 0x12f   : > { %v5867_v45 = vcombine.low %v2796_v59, %v2797_v6  ;;  %v3333_v62 = vor.u32 %v3331_v25, %v3329_v4  ;;  %v3355_v6 = vshrl.u32 %v5899_v52, 16  ;;  %v8813_v25 = vld [vmem:[%s8969_s2] ss:$0 sm:$0xff] }
 0x130   : > { %v3359_v59 = vshll.u32 %v5900_v32, 16 }
 0x133   : > { %6650 = vmatmul.mubr.msk.bf16.vlgmr.msra.gmra.mrb[0].mxu0 %vm1460_vm1, %v8530_v27  ;;  %v7095_v27 = vld [vmem:[%s7300_s21 + $0x54] sm:$0xf] }
 0x134   : > { %6653 = vmatprep.mubr.msk.bf16.mxu0 %vm1460_vm1, %v8542_v48  ;;  %v5895_v38 = vcombine.low %v7094_v29, %v7095_v27  ;;  %v2766_v48 = vld [vmem:[%s7300_s21 + $0x80] sm:$0xf]  ;;  %v3363_v29 = vshrl.u32 %v5900_v32, 16 }
 0x135   : > { %6500 = vmatmul.mubr.msk.bf16.gmra.mrb[20].mxu1 %vm1460_vm1, %v5864_v12  ;;  %v2798_v61 = vmul.bf16 %v2766_v48, %v9242_v10  ;;  %v3347_v12 = vshrl.u32 %v5898_v3, 16 }
 0x136   : > { %6503 = vmatprep.mubr.msk.bf16.mxu1 %vm1460_vm1, %v5865_v31  ;;  %v3319_v9 = vshll.u32 %v5895_v38, 16  ;;  %v3351_v31 = vshll.u32 %v5899_v52, 16 }
 0x137   : > { %v5868_v57 = vcombine.low %v2798_v61, %v2799_v55  ;;  %v3349_v60 = vor.u32 %v3347_v12, %v3345_v14 }
 0x138   : > { %v3321_v51 = vrot.slane %v3319_v9, 1  ;;  %v3353_v49 = vrot.slane %v3351_v31, 1 }
 0x13a   : > { %v3322_v0 = vsel %vm1321_vm0, %v3317_v47, %v3321_v51 }
 0x13b   : > { %6654 = vmatmul.mubr.msk.bf16.gmra.mrb[4].mxu0 %vm1460_vm1, %v8553_v17  ;;  %v7096_v17 = vld [vmem:[%s7300_s21 + $0x60] sm:$0xf] }
 0x13c   : > { %6657 = vmatprep.mubr.msk.bf16.mxu0 %vm1460_vm1, %v8574_v54  ;;  %v5897_v63 = vcombine.low %v7096_v17, %v7097_v23  ;;  %v3323_v54 = vshrl.u32 %v5895_v38, 16  ;;  %v3361_v38 = vrot.slane %v3359_v59, 1 }
 0x13d   : > { %6504 = vmatmul.mubr.msk.bf16.gmra.mrb[24].mxu1 %vm1460_vm1, %v5866_v18  ;;  %v3357_v18 = vor.u32 %v3355_v6, %v3353_v49 }
 0x13e   : > { %6507 = vmatprep.mubr.msk.bf16.mxu1 %vm1460_vm1, %v5867_v45  ;;  %v3335_v41 = vshll.u32 %v5897_v63, 16  ;;  %v3325_v42 = vor.u32 %v3323_v54, %v3321_v51  ;;  %v7106_v45 = vld [vmem:[%s7300_s21 + $0x88] sm:$0x1]  ;;  %v3365_v20 = vor.u32 %v3363_v29, %v3361_v38 }
 0x13f   : > { %v5902_v48 = vcombine.low %v7106_v45, %v7106_v45  ;;  %v3362_v19 = vsel %vm1321_vm0, %v3357_v18, %v3361_v38 }
 0x140   : > { %v3330_v1 = vsel %vm1321_vm0, %v3325_v42, %v3329_v4 }
 0x141   : > { %v3375_v9 = vshll.u32 %v5902_v48, 16 }
 0x143   : > { %6658 = vmatmul.mubr.msk.bf16.gmra.mrb[8].mxu0 %vm1460_vm1, %v8578_v7  ;;  %v3337_v7 = vrot.slane %v3335_v41, 1  ;;  %v3377_v61 = vrot.slane %v3375_v9, 1 }
 0x144   : > { %6661 = vmatprep.mubr.msk.bf16.mxu0 %vm1460_vm1, %v8592_v36  ;;  %v3339_v36 = vshrl.u32 %v5897_v63, 16 }
 0x145   : > { %6508 = vmatmul.mubr.msk.bf16.gmra.mrb[28].mxu1 %vm1460_vm1, %v5868_v57  ;;  %v3338_v44 = vsel %vm1321_vm0, %v3333_v62, %v3337_v7 }
 0x146   : > { %6529 = vmatprep.mubr.msk.bf16.mxu1 %vm1460_vm1, %v3322_v0  ;;  %v3341_v39 = vor.u32 %v3339_v36, %v3337_v7 }
 0x148   : > { %v3346_v56 = vsel %vm1321_vm0, %v3341_v39, %v3345_v14 }
 0x14b   : > { %6662 = vmatmul.mubr.msk.bf16.gmra.mrb[12].mxu0 %vm1460_vm1, %v8603_v15  ;;  %v7104_v15 = vld [vmem:[%s7300_s21 + $0x80] sm:$0xf] }
 0x14c   : > { %6665 = vmatprep.mubr.msk.bf16.mxu0 %vm1460_vm1, %v8617_v11  ;;  %v5901_v24 = vcombine.low %v7104_v15, %v7105_v26  ;;  %v3354_v11 = vsel %vm1321_vm0, %v3349_v60, %v3353_v49 }
 0x14d   : > { %6530 = vmatmul.mubr.msk.bf16.vlgmr.msra.gmra.mrb[16].mxu1 %vm1460_vm1, %v3330_v1 }
 0x14e   : > { %6533 = vmatprep.mubr.msk.bf16.mxu1 %vm1460_vm1, %v3338_v44  ;;  %v3367_v27 = vshll.u32 %v5901_v24, 16 }
 0x150   : > { %v3369_v16 = vrot.slane %v3367_v27, 1 }
 0x152   : > { %v3370_v10 = vsel %vm1321_vm0, %v3365_v20, %v3369_v16 }
 0x153   : > { %6666 = vmatmul.mubr.msk.bf16.gmra.mrb[16].mxu0 %vm1460_vm1, %v8622_v5  ;;  %v3371_v5 = vshrl.u32 %v5901_v24, 16 }
 0x154   : > { %6669 = vmatprep.mubr.msk.bf16.mxu0 %vm1460_vm1, %v8640_v28 }
 0x155   : > { %6534 = vmatmul.mubr.msk.bf16.gmra.mrb[20].mxu1 %vm1460_vm1, %v3346_v56  ;;  %v3373_v28 = vor.u32 %v3371_v5, %v3369_v16 }
 0x156   : > { %6537 = vmatprep.mubr.msk.bf16.mxu1 %vm1460_vm1, %v3354_v11 }
 0x157   : > { %v3378_v43 = vsel %vm1321_vm0, %v3373_v28, %v3377_v61 }
 0x15b   : > { %6670 = vmatmul.mubr.msk.bf16.gmra.mrb[20].mxu0 %vm1460_vm1, %v8653_v13 }
 0x15c   : > { %6673 = vmatprep.mubr.msk.bf16.mxu0 %vm1460_vm1, %v8660_v53 }
 0x15d   : > { %6538 = vmatmul.mubr.msk.bf16.gmra.mrb[24].mxu1 %vm1460_vm1, %v3362_v19 }
 0x15e   : > { %6541 = vmatprep.mubr.msk.bf16.mxu1 %vm1460_vm1, %v3370_v10 }
 0x163   : > { %6674 = vmatmul.mubr.msk.bf16.gmra.mrb[24].mxu0 %vm1460_vm1, %v8671_v40 }
 0x164   : > { %6677 = vmatprep.mubr.msk.bf16.mxu0 %vm1460_vm1, %v8680_v21 }
 0x165   : > { %6542 = vmatmul.mubr.msk.bf16.gmra.mrb[28].mxu1 %vm1460_vm1, %v3378_v43 }
 0x16b   : > { %6678 = vmatmul.mubr.msk.bf16.gmra.mrb[28].mxu0 %vm1460_vm1, %v8687_v30 }
 0x1e0   : > { %v6481_v13 = vpop.f32.mrb[0].mxu1 }
 0x1e1   : > { %v2970_v53 = vpop.f32.mrb[1].mxu1 }
 0x1e2   : > { %v6482_v55 = vpop.f32.mrb[2].mxu1 }
 0x1e3   : > { %v2973_v33 = vpop.f32.mrb[3].mxu1 }
 0x1e8   : > { %v6485_v47 = vpop.f32.mrb[4].mxu1 }
 0x1e9   : > { %v2986_v51 = vpop.f32.mrb[5].mxu1 }
 0x1ea   : > { %v6486_v17 = vpop.f32.mrb[6].mxu1 }
 0x1eb   : > { %v2989_v23 = vpop.f32.mrb[7].mxu1 }
 0x1f0   : > { %v6489_v63 = vpop.f32.mrb[8].mxu1 }
 0x1f1   : > { %v3002_v57 = vpop.f32.mrb[9].mxu1 }
 0x1f2   : > { %v6490_v50 = vpop.f32.mrb[10].mxu1 }
 0x1f3   : > { %v8800_v40 = vpop.f32.mrb[11].mxu1 }
 0x1f8   : > { %v8802_v21 = vpop.f32.mrb[12].mxu1 }
 0x1f9   : > { %v8804_v35 = vpop.f32.mrb[13].mxu1 }
 0x1fa   : > { %v8806_v54 = vpop.f32.mrb[14].mxu1 }
 0x1fb   : > { %v8808_v30 = vpop.f32.mrb[15].mxu1 }
 0x206   : > { %v6651_v0 = vpop.f32.mrb[0].mxu0 }
 0x207   : > { %v6683_v41 = vadd.f32 %v6651_v0, %v6481_v13  ;;  %v5155_v4 = vpop.f32.mrb[1].mxu0 }
 0x208   : > { %v6684_v2 = vadd.f32 %v5155_v4, %v2970_v53  ;;  %v6652_v3 = vpop.f32.mrb[2].mxu0 }
 0x209   : > { %v5323_v42 = vmul.f32 %v6683_v41, %v8813_v25  ;;  %v6685_v62 = vadd.f32 %v6652_v3, %v6482_v55  ;;  %v5158_v7 = vpop.f32.mrb[3].mxu0 }
 0x20a   : > { %v5321_v37 = vmul.f32 %v6684_v2, %v8813_v25  ;;  %v6686_v46 = vadd.f32 %v5158_v7, %v2973_v33 }
 0x20b   : > { %v5362_v52 = vadd.f32 %v8818_v22, %v5323_v42  ;;  %v5324_v34 = vmul.f32 %v6685_v62, %v8813_v25 }
 0x20c   : > { %v5360_v1 = vadd.f32 %v8818_v22, %v5321_v37  ;;  %v5322_v36 = vmul.f32 %v6686_v46, %v8813_v25 }
 0x20d   : > { %v5363_v44 = vadd.f32 %v8818_v22, %v5324_v34  ;;  %v5394_v14 = vmax.f32 %v5362_v52, 0.0 }
 0x20e   : > { %v5361_v12 = vadd.f32 %v8818_v22, %v5322_v36  ;;  %v6655_v31 = vpop.f32.mrb[4].mxu0  ;;  %v5392_v39 = vmax.f32 %v5360_v1, 0.0 }
 0x20f   : > { %v5395_v58 = vmax.f32 %v5363_v44, 0.0  ;;  %v6687_v8 = vadd.f32 %v6655_v31, %v6485_v47  ;;  %v5171_v32 = vpop.f32.mrb[5].mxu0 }
 0x210   : > { %v5393_v60 = vmax.f32 %v5361_v12, 0.0  ;;  %v6688_v49 = vadd.f32 %v5171_v32, %v2986_v51  ;;  %v6656_v15 = vpop.f32.mrb[6].mxu0 }
 0x211   : > { %v6135_v26 = vpack.c.bf16 %v5395_v58, %v5394_v14  ;;  %v5327_v24 = vmul.f32 %v6687_v8, %v8813_v25  ;;  %v6689_v59 = vadd.f32 %v6656_v15, %v6486_v17  ;;  %v5174_v56 = vpop.f32.mrb[7].mxu0 }
 0x212   : > { %v6130_v6 = vpack.c.bf16 %v5393_v60, %v5392_v39  ;;  %v5325_v11 = vmul.f32 %v6688_v49, %v8813_v25  ;;  %v6690_v29 = vadd.f32 %v5174_v56, %v2989_v23 }
 0x213   : > { %6207 = vst [vmem:[%s8833_s26 + $0x8] sm:$0xff] %v6135_v26   ;;  %v5366_v27 = vadd.f32 %v8818_v22, %v5327_v24  ;;  %v5328_v38 = vmul.f32 %v6689_v59, %v8813_v25 }
 0x214   : > { %6131 = vst [vmem:[%s8833_s26] sm:$0xff] %v6130_v6   ;;  %v5364_v18 = vadd.f32 %v8818_v22, %v5325_v11  ;;  %v5326_v45 = vmul.f32 %v6690_v29, %v8813_v25 }
 0x215   : > { %v5367_v48 = vadd.f32 %v8818_v22, %v5328_v38  ;;  %v5398_v19 = vmax.f32 %v5366_v27, 0.0 }
 0x216   : > { %v5365_v20 = vadd.f32 %v8818_v22, %v5326_v45  ;;  %v6659_v16 = vpop.f32.mrb[8].mxu0  ;;  %v5396_v28 = vmax.f32 %v5364_v18, 0.0 }
 0x217   : > { %v5399_v5 = vmax.f32 %v5367_v48, 0.0  ;;  %v6691_v9 = vadd.f32 %v6659_v16, %v6489_v63  ;;  %v5187_v10 = vpop.f32.mrb[9].mxu0 }
 0x218   : > { %v5397_v61 = vmax.f32 %v5365_v20, 0.0  ;;  %v6692_v43 = vadd.f32 %v5187_v10, %v3002_v57  ;;  %v6660_v13 = vpop.f32.mrb[10].mxu0 }
 0x219   : > { %v6145_v53 = vpack.c.bf16 %v5399_v5, %v5398_v19  ;;  %v5331_v55 = vmul.f32 %v6691_v9, %v8813_v25  ;;  %v6693_v33 = vadd.f32 %v6660_v13, %v6490_v50  ;;  %v5190_v47 = vpop.f32.mrb[11].mxu0 }
 0x21a   : > { %v6140_v51 = vpack.c.bf16 %v5397_v61, %v5396_v28  ;;  %v5329_v17 = vmul.f32 %v6692_v43, %v8813_v25  ;;  %v6694_v23 = vadd.f32 %v5190_v47, %v8800_v40 }
 0x21b   : > { %6209 = vst [vmem:[%s8833_s26 + $0x18] sm:$0xff] %v6145_v53   ;;  %v5370_v0 = vadd.f32 %v8818_v22, %v5331_v55  ;;  %v5332_v63 = vmul.f32 %v6693_v33, %v8813_v25 }
 0x21c   : > { %6208 = vst [vmem:[%s8833_s26 + $0x10] sm:$0xff] %v6140_v51   ;;  %v5368_v41 = vadd.f32 %v8818_v22, %v5329_v17  ;;  %v5330_v57 = vmul.f32 %v6694_v23, %v8813_v25 }
 0x21d   : > { %v5371_v4 = vadd.f32 %v8818_v22, %v5332_v63  ;;  %v5402_v3 = vmax.f32 %v5370_v0, 0.0 }
 0x21e   : > { %v5369_v50 = vadd.f32 %v8818_v22, %v5330_v57  ;;  %v6663_v2 = vpop.f32.mrb[12].mxu0  ;;  %v5400_v7 = vmax.f32 %v5368_v41, 0.0 }
 0x21f   : > { %v5403_v42 = vmax.f32 %v5371_v4, 0.0  ;;  %v6695_v62 = vadd.f32 %v6663_v2, %v8802_v21  ;;  %v5203_v40 = vpop.f32.mrb[13].mxu0 }
 0x220   : > { %v5401_v37 = vmax.f32 %v5369_v50, 0.0  ;;  %v6696_v46 = vadd.f32 %v5203_v40, %v8804_v35  ;;  %v6664_v52 = vpop.f32.mrb[14].mxu0  ;;  %v6531_v34 = vpop.f32.mrb[16].mxu1 }
 0x221   : > { %v6155_v1 = vpack.c.bf16 %v5403_v42, %v5402_v3  ;;  %v5335_v36 = vmul.f32 %v6695_v62, %v8813_v25  ;;  %v6697_v44 = vadd.f32 %v6664_v52, %v8806_v54  ;;  %v5206_v12 = vpop.f32.mrb[15].mxu0  ;;  %v3531_v31 = vpop.f32.mrb[17].mxu1 }
 0x222   : > { %v6150_v14 = vpack.c.bf16 %v5401_v37, %v5400_v7  ;;  %v5333_v58 = vmul.f32 %v6696_v46, %v8813_v25  ;;  %v6698_v21 = vadd.f32 %v5206_v12, %v8808_v30  ;;  %v6532_v8 = vpop.f32.mrb[18].mxu1 }
 0x223   : > { %6211 = vst [vmem:[%s8833_s26 + $0x28] sm:$0xff] %v6155_v1   ;;  %v5374_v32 = vadd.f32 %v8818_v22, %v5335_v36  ;;  %v5336_v35 = vmul.f32 %v6697_v44, %v8813_v25  ;;  %v3534_v39 = vpop.f32.mrb[19].mxu1 }
 0x224   : > { %6210 = vst [vmem:[%s8833_s26 + $0x20] sm:$0xff] %v6150_v14   ;;  %v5372_v60 = vadd.f32 %v8818_v22, %v5333_v58  ;;  %v5334_v49 = vmul.f32 %v6698_v21, %v8813_v25 }
 0x225   : > { %v5375_v54 = vadd.f32 %v8818_v22, %v5336_v35  ;;  %v5406_v24 = vmax.f32 %v5374_v32, 0.0 }
 0x226   : > { %v5373_v15 = vadd.f32 %v8818_v22, %v5334_v49  ;;  %v6667_v26 = vpop.f32.mrb[16].mxu0  ;;  %v5404_v6 = vmax.f32 %v5372_v60, 0.0 }
 0x227   : > { %v5407_v59 = vmax.f32 %v5375_v54, 0.0  ;;  %v6699_v30 = vadd.f32 %v6667_v26, %v6531_v34  ;;  %v5219_v56 = vpop.f32.mrb[17].mxu0 }
 0x228   : > { %v5405_v11 = vmax.f32 %v5373_v15, 0.0  ;;  %v6700_v29 = vadd.f32 %v5219_v56, %v3531_v31  ;;  %v6668_v27 = vpop.f32.mrb[18].mxu0  ;;  %v6535_v38 = vpop.f32.mrb[20].mxu1 }
 0x229   : > { %v6165_v18 = vpack.c.bf16 %v5407_v59, %v5406_v24  ;;  %v5339_v45 = vmul.f32 %v6699_v30, %v8813_v25  ;;  %v6701_v48 = vadd.f32 %v6668_v27, %v6532_v8  ;;  %v5222_v20 = vpop.f32.mrb[19].mxu0  ;;  %v3547_v16 = vpop.f32.mrb[21].mxu1 }
 0x22a   : > { %v6160_v19 = vpack.c.bf16 %v5405_v11, %v5404_v6  ;;  %v5337_v5 = vmul.f32 %v6700_v29, %v8813_v25  ;;  %v6702_v9 = vadd.f32 %v5222_v20, %v3534_v39  ;;  %v6536_v10 = vpop.f32.mrb[22].mxu1 }
 0x22b   : > { %6213 = vst [vmem:[%s8833_s26 + $0x38] sm:$0xff] %v6165_v18   ;;  %v5378_v28 = vadd.f32 %v8818_v22, %v5339_v45  ;;  %v5340_v61 = vmul.f32 %v6701_v48, %v8813_v25  ;;  %v3550_v43 = vpop.f32.mrb[23].mxu1 }
 0x22c   : > { %6212 = vst [vmem:[%s8833_s26 + $0x30] sm:$0xff] %v6160_v19   ;;  %v5376_v13 = vadd.f32 %v8818_v22, %v5337_v5  ;;  %v5338_v53 = vmul.f32 %v6702_v9, %v8813_v25 }
 0x22d   : > { %v5379_v55 = vadd.f32 %v8818_v22, %v5340_v61  ;;  %v5410_v51 = vmax.f32 %v5378_v28, 0.0 }
 0x22e   : > { %v5377_v33 = vadd.f32 %v8818_v22, %v5338_v53  ;;  %v6671_v47 = vpop.f32.mrb[20].mxu0  ;;  %v5408_v63 = vmax.f32 %v5376_v13, 0.0 }
 0x22f   : > { %v5411_v17 = vmax.f32 %v5379_v55, 0.0  ;;  %v6703_v23 = vadd.f32 %v6671_v47, %v6535_v38  ;;  %v5235_v0 = vpop.f32.mrb[21].mxu0 }
 0x230   : > { %v5409_v41 = vmax.f32 %v5377_v33, 0.0  ;;  %v6704_v57 = vadd.f32 %v5235_v0, %v3547_v16  ;;  %v6672_v4 = vpop.f32.mrb[22].mxu0  ;;  %v6539_v50 = vpop.f32.mrb[24].mxu1 }
 0x231   : > { %v6175_v2 = vpack.c.bf16 %v5411_v17, %v5410_v51  ;;  %v5343_v3 = vmul.f32 %v6703_v23, %v8813_v25  ;;  %v6705_v42 = vadd.f32 %v6672_v4, %v6536_v10  ;;  %v5238_v62 = vpop.f32.mrb[23].mxu0  ;;  %v3563_v40 = vpop.f32.mrb[25].mxu1 }
 0x232   : > { %v6170_v7 = vpack.c.bf16 %v5409_v41, %v5408_v63  ;;  %v5341_v37 = vmul.f32 %v6704_v57, %v8813_v25  ;;  %v6706_v46 = vadd.f32 %v5238_v62, %v3550_v43  ;;  %v6540_v52 = vpop.f32.mrb[26].mxu1 }
 0x233   : > { %6215 = vst [vmem:[%s8833_s26 + $0x48] sm:$0xff] %v6175_v2   ;;  %v5382_v34 = vadd.f32 %v8818_v22, %v5343_v3  ;;  %v5344_v1 = vmul.f32 %v6705_v42, %v8813_v25  ;;  %v3566_v36 = vpop.f32.mrb[27].mxu1 }
 0x234   : > { %6214 = vst [vmem:[%s8833_s26 + $0x40] sm:$0xff] %v6170_v7   ;;  %v5380_v44 = vadd.f32 %v8818_v22, %v5341_v37  ;;  %v5342_v12 = vmul.f32 %v6706_v46, %v8813_v25 }
 0x235   : > { %v5383_v31 = vadd.f32 %v8818_v22, %v5344_v1  ;;  %v5414_v21 = vmax.f32 %v5382_v34, 0.0 }
 0x236   : > { %v5381_v14 = vadd.f32 %v8818_v22, %v5342_v12  ;;  %v6675_v58 = vpop.f32.mrb[24].mxu0  ;;  %v5412_v39 = vmax.f32 %v5380_v44, 0.0 }
 0x237   : > { %v5415_v8 = vmax.f32 %v5383_v31, 0.0  ;;  %v6707_v32 = vadd.f32 %v6675_v58, %v6539_v50  ;;  %v5251_v35 = vpop.f32.mrb[25].mxu0 }
 0x238   : > { %v5413_v60 = vmax.f32 %v5381_v14, 0.0  ;;  %v6708_v49 = vadd.f32 %v5251_v35, %v3563_v40  ;;  %v6676_v54 = vpop.f32.mrb[26].mxu0  ;;  %v6543_v15 = vpop.f32.mrb[28].mxu1 }
 0x239   : > { %v6185_v26 = vpack.c.bf16 %v5415_v8, %v5414_v21  ;;  %v5347_v24 = vmul.f32 %v6707_v32, %v8813_v25  ;;  %v6709_v59 = vadd.f32 %v6676_v54, %v6540_v52  ;;  %v5254_v30 = vpop.f32.mrb[27].mxu0  ;;  %v3579_v56 = vpop.f32.mrb[29].mxu1 }
 0x23a   : > { %v6180_v6 = vpack.c.bf16 %v5413_v60, %v5412_v39  ;;  %v5345_v11 = vmul.f32 %v6708_v49, %v8813_v25  ;;  %v6710_v29 = vadd.f32 %v5254_v30, %v3566_v36  ;;  %v6544_v27 = vpop.f32.mrb[30].mxu1 }
 0x23b   : > { %6217 = vst [vmem:[%s8833_s26 + $0x58] sm:$0xff] %v6185_v26   ;;  %v5386_v38 = vadd.f32 %v8818_v22, %v5347_v24  ;;  %v5348_v18 = vmul.f32 %v6709_v59, %v8813_v25  ;;  %v3582_v45 = vpop.f32.mrb[31].mxu1 }
 0x23c   : > { %6216 = vst [vmem:[%s8833_s26 + $0x50] sm:$0xff] %v6180_v6   ;;  %v5384_v48 = vadd.f32 %v8818_v22, %v5345_v11  ;;  %v5346_v20 = vmul.f32 %v6710_v29, %v8813_v25 }
 0x23d   : > { %v5387_v16 = vadd.f32 %v8818_v22, %v5348_v18  ;;  %v5418_v9 = vmax.f32 %v5386_v38, 0.0 }
 0x23e   : > { %v5385_v19 = vadd.f32 %v8818_v22, %v5346_v20  ;;  %v6679_v5 = vpop.f32.mrb[28].mxu0  ;;  %v5416_v43 = vmax.f32 %v5384_v48, 0.0 }
 0x23f   : > { %v5419_v10 = vmax.f32 %v5387_v16, 0.0  ;;  %v6711_v28 = vadd.f32 %v6679_v5, %v6543_v15  ;;  %v5267_v61 = vpop.f32.mrb[29].mxu0 }
 0x240   : > { %v5417_v13 = vmax.f32 %v5385_v19, 0.0  ;;  %v6712_v53 = vadd.f32 %v5267_v61, %v3579_v56  ;;  %v6680_v55 = vpop.f32.mrb[30].mxu0 }
 0x241   : > { %v6195_v33 = vpack.c.bf16 %v5419_v10, %v5418_v9  ;;  %v5351_v47 = vmul.f32 %v6711_v28, %v8813_v25  ;;  %v6713_v51 = vadd.f32 %v6680_v55, %v6544_v27  ;;  %v5270_v17 = vpop.f32.mrb[31].mxu0 }
 0x242   : > { %v6190_v23 = vpack.c.bf16 %v5417_v13, %v5416_v43  ;;  %v5349_v0 = vmul.f32 %v6712_v53, %v8813_v25  ;;  %v6714_v63 = vadd.f32 %v5270_v17, %v3582_v45 }
 0x243   : > { %6219 = vst [vmem:[%s8833_s26 + $0x68] sm:$0xff] %v6195_v33   ;;  %v5390_v41 = vadd.f32 %v8818_v22, %v5351_v47  ;;  %v5352_v57 = vmul.f32 %v6713_v51, %v8813_v25 }
 0x244   : > { %6218 = vst [vmem:[%s8833_s26 + $0x60] sm:$0xff] %v6190_v23   ;;  %v5388_v4 = vadd.f32 %v8818_v22, %v5349_v0  ;;  %v5350_v50 = vmul.f32 %v6714_v63, %v8813_v25 }
 0x245   : > { %v5391_v2 = vadd.f32 %v8818_v22, %v5352_v57  ;;  %v5422_v42 = vmax.f32 %v5390_v41, 0.0 }
 0x246   : > { %v5389_v3 = vadd.f32 %v8818_v22, %v5350_v50  ;;  %v5420_v40 = vmax.f32 %v5388_v4, 0.0 }
 0x247   : > { %v5423_v62 = vmax.f32 %v5391_v2, 0.0 }
 0x248   : > { %v5421_v7 = vmax.f32 %v5389_v3, 0.0 }
 0x249   : > { %v6205_v37 = vpack.c.bf16 %v5423_v62, %v5422_v42 }
 0x24a   : > { %v6200_v25 = vpack.c.bf16 %v5421_v7, %v5420_v40 }
 0x24b   : > { %6221 = vst [vmem:[%s8833_s26 + $0x78] sm:$0xff] %v6205_v37  }
 0x24c   : > { %6220 = vst [vmem:[%s8833_s26 + $0x70] sm:$0xff] %v6200_v25  }
 0x24d   : > { %7120 = shalt.err (!%p7117_p5)
}
 0x24e   : > { %s7121_s12 = scalar_lea.hbm %s8913_s7, 2048  ;;  %s7125_s21 = scalar_lea.hbm %s8971_s4, 4096 }
 0x24f   : > { %p7122_p6 = scmp.ne.s32.totalorder %s8913_s7, %s7121_s12  ;;  %p7126_p10 = scmp.lt.u32.totalorder %s8913_s7, %s8971_s4 }
 0x250   : > { %p7127_p11 = scmp.lt.u32.totalorder %s7125_s21, %s7121_s12  ;;  %p7129_p13 = scmp.lt.u32.totalorder %s7121_s12, %s8913_s7 }
 0x251   : > { %p7123_p7 = pnand %p7122_p6, %p7259_p4 }
 0x252   : > { %p7128_p12 = por %p7127_p11, %p7126_p10 }
 0x253   : > { %p7124_p9 = pneg %p7123_p7 }
 0x254   : > { %p7130_p0 = por %p7129_p13, %p7128_p12 }
 0x256   : > { %p7131_p1 = pnand %p7130_p0, %p7124_p9 }
 0x258   : > { %7134 = shalt.err (!%p7131_p1)
}
 0x259   : > { %s7192_s26 = smov 64   ;;  %s7193_s29 = smov 4  }
 0x25a   : > { %6940 = dma.vmem_to_hbm [thread:$0]  (%p7259_p4), %s8915_s30, 2048, %s8913_s7, %s8921_s18, %s7192_s26, %s7192_s26, %s7193_s29  }
 0x25b PF: > { %p6946_p2 = scmp.ge.s32.totalorder %s7185_s20, 2  ;;  %s5614_s5 = sand.u32 1, %s7165_s15  }
 0x25c   : > { %s5615_s6 = scalar_lea.sflag [#allocation3], %s5614_s5 }
 0x25d   : > { %p6943_p3 = pnand %p6946_p2, %p7266_p8 }
 0x25f   : > { %7160 = dma.done.wait (!%p6943_p3), %s5615_s6, 2048  }
 0x260   : > { %7162 = vsyncadd (!%p6943_p3), %s5615_s6, 4294965248  ;;  %s17_s20 = sadd.s32 1, %s7185_s20   ;;  %s9246_s15 = smov %s7169_s16 }
 0x261   : > { %p14_p5 = scmp.ge.s32.totalorder %s17_s20, 4   ;;  %s9247_s16 = smov %s7173_s17 }
 0x262   : > { %s9248_s17 = smov %s7272_s28  ;;  %s9249_s18 = smov %s7181_s19 }
 0x263   : > { %s9250_s19 = smov %s9252_s23  ;;  %16 = sbr.rel (!%p14_p5) target bundleno = 4 (0x4), region = 80 }
 0x26a   :  { %5620 = vsyncpa [#allocation3], 1 }
 0x26b   :  { %5622 = vsyncpa [#allocation3 + $0x1], 1 }

</bundles_post_ra>
